<compile_context>
chip_gen: v5e
topology: v5e:2x2
jax: 0.10.0
libtpu: 0.0.40
codegen_flags: <defaults>
</compile_context>

<pallas_src>
import jax
import jax.numpy as jnp
from jax.experimental import pallas as pl
from jax.experimental.pallas import tpu as pltpu


def _round_up(x, m):
    return (x + m - 1) // m * m


def _mlp_kernel(x_ref, w1_ref, b1_ref, w2_ref, b2_ref, w3_ref, b3_ref, o_ref):
    # fc1 + ReLU  (bf16 operands, f32 accumulation on the MXU)
    h = jnp.dot(x_ref[...], w1_ref[...], preferred_element_type=jnp.float32)
    h = jnp.maximum(h + b1_ref[...], 0.0).astype(jnp.bfloat16)
    # fc2 + ReLU
    h = jnp.dot(h, w2_ref[...], preferred_element_type=jnp.float32)
    h = jnp.maximum(h + b2_ref[...], 0.0).astype(jnp.bfloat16)
    # fc3 + ReLU (the PyTorch module applies ReLU on the last layer too)
    h = jnp.dot(h, w3_ref[...], preferred_element_type=jnp.float32)
    h = jnp.maximum(h + b3_ref[...], 0.0)
    o_ref[...] = h.astype(o_ref.dtype)


def orthographic_net_forward(x, params, *, bm=None):
    """Pallas TPU forward for OrthographicNet: relu(fc3(relu(fc2(relu(fc1(x))))))."""
    w1, b1, w2, b2, w3, b3 = params
    B, num_input = x.shape
    hidden = w1.shape[1]
    num_output = w3.shape[1]

    f32, bf16 = jnp.float32, jnp.bfloat16

    # Lane-align feature dims (last dim -> 128 lanes): unmasked loads/stores.
    k_p = _round_up(num_input, 128)
    n_p = _round_up(num_output, 128)

    # Batch tile: whole batch when small, else 256 rows.  256x1024 bf16 tiles
    # give full MXU passes while keeping live f32 intermediates (~1 MiB) well
    # clear of vreg/VMEM pressure on v5e/v6e/v7x.
    if bm is None:
        bm = min(256, _round_up(B, 8))
    bp = _round_up(B, bm)

    # Pad + cast once in the wrapper.  Zero padding is exact: padded x columns
    # and padded W1 rows / W3 columns contribute nothing; extra output columns
    # and batch-pad rows are sliced off below.
    xp = jnp.zeros((bp, k_p), bf16).at[:B, :num_input].set(x.astype(bf16))
    w1p = jnp.zeros((k_p, hidden), bf16).at[:num_input, :].set(w1.astype(bf16))
    w2p = w2.astype(bf16)
    w3p = jnp.zeros((hidden, n_p), bf16).at[:, :num_output].set(w3.astype(bf16))
    b1p = b1.astype(f32).reshape(1, hidden)
    b2p = b2.astype(f32).reshape(1, hidden)
    b3p = jnp.zeros((1, n_p), f32).at[:, :num_output].set(
        b3.astype(f32).reshape(1, num_output))

    grid = (bp // bm,)
    full = lambda shape: pl.BlockSpec(shape, lambda i: (0, 0))  # resident block

    out = pl.pallas_call(
        _mlp_kernel,
        out_shape=jax.ShapeDtypeStruct((bp, n_p), jnp.float32),
        grid_spec=pltpu.PrefetchScalarGridSpec(
            num_scalar_prefetch=0,
            grid=grid,
            in_specs=[
                pl.BlockSpec((bm, k_p), lambda i: (i, 0)),   # x batch tile
                full((k_p, hidden)),                         # W1 (resident)
                full((1, hidden)),                           # b1
                full((hidden, hidden)),                      # W2 (resident)
                full((1, hidden)),                           # b2
                full((hidden, n_p)),                         # W3 (resident)
                full((1, n_p)),                              # b3
            ],
            out_specs=pl.BlockSpec((bm, n_p), lambda i: (i, 0)),
        ),
        compiler_params=pltpu.CompilerParams(
            dimension_semantics=("parallel",),   # shardable across v7x's 2 TCs
            vmem_limit_bytes=48 << 20,           # < v7x 64 MiB/TC physical VMEM
        ),
    )(xp, w1p, b1p, w2p, b2p, w3p, b3p)
    return out[:B, :num_output]


def init_params(key, num_input, num_output, hidden=1024):
    """Deterministic init mimicking nn.Linear's default U(-1/sqrt(fan_in), ...)."""
    ks = jax.random.split(key, 6)

    def linear(kw, kb, fan_in, fan_out):
        bound = 1.0 / jnp.sqrt(jnp.float32(fan_in))
        w = jax.random.uniform(kw, (fan_in, fan_out), jnp.float32, -bound, bound)
        b = jax.random.uniform(kb, (1, fan_out), jnp.float32, -bound, bound)
        return w, b

    w1, b1 = linear(ks[0], ks[1], num_input, hidden)
    w2, b2 = linear(ks[2], ks[3], hidden, hidden)
    w3, b3 = linear(ks[4], ks[5], hidden, num_output)
    return (w1, b1, w2, b2, w3, b3)


def reference_forward_bf16(x, params):
    """Precision-matched JAX reference (bf16 operands, f32 accumulation)."""
    w1, b1, w2, b2, w3, b3 = params
    bf16 = jnp.bfloat16

    def lin_relu(h, w, b):
        y = jnp.dot(h.astype(bf16), w.astype(bf16),
                    preferred_element_type=jnp.float32)
        return jnp.maximum(y + b.reshape(1, -1).astype(jnp.float32), 0.0)

    h = lin_relu(x, w1, b1).astype(bf16)
    h = lin_relu(h, w2, b2).astype(bf16)
    h = lin_relu(h, w3, b3)
    return h


def reference_forward_f32(x, params):
    w1, b1, w2, b2, w3, b3 = params
    h = jnp.maximum(x @ w1 + b1, 0.0)
    h = jnp.maximum(h @ w2 + b2, 0.0)
    h = jnp.maximum(h @ w3 + b3, 0.0)
    return h


if __name__ == "__main__":
    key = jax.random.PRNGKey(0)
    kx, kp = jax.random.split(key)

    batch = 8
    num_input = 64     # OrthographicNet(num_input=64, num_output=32)
    num_output = 32

    x = jax.random.normal(kx, (batch, num_input), dtype=jnp.float32)
    params = init_params(kp, num_input, num_output)

    out = orthographic_net_forward(x, params)
    out = jax.block_until_ready(out)
    assert out.shape == (batch, num_output)

    # Precision-matched check (tight) + loose check against the f32 reference.
    ref_bf16 = reference_forward_bf16(x, params)
    assert jnp.allclose(out, ref_bf16, atol=1e-3, rtol=1e-3), "mismatch vs bf16-matched reference"
    ref_f32 = reference_forward_f32(x, params)
    assert jnp.allclose(out, ref_f32, atol=3e-2, rtol=3e-2), "mismatch vs f32 reference"

    print("KERNEL_OK")
</pallas_src>

<mosaic_0001>
module attributes {stable_mosaic.version = 11 : i64} {
  func.func @_mlp_kernel(%arg0: i32, %arg1: memref<8x128xbf16, #tpu.memory_space<vmem>>, %arg2: memref<128x1024xbf16, #tpu.memory_space<vmem>>, %arg3: memref<1x1024xf32, #tpu.memory_space<vmem>>, %arg4: memref<1024x1024xbf16, #tpu.memory_space<vmem>>, %arg5: memref<1x1024xf32, #tpu.memory_space<vmem>>, %arg6: memref<1024x128xbf16, #tpu.memory_space<vmem>>, %arg7: memref<1x128xf32, #tpu.memory_space<vmem>>, %arg8: memref<8x128xf32, #tpu.memory_space<vmem>>) attributes {dimension_semantics = [#tpu.dimension_semantics<parallel>], iteration_bounds = array<i64: 1>, scalar_prefetch = 0 : i64, scratch_operands = 0 : i64, tpu.core_type = #tpu.core_type<tc>, window_params = [{transform_indices = @transform_0, window_bounds = array<i64: 8, 128>}, {pipeline_mode = #tpu.pipeline_mode<synchronous>, transform_indices = @transform_1, window_bounds = array<i64: 128, 1024>}, {pipeline_mode = #tpu.pipeline_mode<synchronous>, transform_indices = @transform_2, window_bounds = array<i64: 1, 1024>}, {pipeline_mode = #tpu.pipeline_mode<synchronous>, transform_indices = @transform_3, window_bounds = array<i64: 1024, 1024>}, {pipeline_mode = #tpu.pipeline_mode<synchronous>, transform_indices = @transform_4, window_bounds = array<i64: 1, 1024>}, {pipeline_mode = #tpu.pipeline_mode<synchronous>, transform_indices = @transform_5, window_bounds = array<i64: 1024, 128>}, {pipeline_mode = #tpu.pipeline_mode<synchronous>, transform_indices = @transform_6, window_bounds = array<i64: 1, 128>}, {transform_indices = @transform_7, window_bounds = array<i64: 8, 128>}]} {
    %c0 = arith.constant 0 : index
    %c0_0 = arith.constant 0 : index
    %0 = vector.load %arg1[%c0, %c0_0] : memref<8x128xbf16, #tpu.memory_space<vmem>>, vector<8x128xbf16>
    %c0_1 = arith.constant 0 : index
    %c0_2 = arith.constant 0 : index
    %1 = vector.load %arg2[%c0_1, %c0_2] : memref<128x1024xbf16, #tpu.memory_space<vmem>>, vector<128x1024xbf16>
    %cst = arith.constant dense<0.000000e+00> : vector<8x1024xf32>
    %2 = tpu.matmul %0, %1, %cst {dimension_numbers = #tpu.dot_dimension_numbers<[1], [0], [0], [1], [0, 0, 1, 1], [], []>} : vector<8x128xbf16>, vector<128x1024xbf16>, vector<8x1024xf32> -> vector<8x1024xf32>
    %c0_3 = arith.constant 0 : index
    %c0_4 = arith.constant 0 : index
    %3 = vector.load %arg3[%c0_3, %c0_4] : memref<1x1024xf32, #tpu.memory_space<vmem>>, vector<1x1024xf32>
    %4 = vector.broadcast %3 : vector<1x1024xf32> to vector<8x1024xf32>
    %5 = arith.addf %2, %4 : vector<8x1024xf32>
    %cst_5 = arith.constant 0.000000e+00 : f32
    %6 = vector.broadcast %cst_5 : f32 to vector<8x1024xf32>
    %7 = arith.maximumf %5, %6 : vector<8x1024xf32>
    %8 = arith.truncf %7 : vector<8x1024xf32> to vector<8x1024xbf16>
    %c0_6 = arith.constant 0 : index
    %c0_7 = arith.constant 0 : index
    %9 = vector.load %arg4[%c0_6, %c0_7] : memref<1024x1024xbf16, #tpu.memory_space<vmem>>, vector<1024x1024xbf16>
    %cst_8 = arith.constant dense<0.000000e+00> : vector<8x1024xf32>
    %10 = tpu.matmul %8, %9, %cst_8 {dimension_numbers = #tpu.dot_dimension_numbers<[1], [0], [0], [1], [0, 0, 1, 1], [], []>} : vector<8x1024xbf16>, vector<1024x1024xbf16>, vector<8x1024xf32> -> vector<8x1024xf32>
    %c0_9 = arith.constant 0 : index
    %c0_10 = arith.constant 0 : index
    %11 = vector.load %arg5[%c0_9, %c0_10] : memref<1x1024xf32, #tpu.memory_space<vmem>>, vector<1x1024xf32>
    %12 = vector.broadcast %11 : vector<1x1024xf32> to vector<8x1024xf32>
    %13 = arith.addf %10, %12 : vector<8x1024xf32>
    %cst_11 = arith.constant 0.000000e+00 : f32
    %14 = vector.broadcast %cst_11 : f32 to vector<8x1024xf32>
    %15 = arith.maximumf %13, %14 : vector<8x1024xf32>
    %16 = arith.truncf %15 : vector<8x1024xf32> to vector<8x1024xbf16>
    %c0_12 = arith.constant 0 : index
    %c0_13 = arith.constant 0 : index
    %17 = vector.load %arg6[%c0_12, %c0_13] : memref<1024x128xbf16, #tpu.memory_space<vmem>>, vector<1024x128xbf16>
    %cst_14 = arith.constant dense<0.000000e+00> : vector<8x128xf32>
    %18 = tpu.matmul %16, %17, %cst_14 {dimension_numbers = #tpu.dot_dimension_numbers<[1], [0], [0], [1], [0, 0, 1, 1], [], []>} : vector<8x1024xbf16>, vector<1024x128xbf16>, vector<8x128xf32> -> vector<8x128xf32>
    %c0_15 = arith.constant 0 : index
    %c0_16 = arith.constant 0 : index
    %19 = vector.load %arg7[%c0_15, %c0_16] : memref<1x128xf32, #tpu.memory_space<vmem>>, vector<1x128xf32>
    %20 = vector.broadcast %19 : vector<1x128xf32> to vector<8x128xf32>
    %21 = arith.addf %18, %20 : vector<8x128xf32>
    %cst_17 = arith.constant 0.000000e+00 : f32
    %22 = vector.broadcast %cst_17 : f32 to vector<8x128xf32>
    %23 = arith.maximumf %21, %22 : vector<8x128xf32>
    %c0_18 = arith.constant 0 : index
    %c0_19 = arith.constant 0 : index
    %24 = vector.load %arg8[%c0_18, %c0_19] : memref<8x128xf32, #tpu.memory_space<vmem>>, vector<8x128xf32>
    tpu.vector_store %arg8[%c0_18, %c0_19], %23 {strides = array<i32>} : memref<8x128xf32, #tpu.memory_space<vmem>>, vector<8x128xf32>,
    return
  }
  func.func @transform_0(%arg0: i32) -> (i32, i32) {
    %c0_i32 = arith.constant 0 : i32
    %c0_i32_0 = arith.constant 0 : i32
    return %arg0, %c0_i32 : i32, i32
  }
  func.func @transform_1(%arg0: i32) -> (i32, i32) {
    %c0_i32 = arith.constant 0 : i32
    %c0_i32_0 = arith.constant 0 : i32
    %c0_i32_1 = arith.constant 0 : i32
    return %c0_i32, %c0_i32_0 : i32, i32
  }
  func.func @transform_2(%arg0: i32) -> (i32, i32) {
    %c0_i32 = arith.constant 0 : i32
    %c0_i32_0 = arith.constant 0 : i32
    %c0_i32_1 = arith.constant 0 : i32
    return %c0_i32, %c0_i32_0 : i32, i32
  }
  func.func @transform_3(%arg0: i32) -> (i32, i32) {
    %c0_i32 = arith.constant 0 : i32
    %c0_i32_0 = arith.constant 0 : i32
    %c0_i32_1 = arith.constant 0 : i32
    return %c0_i32, %c0_i32_0 : i32, i32
  }
  func.func @transform_4(%arg0: i32) -> (i32, i32) {
    %c0_i32 = arith.constant 0 : i32
    %c0_i32_0 = arith.constant 0 : i32
    %c0_i32_1 = arith.constant 0 : i32
    return %c0_i32, %c0_i32_0 : i32, i32
  }
  func.func @transform_5(%arg0: i32) -> (i32, i32) {
    %c0_i32 = arith.constant 0 : i32
    %c0_i32_0 = arith.constant 0 : i32
    %c0_i32_1 = arith.constant 0 : i32
    return %c0_i32, %c0_i32_0 : i32, i32
  }
  func.func @transform_6(%arg0: i32) -> (i32, i32) {
    %c0_i32 = arith.constant 0 : i32
    %c0_i32_0 = arith.constant 0 : i32
    %c0_i32_1 = arith.constant 0 : i32
    return %c0_i32, %c0_i32_0 : i32, i32
  }
  func.func @transform_7(%arg0: i32) -> (i32, i32) {
    %c0_i32 = arith.constant 0 : i32
    %c0_i32_0 = arith.constant 0 : i32
    return %arg0, %c0_i32 : i32, i32
  }
}

</mosaic_0001>

<bundles_post_ra>
// kernel: tpu_custom_call.1
= control target key start
LH: loop header
LB: loop body
LE: loop exit
PB: predicated region body
PF: predicated region fallthrough
CT: control target
= control target key end

     0   :  { %12 = vsyncpa [#allocation3], 0  ;;  %s8889_s0 = inlined_call_operand.hbm [shape: bf16[8,128], index: 0, kind: input, shape index: {}]   ;;  %s8890_s1 = inlined_call_operand.hbm [shape: bf16[128,1024], index: 1, kind: input, shape index: {}]   ;;  %s8891_s2 = inlined_call_operand.hbm [shape: f32[1,1024], index: 2, kind: input, shape index: {}]   ;;  %s8892_s3 = inlined_call_operand.hbm [shape: bf16[1024,1024], index: 3, kind: input, shape index: {}]   ;;  %s8893_s4 = inlined_call_operand.hbm [shape: f32[1,1024], index: 4, kind: input, shape index: {}]   ;;  %s8894_s5 = inlined_call_operand.hbm [shape: bf16[1024,128], index: 5, kind: input, shape index: {}]   ;;  %s8895_s6 = inlined_call_operand.hbm [shape: f32[1,128], index: 6, kind: input, shape index: {}]   ;;  %s8896_s7 = inlined_call_operand.hbm [shape: f32[8,128], index: 7, kind: output, shape index: {}]  }
   0x1   :  { %13 = vsyncpa [#allocation6], 0 }
   0x2   :  { %14 = vsyncpa [#allocation9], 0 }
   0x3   :  { %15 = vsyncpa [#allocation12], 0  ;;  %s32_s26 = sshll.u32 %s8890_s1, 4  ;;  %s33_s26 = int_to_ptr.hbm [resolvable:$true] %s32_s26 }
   0x4   :  { %16 = vsyncpa [#allocation4], 0  ;;  %s8648_s27 = smov [#allocation5]   ;;  %s56_s8 = sshll.u32 %s8892_s3, 4  ;;  %s57_s8 = int_to_ptr.hbm [resolvable:$true] %s56_s8 }
   0x5   :  { %s34_s28 = sshll.u32 %s8648_s27, 4  ;;  %s8649_s9 = smov 512   ;;  %s35_s28 = int_to_ptr.vmem [resolvable:$true] %s34_s28 }
   0x6   :  { %s8650_s10 = smov 32   ;;  %s8651_s11 = smov [#allocation8]  }
   0x7   :  { %40 = dma.hbm_to_vmem [thread:$0]  %s33_s26, 8192, %s35_s28, [#allocation6], %s8649_s9, %s8649_s9, %s8650_s10  }
   0x8   :  { %s58_s12 = sshll.u32 %s8651_s11, 4  ;;  %s80_s15 = sshll.u32 %s8894_s5, 4  ;;  %s59_s12 = int_to_ptr.vmem [resolvable:$true] %s58_s12  ;;  %s81_s15 = int_to_ptr.hbm [resolvable:$true] %s80_s15 }
   0x9   :  { %64 = dma.hbm_to_vmem [thread:$0]  %s57_s8, 65536, %s59_s12, [#allocation9], %s8649_s9, %s8649_s9, %s8650_s10  }
   0xa   :  { %s8652_s1 = smov [#allocation11]   ;;  %s22_s3 = sshll.u32 %s8889_s0, 4  ;;  %s23_s3 = int_to_ptr.hbm [resolvable:$true] %s22_s3 }
   0xb   :  { %s82_s16 = sshll.u32 %s8652_s1, 4  ;;  %s8653_s19 = smov 64   ;;  %s83_s16 = int_to_ptr.vmem [resolvable:$true] %s82_s16 }
   0xc   :  { %s8654_s20 = smov 4   ;;  %s8655_s21 = smov [#allocation2]  }
   0xd   :  { %88 = dma.hbm_to_vmem [thread:$0]  %s81_s15, 8192, %s83_s16, [#allocation12], %s8653_s19, %s8653_s19, %s8654_s20  }
   0xe   :  { %s24_s22 = sshll.u32 %s8655_s21, 4  ;;  %s46_s5 = sshll.u32 %s8891_s2, 4  ;;  %s25_s22 = int_to_ptr.vmem [resolvable:$true] %s24_s22  ;;  %s47_s5 = int_to_ptr.hbm [resolvable:$true] %s46_s5 }
   0xf   :  { %27 = dma.hbm_to_vmem [thread:$0]  %s23_s3, 64, %s25_s22, [#allocation3]  }
  0x10   :  { %s70_s27 = sshll.u32 %s8893_s4, 4  ;;  %s8656_s28 = smov [#allocation7]   ;;  %s71_s27 = int_to_ptr.hbm [resolvable:$true] %s70_s27 }
  0x11   :  { %s48_s29 = sshll.u32 %s8656_s28, 4  ;;  %s8657_s0 = smov [#allocation10]   ;;  %s49_s29 = int_to_ptr.vmem [resolvable:$true] %s48_s29 }
  0x12   :  { %51 = dma.hbm_to_vmem [thread:$0]  %s47_s5, 128, %s49_s29, [#allocation6]  }
  0x13   :  { %s72_s30 = sshll.u32 %s8657_s0, 4  ;;  %s94_s10 = sshll.u32 %s8895_s6, 4  ;;  %s73_s30 = int_to_ptr.vmem [resolvable:$true] %s72_s30  ;;  %s95_s10 = int_to_ptr.hbm [resolvable:$true] %s94_s10 }
  0x14   :  { %75 = dma.hbm_to_vmem [thread:$0]  %s71_s27, 128, %s73_s30, [#allocation9]  }
  0x15   :  { %s8658_s2 = smov [#allocation13]  }
  0x16   :  { %s96_s11 = sshll.u32 %s8658_s2, 4  ;;  %s97_s11 = int_to_ptr.vmem [resolvable:$true] %s96_s11 }
  0x17   :  { %99 = dma.hbm_to_vmem [thread:$0]  %s95_s10, 16, %s97_s11, [#allocation12]  }
  0x18   :  { %8638 = dma.done.wait [#allocation3], 64  }
  0x19   :  { %8639 = vsyncadd [#allocation3], 4294967232 }
  0x1a   :  { %8640 = dma.done.wait [#allocation6], 8320  }
  0x1b   :  { %8641 = vsyncadd [#allocation6], 4294958976 }
  0x1c   :  { %8642 = dma.done.wait [#allocation9], 65664  }
  0x1d   :  { %8643 = vsyncadd [#allocation9], 4294901632 }
  0x1e   :  { %8644 = dma.done.wait [#allocation12], 8208  }
  0x1f   :  { %8645 = vsyncadd [#allocation12], 4294959088  ;;  %v5457_v0 = vld [vmem:[#allocation5 + $0x1c0] sm:$0xf]  ;;  %v7847_v2 = vld [vmem:[#allocation5 + $0x1c4] sm:$0xf] }
  0x20   :  { %v7851_v1 = vld [vmem:[#allocation5 + $0x1dc] sm:$0xf0]  ;;  %v5459_v4 = vld [vmem:[#allocation5 + $0x1e0] sm:$0xf0]  ;;  %v5465_v5 = vld [vmem:[#allocation5 + $0x1c8] sm:$0xf] }
  0x21   :  { %v5458_v3 = vor.u32 %v7851_v1, %v5457_v0  ;;  %v7852_v6 = vld [vmem:[#allocation5 + $0x1e4] sm:$0xf0]  ;;  %v5462_v7 = vor.u32 %v7847_v2, %v5459_v4  ;;  %v7848_v9 = vld [vmem:[#allocation5 + $0x1cc] sm:$0xf]  ;;  %v5425_v11 = vld [vmem:[#allocation5 + $0x180] sm:$0xf] }
  0x22   :  { %v5466_v8 = vor.u32 %v7852_v6, %v5465_v5  ;;  %v5467_v10 = vld [vmem:[#allocation5 + $0x1e8] sm:$0xf0]  ;;  %v7843_v13 = vld [vmem:[#allocation5 + $0x19c] sm:$0xf0]  ;;  %v7839_v14 = vld [vmem:[#allocation5 + $0x184] sm:$0xf] }
  0x23   :  { %531 = vmatpush.bf16.msra.mxu0 %v5458_v3  ;;  %v5470_v12 = vor.u32 %v7848_v9, %v5467_v10  ;;  %v5427_v15 = vld [vmem:[#allocation5 + $0x1a0] sm:$0xf0]  ;;  %544 = vmatpush.bf16.msra.mxu1 %v5462_v7  ;;  %v5426_v16 = vor.u32 %v7843_v13, %v5425_v11  ;;  %v5433_v18 = vld [vmem:[#allocation5 + $0x188] sm:$0xf]  ;;  %v7840_v20 = vld [vmem:[#allocation5 + $0x18c] sm:$0xf] }
  0x24   :  { %557 = vmatpush.bf16.msra.mxu2 %v5466_v8  ;;  %v5430_v17 = vor.u32 %v7839_v14, %v5427_v15  ;;  %v7844_v19 = vld [vmem:[#allocation5 + $0x1a4] sm:$0xf0]  ;;  %v5435_v22 = vld [vmem:[#allocation5 + $0x1a8] sm:$0xf0]  ;;  %v5393_v23 = vld [vmem:[#allocation5 + $0x140] sm:$0xf] }
  0x25   :  { %570 = vmatpush.bf16.msra.mxu3 %v5470_v12  ;;  %v5434_v21 = vor.u32 %v7844_v19, %v5433_v18  ;;  %v7835_v24 = vld [vmem:[#allocation5 + $0x15c] sm:$0xf0]  ;;  %v5438_v25 = vor.u32 %v7840_v20, %v5435_v22  ;;  %v7831_v26 = vld [vmem:[#allocation5 + $0x144] sm:$0xf]  ;;  %v5401_v28 = vld [vmem:[#allocation5 + $0x148] sm:$0xf] }
  0x26   :  { %v5395_v27 = vld [vmem:[#allocation5 + $0x160] sm:$0xf0]  ;;  %v5394_v29 = vor.u32 %v7835_v24, %v5393_v23  ;;  %v7836_v30 = vld [vmem:[#allocation5 + $0x164] sm:$0xf0]  ;;  %v7832_v31 = vld [vmem:[#allocation5 + $0x14c] sm:$0xf] }
  0x27   :  { %532 = vmatpush.bf16.msra.mxu0 %v5426_v16  ;;  %v5403_v32 = vld [vmem:[#allocation5 + $0x168] sm:$0xf0]  ;;  %545 = vmatpush.bf16.msra.mxu1 %v5430_v17  ;;  %v5398_v33 = vor.u32 %v7831_v26, %v5395_v27  ;;  %v5402_v34 = vor.u32 %v7836_v30, %v5401_v28  ;;  %v5361_v35 = vld [vmem:[#allocation5 + $0x100] sm:$0xf]  ;;  %v7823_v37 = vld [vmem:[#allocation5 + $0x104] sm:$0xf] }
  0x28   :  { %558 = vmatpush.bf16.msra.mxu2 %v5434_v21  ;;  %v7827_v36 = vld [vmem:[#allocation5 + $0x11c] sm:$0xf0]  ;;  %v5406_v38 = vor.u32 %v7832_v31, %v5403_v32  ;;  %v5363_v39 = vld [vmem:[#allocation5 + $0x120] sm:$0xf0]  ;;  %v5369_v40 = vld [vmem:[#allocation5 + $0x108] sm:$0xf] }
  0x29   :  { %571 = vmatpush.bf16.msra.mxu3 %v5438_v25  ;;  %v7828_v41 = vld [vmem:[#allocation5 + $0x124] sm:$0xf0]  ;;  %v7824_v42 = vld [vmem:[#allocation5 + $0x10c] sm:$0xf]  ;;  %v5362_v44 = vor.u32 %v7827_v36, %v5361_v35  ;;  %v5366_v45 = vor.u32 %v7823_v37, %v5363_v39  ;;  %v5329_v47 = vld [vmem:[#allocation5 + $0xc0] sm:$0xf] }
  0x2a   :  { %v5371_v43 = vld [vmem:[#allocation5 + $0x128] sm:$0xf0]  ;;  %v5370_v46 = vor.u32 %v7828_v41, %v5369_v40  ;;  %v7819_v48 = vld [vmem:[#allocation5 + $0xdc] sm:$0xf0]  ;;  %v7815_v49 = vld [vmem:[#allocation5 + $0xc4] sm:$0xf] }
  0x2b   :  { %533 = vmatpush.bf16.msra.mxu0 %v5394_v29  ;;  %546 = vmatpush.bf16.msra.mxu1 %v5398_v33  ;;  %v5374_v50 = vor.u32 %v7824_v42, %v5371_v43  ;;  %v5331_v51 = vld [vmem:[#allocation5 + $0xe0] sm:$0xf0]  ;;  %v5337_v52 = vld [vmem:[#allocation5 + $0xc8] sm:$0xf]  ;;  %v7816_v54 = vld [vmem:[#allocation5 + $0xcc] sm:$0xf]  ;;  %v5330_v56 = vor.u32 %v7819_v48, %v5329_v47 }
  0x2c   :  { %559 = vmatpush.bf16.msra.mxu2 %v5402_v34  ;;  %v7820_v53 = vld [vmem:[#allocation5 + $0xe4] sm:$0xf0]  ;;  %v5339_v55 = vld [vmem:[#allocation5 + $0xe8] sm:$0xf0]  ;;  %v5334_v57 = vor.u32 %v7815_v49, %v5331_v51  ;;  %v5297_v59 = vld [vmem:[#allocation5 + $0x80] sm:$0xf] }
  0x2d   :  { %572 = vmatpush.bf16.msra.mxu3 %v5406_v38  ;;  %v5338_v58 = vor.u32 %v7820_v53, %v5337_v52  ;;  %v7811_v60 = vld [vmem:[#allocation5 + $0x9c] sm:$0xf0]  ;;  %v7807_v61 = vld [vmem:[#allocation5 + $0x84] sm:$0xf]  ;;  %v5342_v62 = vor.u32 %v7816_v54, %v5339_v55  ;;  %v5305_v0 = vld [vmem:[#allocation5 + $0x88] sm:$0xf] }
  0x2e   :  { %v5299_v63 = vld [vmem:[#allocation5 + $0xa0] sm:$0xf0]  ;;  %v7812_v1 = vld [vmem:[#allocation5 + $0xa4] sm:$0xf0]  ;;  %v7808_v2 = vld [vmem:[#allocation5 + $0x8c] sm:$0xf]  ;;  %v5298_v4 = vor.u32 %v7811_v60, %v5297_v59 }
  0x2f   :  { %534 = vmatpush.bf16.msra.mxu0 %v5362_v44  ;;  %547 = vmatpush.bf16.msra.mxu1 %v5366_v45  ;;  %v5307_v3 = vld [vmem:[#allocation5 + $0xa8] sm:$0xf0]  ;;  %v5302_v5 = vor.u32 %v7807_v61, %v5299_v63  ;;  %v5306_v6 = vor.u32 %v7812_v1, %v5305_v0  ;;  %v5265_v7 = vld [vmem:[#allocation5 + $0x40] sm:$0xf]  ;;  %v7799_v9 = vld [vmem:[#allocation5 + $0x44] sm:$0xf] }
  0x30   :  { %560 = vmatpush.bf16.msra.mxu2 %v5370_v46  ;;  %v7803_v8 = vld [vmem:[#allocation5 + $0x5c] sm:$0xf0]  ;;  %v5310_v10 = vor.u32 %v7808_v2, %v5307_v3  ;;  %v5267_v11 = vld [vmem:[#allocation5 + $0x60] sm:$0xf0]  ;;  %v5273_v12 = vld [vmem:[#allocation5 + $0x48] sm:$0xf] }
  0x31   :  { %573 = vmatpush.bf16.msra.mxu3 %v5374_v50  ;;  %v7804_v13 = vld [vmem:[#allocation5 + $0x64] sm:$0xf0]  ;;  %v7800_v14 = vld [vmem:[#allocation5 + $0x4c] sm:$0xf]  ;;  %v5266_v16 = vor.u32 %v7803_v8, %v5265_v7  ;;  %v5233_v17 = vld [vmem:[#allocation5] sm:$0xf]  ;;  %v5270_v19 = vor.u32 %v7799_v9, %v5267_v11 }
  0x32   :  { %v5275_v15 = vld [vmem:[#allocation5 + $0x68] sm:$0xf0]  ;;  %v7795_v18 = vld [vmem:[#allocation5 + $0x1c] sm:$0xf0]  ;;  %v5274_v20 = vor.u32 %v7804_v13, %v5273_v12  ;;  %v7791_v21 = vld [vmem:[#allocation5 + $0x4] sm:$0xf] }
  0x33   :  { %535 = vmatpush.bf16.msra.mxu0 %v5330_v56  ;;  %548 = vmatpush.bf16.msra.mxu1 %v5334_v57  ;;  %v5235_v22 = vld [vmem:[#allocation5 + $0x20] sm:$0xf0]  ;;  %v5241_v23 = vld [vmem:[#allocation5 + $0x8] sm:$0xf]  ;;  %v5278_v24 = vor.u32 %v7800_v14, %v5275_v15  ;;  %v7792_v26 = vld [vmem:[#allocation5 + $0xc] sm:$0xf]  ;;  %v5234_v31 = vor.u32 %v7795_v18, %v5233_v17 }
  0x34   :  { %561 = vmatpush.bf16.msra.mxu2 %v5338_v58  ;;  %v7796_v25 = vld [vmem:[#allocation5 + $0x24] sm:$0xf0]  ;;  %v5243_v27 = vld [vmem:[#allocation5 + $0x28] sm:$0xf0]  ;;  %v5473_v28 = vld [vmem:[#allocation5 + $0x1d0] sm:$0xf]  ;;  %v5238_v35 = vor.u32 %v7791_v21, %v5235_v22 }
  0x35   :  { %574 = vmatpush.bf16.msra.mxu3 %v5342_v62  ;;  %v7853_v29 = vld [vmem:[#allocation5 + $0x1ec] sm:$0xf0]  ;;  %v7849_v30 = vld [vmem:[#allocation5 + $0x1d4] sm:$0xf]  ;;  %v5481_v33 = vld [vmem:[#allocation5 + $0x1d8] sm:$0xf]  ;;  %v5242_v36 = vor.u32 %v7796_v25, %v5241_v23  ;;  %v5246_v39 = vor.u32 %v7792_v26, %v5243_v27 }
  0x36   :  { %v5475_v32 = vld [vmem:[#allocation5 + $0x1f0] sm:$0xf0]  ;;  %v7854_v34 = vld [vmem:[#allocation5 + $0x1f4] sm:$0xf0]  ;;  %v7850_v37 = vld [vmem:[#allocation5 + $0x1dc] sm:$0xf]  ;;  %v5474_v40 = vor.u32 %v7853_v29, %v5473_v28 }
  0x37   :  { %536 = vmatpush.bf16.msra.mxu0 %v5298_v4  ;;  %549 = vmatpush.bf16.msra.mxu1 %v5302_v5  ;;  %v5483_v38 = vld [vmem:[#allocation5 + $0x1f8] sm:$0xf0]  ;;  %v5478_v41 = vor.u32 %v7849_v30, %v5475_v32  ;;  %v5482_v42 = vor.u32 %v7854_v34, %v5481_v33  ;;  %v5441_v43 = vld [vmem:[#allocation5 + $0x190] sm:$0xf]  ;;  %v7841_v45 = vld [vmem:[#allocation5 + $0x194] sm:$0xf] }
  0x38   :  { %562 = vmatpush.bf16.msra.mxu2 %v5306_v6  ;;  %v7845_v44 = vld [vmem:[#allocation5 + $0x1ac] sm:$0xf0]  ;;  %v5486_v46 = vor.u32 %v7850_v37, %v5483_v38  ;;  %v5443_v47 = vld [vmem:[#allocation5 + $0x1b0] sm:$0xf0]  ;;  %v5449_v48 = vld [vmem:[#allocation5 + $0x198] sm:$0xf] }
  0x39   :  { %575 = vmatpush.bf16.msra.mxu3 %v5310_v10  ;;  %v7846_v49 = vld [vmem:[#allocation5 + $0x1b4] sm:$0xf0]  ;;  %v8721_v50 = vld [vmem:[#allocation2] sm:$0xf]  ;;  %v5442_v53 = vor.u32 %v7845_v44, %v5441_v43  ;;  %v5446_v54 = vor.u32 %v7841_v45, %v5443_v47  ;;  %v5409_v56 = vld [vmem:[#allocation5 + $0x150] sm:$0xf] }
  0x3a   :  { %v7842_v51 = vld [vmem:[#allocation5 + $0x19c] sm:$0xf]  ;;  %v5450_v55 = vor.u32 %v7846_v49, %v5449_v48  ;;  %v7837_v57 = vld [vmem:[#allocation5 + $0x16c] sm:$0xf0]  ;;  %v7833_v58 = vld [vmem:[#allocation5 + $0x154] sm:$0xf] }
  0x3b   :  { %537 = vmatpush.bf16.msra.mxu0 %v5266_v16  ;;  %550 = vmatpush.bf16.msra.mxu1 %v5270_v19  ;;  %v5451_v52 = vld [vmem:[#allocation5 + $0x1b8] sm:$0xf0]  ;;  %v5411_v60 = vld [vmem:[#allocation5 + $0x170] sm:$0xf0]  ;;  %v5417_v61 = vld [vmem:[#allocation5 + $0x158] sm:$0xf]  ;;  %v5410_v1 = vor.u32 %v7837_v57, %v5409_v56 }
  0x3c   :  { %563 = vmatpush.bf16.msra.mxu2 %v5274_v20  ;;  %v5454_v59 = vor.u32 %v7842_v51, %v5451_v52  ;;  %v7838_v62 = vld [vmem:[#allocation5 + $0x174] sm:$0xf0]  ;;  %v7834_v63 = vld [vmem:[#allocation5 + $0x15c] sm:$0xf]  ;;  %v5414_v2 = vor.u32 %v7833_v58, %v5411_v60  ;;  %v5377_v4 = vld [vmem:[#allocation5 + $0x110] sm:$0xf] }
  0x3d   :  { %576 = vmatpush.bf16.msra.mxu3 %v5278_v24  ;;  %v5419_v0 = vld [vmem:[#allocation5 + $0x178] sm:$0xf0]  ;;  %v5418_v3 = vor.u32 %v7838_v62, %v5417_v61  ;;  %v7829_v5 = vld [vmem:[#allocation5 + $0x12c] sm:$0xf0]  ;;  %v7825_v6 = vld [vmem:[#allocation5 + $0x114] sm:$0xf] }
  0x3e   :  { %v5422_v7 = vor.u32 %v7834_v63, %v5419_v0  ;;  %v5379_v8 = vld [vmem:[#allocation5 + $0x130] sm:$0xf0]  ;;  %v5385_v9 = vld [vmem:[#allocation5 + $0x118] sm:$0xf]  ;;  %v7826_v11 = vld [vmem:[#allocation5 + $0x11c] sm:$0xf]  ;;  %v5378_v13 = vor.u32 %v7829_v5, %v5377_v4 }
  0x3f   :  { %538 = vmatpush.bf16.msra.mxu0 %v5234_v31  ;;  %551 = vmatpush.bf16.msra.mxu1 %v5238_v35  ;;  %v7830_v10 = vld [vmem:[#allocation5 + $0x134] sm:$0xf0]  ;;  %v5387_v12 = vld [vmem:[#allocation5 + $0x138] sm:$0xf0]  ;;  %v5382_v14 = vor.u32 %v7825_v6, %v5379_v8  ;;  %v5345_v16 = vld [vmem:[#allocation5 + $0xd0] sm:$0xf] }
  0x40   :  { %564 = vmatpush.bf16.msra.mxu2 %v5242_v36  ;;  %v5386_v15 = vor.u32 %v7830_v10, %v5385_v9  ;;  %v7821_v17 = vld [vmem:[#allocation5 + $0xec] sm:$0xf0]  ;;  %v7817_v18 = vld [vmem:[#allocation5 + $0xd4] sm:$0xf]  ;;  %v5390_v19 = vor.u32 %v7826_v11, %v5387_v12  ;;  %v5353_v21 = vld [vmem:[#allocation5 + $0xd8] sm:$0xf] }
  0x41   :  { %577 = vmatpush.bf16.msra.mxu3 %v5246_v39  ;;  %v5347_v20 = vld [vmem:[#allocation5 + $0xf0] sm:$0xf0]  ;;  %v7822_v22 = vld [vmem:[#allocation5 + $0xf4] sm:$0xf0]  ;;  %v7818_v23 = vld [vmem:[#allocation5 + $0xdc] sm:$0xf]  ;;  %v5346_v25 = vor.u32 %v7821_v17, %v5345_v16 }
  0x42   :  { %539 = vmatmul.bf16.vlgmr.msra.gmra.mxu0 %v8721_v50  ;;  %552 = vmatmul.bf16.vlgmr.msra.gmra.mxu1 %v8721_v50  ;;  %v5355_v24 = vld [vmem:[#allocation5 + $0xf8] sm:$0xf0]  ;;  %v5350_v26 = vor.u32 %v7817_v18, %v5347_v20  ;;  %v5354_v27 = vor.u32 %v7822_v22, %v5353_v21  ;;  %v5313_v28 = vld [vmem:[#allocation5 + $0x90] sm:$0xf]  ;;  %v7809_v30 = vld [vmem:[#allocation5 + $0x94] sm:$0xf] }
  0x43   :  { %583 = vmatpush.bf16.msrb.mxu0 %v5474_v40  ;;  %596 = vmatpush.bf16.msrb.mxu1 %v5478_v41  ;;  %v7813_v29 = vld [vmem:[#allocation5 + $0xac] sm:$0xf0]  ;;  %v5358_v31 = vor.u32 %v7818_v23, %v5355_v24  ;;  %v5315_v32 = vld [vmem:[#allocation5 + $0xb0] sm:$0xf0]  ;;  %v5321_v33 = vld [vmem:[#allocation5 + $0x98] sm:$0xf] }
  0x44   :  { %609 = vmatpush.bf16.msrb.mxu2 %v5482_v42  ;;  %578 = vmatmul.bf16.vlgmr.msra.gmra.mxu3 %v8721_v50  ;;  %v7814_v34 = vld [vmem:[#allocation5 + $0xb4] sm:$0xf0]  ;;  %v7810_v35 = vld [vmem:[#allocation5 + $0x9c] sm:$0xf]  ;;  %v5314_v37 = vor.u32 %v7813_v29, %v5313_v28  ;;  %v5318_v38 = vor.u32 %v7809_v30, %v5315_v32  ;;  %v5281_v40 = vld [vmem:[#allocation5 + $0x50] sm:$0xf] }
  0x45   :  { %622 = vmatpush.bf16.msrb.mxu3 %v5486_v46  ;;  %565 = vmatmul.bf16.vlgmr.msra.gmra.mxu2 %v8721_v50  ;;  %v5323_v36 = vld [vmem:[#allocation5 + $0xb8] sm:$0xf0]  ;;  %v5322_v39 = vor.u32 %v7814_v34, %v5321_v33  ;;  %v7805_v41 = vld [vmem:[#allocation5 + $0x6c] sm:$0xf0]  ;;  %v7801_v42 = vld [vmem:[#allocation5 + $0x54] sm:$0xf] }
  0x46   :  { %v5326_v43 = vor.u32 %v7810_v35, %v5323_v36  ;;  %v5283_v44 = vld [vmem:[#allocation5 + $0x70] sm:$0xf0]  ;;  %v5289_v45 = vld [vmem:[#allocation5 + $0x58] sm:$0xf]  ;;  %v7802_v47 = vld [vmem:[#allocation5 + $0x5c] sm:$0xf]  ;;  %v5282_v49 = vor.u32 %v7805_v41, %v5281_v40 }
  0x47   :  { %584 = vmatpush.bf16.msrb.mxu0 %v5442_v53  ;;  %597 = vmatpush.bf16.msrb.mxu1 %v5446_v54  ;;  %v7806_v46 = vld [vmem:[#allocation5 + $0x74] sm:$0xf0]  ;;  %v5291_v48 = vld [vmem:[#allocation5 + $0x78] sm:$0xf0]  ;;  %v5249_v51 = vld [vmem:[#allocation5 + $0x10] sm:$0xf]  ;;  %v5286_v52 = vor.u32 %v7801_v42, %v5283_v44 }
  0x48   :  { %610 = vmatpush.bf16.msrb.mxu2 %v5450_v55  ;;  %v5290_v53 = vor.u32 %v7806_v46, %v5289_v45  ;;  %v7797_v54 = vld [vmem:[#allocation5 + $0x2c] sm:$0xf0]  ;;  %v7793_v55 = vld [vmem:[#allocation5 + $0x14] sm:$0xf]  ;;  %v5294_v57 = vor.u32 %v7802_v47, %v5291_v48  ;;  %v5257_v58 = vld [vmem:[#allocation5 + $0x18] sm:$0xf] }
  0x49   :  { %623 = vmatpush.bf16.msrb.mxu3 %v5454_v59  ;;  %v5251_v56 = vld [vmem:[#allocation5 + $0x30] sm:$0xf0]  ;;  %v7798_v59 = vld [vmem:[#allocation5 + $0x34] sm:$0xf0]  ;;  %v7794_v60 = vld [vmem:[#allocation5 + $0x1c] sm:$0xf]  ;;  %v5250_v0 = vor.u32 %v7797_v54, %v5249_v51 }
  0x4a   :  { %v5259_v61 = vld [vmem:[#allocation5 + $0x38] sm:$0xf0]  ;;  %v5713_v62 = vld [vmem:[#allocation8 + $0x1c0] sm:$0xf]  ;;  %v5258_v4 = vor.u32 %v7798_v59, %v5257_v58  ;;  %s8659_s4 = smov [#allocation14]   ;;  %s5218_s14 = sshll.u32 %s8896_s7, 4  ;;  %s5219_s14 = int_to_ptr.hbm [resolvable:$true] %s5218_s14 }
  0x4b   :  { %585 = vmatpush.bf16.msrb.mxu0 %v5410_v1  ;;  %598 = vmatpush.bf16.msrb.mxu1 %v5414_v2  ;;  %v7915_v63 = vld [vmem:[#allocation8 + $0x1dc] sm:$0xf0]  ;;  %v5262_v5 = vor.u32 %v7794_v60, %v5259_v61  ;;  %s5216_s6 = sshll.u32 %s8659_s4, 4  ;;  %s5217_s6 = int_to_ptr.vmem [resolvable:$true] %s5216_s6 }
  0x4c   :  { %611 = vmatpush.bf16.msrb.mxu2 %v5418_v3  ;;  %v5969_v1 = vld [vmem:[#allocation8 + $0x3c0] sm:$0xf]  ;;  %v5254_v3 = vor.u32 %v7793_v55, %v5251_v56  ;;  %v5714_v6 = vor.u32 %v7915_v63, %v5713_v62 }
  0x4d   :  { %624 = vmatpush.bf16.msrb.mxu3 %v5422_v7  ;;  %v7979_v2 = vld [vmem:[#allocation8 + $0x3dc] sm:$0xf0] }
  0x4e   :  { %v5681_v7 = vld [vmem:[#allocation8 + $0x180] sm:$0xf]  ;;  %v5970_v10 = vor.u32 %v7979_v2, %v5969_v1 }
  0x4f   :  { %586 = vmatpush.bf16.msrb.mxu0 %v5378_v13  ;;  %599 = vmatpush.bf16.msrb.mxu1 %v5382_v14  ;;  %v6225_v8 = vld [vmem:[#allocation8 + $0x5c0] sm:$0xf] }
  0x50   :  { %612 = vmatpush.bf16.msrb.mxu2 %v5386_v15  ;;  %v8043_v9 = vld [vmem:[#allocation8 + $0x5dc] sm:$0xf0] }
  0x51   :  { %625 = vmatpush.bf16.msrb.mxu3 %v5390_v19  ;;  %v7907_v11 = vld [vmem:[#allocation8 + $0x19c] sm:$0xf0]  ;;  %v6226_v16 = vor.u32 %v8043_v9, %v6225_v8 }
  0x52   :  { %v6481_v12 = vld [vmem:[#allocation8 + $0x7c0] sm:$0xf]  ;;  %v5682_v17 = vor.u32 %v7907_v11, %v5681_v7 }
  0x53   :  { %587 = vmatpush.bf16.msrb.mxu0 %v5346_v25  ;;  %600 = vmatpush.bf16.msrb.mxu1 %v5350_v26  ;;  %v8107_v13 = vld [vmem:[#allocation8 + $0x7dc] sm:$0xf0] }
  0x54   :  { %613 = vmatpush.bf16.msrb.mxu2 %v5354_v27  ;;  %v5937_v14 = vld [vmem:[#allocation8 + $0x380] sm:$0xf]  ;;  %v6482_v18 = vor.u32 %v8107_v13, %v6481_v12 }
  0x55   :  { %626 = vmatpush.bf16.msrb.mxu3 %v5358_v31  ;;  %v7971_v15 = vld [vmem:[#allocation8 + $0x39c] sm:$0xf0] }
  0x56   :  { %v5649_v19 = vld [vmem:[#allocation8 + $0x140] sm:$0xf]  ;;  %v5938_v22 = vor.u32 %v7971_v15, %v5937_v14 }
  0x57   :  { %588 = vmatpush.bf16.msrb.mxu0 %v5314_v37  ;;  %601 = vmatpush.bf16.msrb.mxu1 %v5318_v38  ;;  %v6193_v20 = vld [vmem:[#allocation8 + $0x580] sm:$0xf] }
  0x58   :  { %614 = vmatpush.bf16.msrb.mxu2 %v5322_v39  ;;  %v8035_v21 = vld [vmem:[#allocation8 + $0x59c] sm:$0xf0] }
  0x59   :  { %627 = vmatpush.bf16.msrb.mxu3 %v5326_v43  ;;  %v7899_v23 = vld [vmem:[#allocation8 + $0x15c] sm:$0xf0]  ;;  %v6194_v28 = vor.u32 %v8035_v21, %v6193_v20 }
  0x5a   :  { %v6449_v24 = vld [vmem:[#allocation8 + $0x780] sm:$0xf]  ;;  %v5650_v29 = vor.u32 %v7899_v23, %v5649_v19 }
  0x5b   :  { %589 = vmatpush.bf16.msrb.mxu0 %v5282_v49  ;;  %602 = vmatpush.bf16.msrb.mxu1 %v5286_v52  ;;  %v8099_v25 = vld [vmem:[#allocation8 + $0x79c] sm:$0xf0] }
  0x5c   :  { %615 = vmatpush.bf16.msrb.mxu2 %v5290_v53  ;;  %v5905_v26 = vld [vmem:[#allocation8 + $0x340] sm:$0xf]  ;;  %v6450_v30 = vor.u32 %v8099_v25, %v6449_v24 }
  0x5d   :  { %628 = vmatpush.bf16.msrb.mxu3 %v5294_v57  ;;  %v7963_v27 = vld [vmem:[#allocation8 + $0x35c] sm:$0xf0] }
  0x5e   :  { %v5617_v31 = vld [vmem:[#allocation8 + $0x100] sm:$0xf]  ;;  %v5906_v34 = vor.u32 %v7963_v27, %v5905_v26 }
  0x5f   :  { %590 = vmatpush.bf16.msrb.mxu0 %v5250_v0  ;;  %603 = vmatpush.bf16.msrb.mxu1 %v5254_v3  ;;  %v6161_v32 = vld [vmem:[#allocation8 + $0x540] sm:$0xf] }
  0x60   :  { %616 = vmatpush.bf16.msrb.mxu2 %v5258_v4  ;;  %v8027_v33 = vld [vmem:[#allocation8 + $0x55c] sm:$0xf0] }
  0x61   :  { %629 = vmatpush.bf16.msrb.mxu3 %v5262_v5  ;;  %v7891_v35 = vld [vmem:[#allocation8 + $0x11c] sm:$0xf0]  ;;  %v6162_v40 = vor.u32 %v8027_v33, %v6161_v32 }
  0x62   :  { %591 = vmatmul.bf16.vlgmr.msrb.gmra.mxu0 %v8721_v50  ;;  %604 = vmatmul.bf16.vlgmr.msrb.gmra.mxu1 %v8721_v50  ;;  %v6417_v36 = vld [vmem:[#allocation8 + $0x740] sm:$0xf] }
  0x63   :  { %3741 = vmatpush.bf16.msra.mxu0 %v5714_v6  ;;  %3754 = vmatpush.bf16.msra.mxu1 %v5970_v10  ;;  %v8091_v37 = vld [vmem:[#allocation8 + $0x75c] sm:$0xf0] }
  0x64   :  { %617 = vmatmul.bf16.vlgmr.msrb.gmra.mxu2 %v8721_v50  ;;  %630 = vmatmul.bf16.vlgmr.msrb.gmra.mxu3 %v8721_v50  ;;  %v5873_v38 = vld [vmem:[#allocation8 + $0x300] sm:$0xf]  ;;  %v5618_v50 = vor.u32 %v7891_v35, %v5617_v31  ;;  %v6418_v42 = vor.u32 %v8091_v37, %v6417_v36 }
  0x65   :  { %3767 = vmatpush.bf16.msra.mxu2 %v6226_v16  ;;  %3780 = vmatpush.bf16.msra.mxu3 %v6482_v18  ;;  %v7955_v39 = vld [vmem:[#allocation8 + $0x31c] sm:$0xf0] }
  0x66   :  { %v5585_v41 = vld [vmem:[#allocation8 + $0xc0] sm:$0xf]  ;;  %v5874_v45 = vor.u32 %v7955_v39, %v5873_v38 }
  0x67   :  { %3742 = vmatpush.bf16.msra.mxu0 %v5682_v17  ;;  %3755 = vmatpush.bf16.msra.mxu1 %v5938_v22  ;;  %v6129_v43 = vld [vmem:[#allocation8 + $0x500] sm:$0xf] }
  0x68   :  { %v8019_v44 = vld [vmem:[#allocation8 + $0x51c] sm:$0xf0] }
  0x69   :  { %3768 = vmatpush.bf16.msra.mxu2 %v6194_v28  ;;  %3781 = vmatpush.bf16.msra.mxu3 %v6450_v30  ;;  %v7883_v46 = vld [vmem:[#allocation8 + $0xdc] sm:$0xf0]  ;;  %v6130_v52 = vor.u32 %v8019_v44, %v6129_v43 }
  0x6a   :  { %v6385_v47 = vld [vmem:[#allocation8 + $0x700] sm:$0xf]  ;;  %v5586_v53 = vor.u32 %v7883_v46, %v5585_v41 }
  0x6b   :  { %3743 = vmatpush.bf16.msra.mxu0 %v5650_v29  ;;  %3756 = vmatpush.bf16.msra.mxu1 %v5906_v34  ;;  %v8083_v48 = vld [vmem:[#allocation8 + $0x71c] sm:$0xf0] }
  0x6c   :  { %v5841_v49 = vld [vmem:[#allocation8 + $0x2c0] sm:$0xf]  ;;  %v6386_v54 = vor.u32 %v8083_v48, %v6385_v47 }
  0x6d   :  { %v7947_v51 = vld [vmem:[#allocation8 + $0x2dc] sm:$0xf0]  ;;  %3769 = vmatpush.bf16.msra.mxu2 %v6162_v40  ;;  %3782 = vmatpush.bf16.msra.mxu3 %v6418_v42 }
  0x6e   :  { %v5553_v55 = vld [vmem:[#allocation8 + $0x80] sm:$0xf]  ;;  %v5842_v58 = vor.u32 %v7947_v51, %v5841_v49 }
  0x6f   :  { %3744 = vmatpush.bf16.msra.mxu0 %v5618_v50  ;;  %v6097_v56 = vld [vmem:[#allocation8 + $0x4c0] sm:$0xf]  ;;  %3757 = vmatpush.bf16.msra.mxu1 %v5874_v45 }
  0x70   :  { %v8011_v57 = vld [vmem:[#allocation8 + $0x4dc] sm:$0xf0] }
  0x71   :  { %v7875_v59 = vld [vmem:[#allocation8 + $0x9c] sm:$0xf0]  ;;  %3770 = vmatpush.bf16.msra.mxu2 %v6130_v52  ;;  %v6098_v0 = vor.u32 %v8011_v57, %v6097_v56  ;;  %3783 = vmatpush.bf16.msra.mxu3 %v6386_v54 }
  0x72   :  { %v6353_v60 = vld [vmem:[#allocation8 + $0x6c0] sm:$0xf]  ;;  %v5554_v1 = vor.u32 %v7875_v59, %v5553_v55 }
  0x73   :  { %v8075_v61 = vld [vmem:[#allocation8 + $0x6dc] sm:$0xf0]  ;;  %3745 = vmatpush.bf16.msra.mxu0 %v5586_v53  ;;  %3758 = vmatpush.bf16.msra.mxu1 %v5842_v58 }
  0x74   :  { %v5809_v62 = vld [vmem:[#allocation8 + $0x280] sm:$0xf]  ;;  %v6354_v2 = vor.u32 %v8075_v61, %v6353_v60 }
  0x75   :  { %v7939_v63 = vld [vmem:[#allocation8 + $0x29c] sm:$0xf0]  ;;  %3771 = vmatpush.bf16.msra.mxu2 %v6098_v0 }
  0x76   :  { %v5521_v3 = vld [vmem:[#allocation8 + $0x40] sm:$0xf]  ;;  %v5810_v6 = vor.u32 %v7939_v63, %v5809_v62  ;;  %3784 = vmatpush.bf16.msra.mxu3 %v6354_v2 }
  0x77   :  { %v6065_v4 = vld [vmem:[#allocation8 + $0x480] sm:$0xf]  ;;  %3746 = vmatpush.bf16.msra.mxu0 %v5554_v1 }
  0x78   :  { %v8003_v5 = vld [vmem:[#allocation8 + $0x49c] sm:$0xf0]  ;;  %3759 = vmatpush.bf16.msra.mxu1 %v5810_v6 }
  0x79   :  { %v7867_v7 = vld [vmem:[#allocation8 + $0x5c] sm:$0xf0]  ;;  %v6066_v12 = vor.u32 %v8003_v5, %v6065_v4 }
  0x7a   :  { %v6321_v8 = vld [vmem:[#allocation8 + $0x680] sm:$0xf]  ;;  %v5522_v14 = vor.u32 %v7867_v7, %v5521_v3 }
  0x7b   :  { %v8067_v9 = vld [vmem:[#allocation8 + $0x69c] sm:$0xf0]  ;;  %3772 = vmatpush.bf16.msra.mxu2 %v6066_v12 }
  0x7c   :  { %v5777_v10 = vld [vmem:[#allocation8 + $0x240] sm:$0xf]  ;;  %v6322_v15 = vor.u32 %v8067_v9, %v6321_v8  ;;  %3747 = vmatpush.bf16.msra.mxu0 %v5522_v14 }
  0x7d   :  { %v7931_v11 = vld [vmem:[#allocation8 + $0x25c] sm:$0xf0] }
  0x7e   :  { %v5489_v13 = vld [vmem:[#allocation8] sm:$0xf]  ;;  %v5778_v19 = vor.u32 %v7931_v11, %v5777_v10  ;;  %3785 = vmatpush.bf16.msra.mxu3 %v6322_v15 }
  0x7f   :  { %v7859_v16 = vld [vmem:[#allocation8 + $0x1c] sm:$0xf0] }
  0x80   :  { %v6033_v17 = vld [vmem:[#allocation8 + $0x440] sm:$0xf]  ;;  %v5490_v29 = vor.u32 %v7859_v16, %v5489_v13  ;;  %3760 = vmatpush.bf16.msra.mxu1 %v5778_v19 }
  0x81   :  { %v7995_v18 = vld [vmem:[#allocation8 + $0x45c] sm:$0xf0] }
  0x82   :  { %v5745_v20 = vld [vmem:[#allocation8 + $0x200] sm:$0xf]  ;;  %v6034_v28 = vor.u32 %v7995_v18, %v6033_v17  ;;  %3748 = vmatpush.bf16.msra.mxu0 %v5490_v29 }
  0x83   :  { %v6289_v21 = vld [vmem:[#allocation8 + $0x640] sm:$0xf] }
  0x84   :  { %v8059_v22 = vld [vmem:[#allocation8 + $0x65c] sm:$0xf0]  ;;  %3773 = vmatpush.bf16.msra.mxu2 %v6034_v28 }
  0x85   :  { %v7923_v23 = vld [vmem:[#allocation8 + $0x21c] sm:$0xf0]  ;;  %v6290_v30 = vor.u32 %v8059_v22, %v6289_v21 }
  0x86   :  { %v6737_v24 = vld [vmem:[#allocation8 + $0x9c0] sm:$0xf]  ;;  %v5746_v35 = vor.u32 %v7923_v23, %v5745_v20 }
  0x87   :  { %v8171_v25 = vld [vmem:[#allocation8 + $0x9dc] sm:$0xf0]  ;;  %3786 = vmatpush.bf16.msra.mxu3 %v6290_v30 }
  0x88   :  { %v6993_v26 = vld [vmem:[#allocation8 + $0xbc0] sm:$0xf]  ;;  %v6738_v36 = vor.u32 %v8171_v25, %v6737_v24  ;;  %3761 = vmatpush.bf16.msra.mxu1 %v5746_v35 }
  0x89   :  { %v8235_v27 = vld [vmem:[#allocation8 + $0xbdc] sm:$0xf0] }
  0x8a   :  { %v6705_v31 = vld [vmem:[#allocation8 + $0x980] sm:$0xf]  ;;  %v6994_v40 = vor.u32 %v8235_v27, %v6993_v26  ;;  %3793 = vmatpush.bf16.msrb.mxu0 %v6738_v36 }
  0x8b   :  { %v6001_v32 = vld [vmem:[#allocation8 + $0x400] sm:$0xf] }
  0x8c   :  { %v7987_v33 = vld [vmem:[#allocation8 + $0x41c] sm:$0xf0]  ;;  %3806 = vmatpush.bf16.msrb.mxu1 %v6994_v40 }
  0x8d   :  { %v6257_v34 = vld [vmem:[#allocation8 + $0x600] sm:$0xf]  ;;  %v6002_v45 = vor.u32 %v7987_v33, %v6001_v32 }
  0x8e   :  { %v8051_v37 = vld [vmem:[#allocation8 + $0x61c] sm:$0xf0] }
  0x8f   :  { %v7249_v38 = vld [vmem:[#allocation8 + $0xdc0] sm:$0xf]  ;;  %v6258_v46 = vor.u32 %v8051_v37, %v6257_v34  ;;  %3774 = vmatpush.bf16.msra.mxu2 %v6002_v45 }
  0x90   :  { %v8299_v39 = vld [vmem:[#allocation8 + $0xddc] sm:$0xf0] }
  0x91   :  { %v8163_v41 = vld [vmem:[#allocation8 + $0x99c] sm:$0xf0]  ;;  %v7250_v47 = vor.u32 %v8299_v39, %v7249_v38  ;;  %3787 = vmatpush.bf16.msra.mxu3 %v6258_v46 }
  0x92   :  { %v7505_v50 = vld [vmem:[#allocation8 + $0xfc0] sm:$0xf]  ;;  %v6706_v48 = vor.u32 %v8163_v41, %v6705_v31 }
  0x93   :  { %v8363_v42 = vld [vmem:[#allocation8 + $0xfdc] sm:$0xf0]  ;;  %3819 = vmatpush.bf16.msrb.mxu2 %v7250_v47 }
  0x94   :  { %v6961_v43 = vld [vmem:[#allocation8 + $0xb80] sm:$0xf]  ;;  %v7506_v49 = vor.u32 %v8363_v42, %v7505_v50  ;;  %3794 = vmatpush.bf16.msrb.mxu0 %v6706_v48 }
  0x95   :  { %v8227_v44 = vld [vmem:[#allocation8 + $0xb9c] sm:$0xf0] }
  0x96   :  { %v6673_v51 = vld [vmem:[#allocation8 + $0x940] sm:$0xf]  ;;  %v6962_v54 = vor.u32 %v8227_v44, %v6961_v43  ;;  %3832 = vmatpush.bf16.msrb.mxu3 %v7506_v49 }
  0x97   :  { %v7217_v52 = vld [vmem:[#allocation8 + $0xd80] sm:$0xf] }
  0x98   :  { %v8291_v53 = vld [vmem:[#allocation8 + $0xd9c] sm:$0xf0]  ;;  %3807 = vmatpush.bf16.msrb.mxu1 %v6962_v54 }
  0x99   :  { %v8155_v55 = vld [vmem:[#allocation8 + $0x95c] sm:$0xf0]  ;;  %v7218_v60 = vor.u32 %v8291_v53, %v7217_v52 }
  0x9a   :  { %v7473_v56 = vld [vmem:[#allocation8 + $0xf80] sm:$0xf]  ;;  %v6674_v61 = vor.u32 %v8155_v55, %v6673_v51 }
  0x9b   :  { %v8355_v57 = vld [vmem:[#allocation8 + $0xf9c] sm:$0xf0]  ;;  %3820 = vmatpush.bf16.msrb.mxu2 %v7218_v60 }
  0x9c   :  { %v6929_v58 = vld [vmem:[#allocation8 + $0xb40] sm:$0xf]  ;;  %v7474_v62 = vor.u32 %v8355_v57, %v7473_v56  ;;  %3795 = vmatpush.bf16.msrb.mxu0 %v6674_v61 }
  0x9d   :  { %v8219_v59 = vld [vmem:[#allocation8 + $0xb5c] sm:$0xf0] }
  0x9e   :  { %v6641_v63 = vld [vmem:[#allocation8 + $0x900] sm:$0xf]  ;;  %v6930_v2 = vor.u32 %v8219_v59, %v6929_v58  ;;  %3833 = vmatpush.bf16.msrb.mxu3 %v7474_v62 }
  0x9f   :  { %v7185_v0 = vld [vmem:[#allocation8 + $0xd40] sm:$0xf] }
  0xa0   :  { %v8283_v1 = vld [vmem:[#allocation8 + $0xd5c] sm:$0xf0]  ;;  %3808 = vmatpush.bf16.msrb.mxu1 %v6930_v2  ;;  %v8731_v2 = vld [vmem:[#allocation7] sm:$0xff] }
  0xa1   :  { %v8147_v3 = vld [vmem:[#allocation8 + $0x91c] sm:$0xf0]  ;;  %v7186_v8 = vor.u32 %v8283_v1, %v7185_v0 }
  0xa2   :  { %v7441_v4 = vld [vmem:[#allocation8 + $0xf40] sm:$0xf]  ;;  %v6642_v9 = vor.u32 %v8147_v3, %v6641_v63  ;;  %v195_v3 = vperm.slane %v8731_v2, 0 }
  0xa3   :  { %v8347_v5 = vld [vmem:[#allocation8 + $0xf5c] sm:$0xf0]  ;;  %3821 = vmatpush.bf16.msrb.mxu2 %v7186_v8  ;;  %v7911_v8 = vld [vmem:[#allocation8 + $0x1c4] sm:$0xf] }
  0xa4   :  { %v6897_v6 = vld [vmem:[#allocation8 + $0xb00] sm:$0xf]  ;;  %v7442_v10 = vor.u32 %v8347_v5, %v7441_v4  ;;  %3796 = vmatpush.bf16.msrb.mxu0 %v6642_v9  ;;  %v196_v4 = vperm.slane %v8731_v2, 1  ;;  %v5715_v9 = vld [vmem:[#allocation8 + $0x1e0] sm:$0xf0] }
  0xa5   :  { %v8211_v7 = vld [vmem:[#allocation8 + $0xb1c] sm:$0xf0] }
  0xa6   :  { %v6609_v11 = vld [vmem:[#allocation8 + $0x8c0] sm:$0xf]  ;;  %v6898_v14 = vor.u32 %v8211_v7, %v6897_v6  ;;  %3834 = vmatpush.bf16.msrb.mxu3 %v7442_v10 }
  0xa7   :  { %v7153_v12 = vld [vmem:[#allocation8 + $0xd00] sm:$0xf] }
  0xa8   :  { %v8275_v13 = vld [vmem:[#allocation8 + $0xd1c] sm:$0xf0]  ;;  %3809 = vmatpush.bf16.msrb.mxu1 %v6898_v14 }
  0xa9   :  { %v8139_v15 = vld [vmem:[#allocation8 + $0x8dc] sm:$0xf0]  ;;  %v7154_v20 = vor.u32 %v8275_v13, %v7153_v12  ;;  %v5971_v12 = vld [vmem:[#allocation8 + $0x3e0] sm:$0xf0] }
  0xaa   :  { %v7409_v16 = vld [vmem:[#allocation8 + $0xf00] sm:$0xf]  ;;  %v6610_v21 = vor.u32 %v8139_v15, %v6609_v11  ;;  %v7975_v11 = vld [vmem:[#allocation8 + $0x3c4] sm:$0xf]  ;;  %v197_v15 = vperm.slane %v8731_v2, 2 }
  0xab   :  { %v8339_v17 = vld [vmem:[#allocation8 + $0xf1c] sm:$0xf0]  ;;  %3822 = vmatpush.bf16.msrb.mxu2 %v7154_v20  ;;  %v7903_v20 = vld [vmem:[#allocation8 + $0x184] sm:$0xf] }
  0xac   :  { %v6865_v18 = vld [vmem:[#allocation8 + $0xac0] sm:$0xf]  ;;  %v7410_v22 = vor.u32 %v8339_v17, %v7409_v16  ;;  %3797 = vmatpush.bf16.msrb.mxu0 %v6610_v21  ;;  %v5718_v16 = vor.u32 %v7911_v8, %v5715_v9  ;;  %v5683_v21 = vld [vmem:[#allocation8 + $0x1a0] sm:$0xf0] }
  0xad   :  { %v8203_v19 = vld [vmem:[#allocation8 + $0xadc] sm:$0xf0] }
  0xae   :  { %v6866_v23 = vor.u32 %v8203_v19, %v6865_v18  ;;  %v6577_v24 = vld [vmem:[#allocation8 + $0x880] sm:$0xf]  ;;  %3835 = vmatpush.bf16.msrb.mxu3 %v7410_v22  ;;  %v198_v18 = vperm.slane %v8731_v2, 3  ;;  %v5974_v19 = vor.u32 %v7975_v11, %v5971_v12  ;;  %v8015_v11 = vld [vmem:[#allocation8 + $0x504] sm:$0xf] }
  0xaf   :  { %v8131_v25 = vld [vmem:[#allocation8 + $0x89c] sm:$0xf0]  ;;  %v6131_v12 = vld [vmem:[#allocation8 + $0x520] sm:$0xf0] }
  0xb0   :  { %v6833_v26 = vld [vmem:[#allocation8 + $0xa80] sm:$0xf]  ;;  %v6578_v28 = vor.u32 %v8131_v25, %v6577_v24  ;;  %3810 = vmatpush.bf16.msrb.mxu1 %v6866_v23  ;;  %v7967_v23 = vld [vmem:[#allocation8 + $0x384] sm:$0xf] }
  0xb1   :  { %v8195_v27 = vld [vmem:[#allocation8 + $0xa9c] sm:$0xf0]  ;;  %v5939_v24 = vld [vmem:[#allocation8 + $0x3a0] sm:$0xf0] }
  0xb2   :  { %v6834_v29 = vor.u32 %v8195_v27, %v6833_v26  ;;  %3798 = vmatpush.bf16.msrb.mxu0 %v6578_v28  ;;  %v7121_v30 = vld [vmem:[#allocation8 + $0xcc0] sm:$0xf] }
  0xb3   :  { %v8267_v31 = vld [vmem:[#allocation8 + $0xcdc] sm:$0xf0] }
  0xb4   :  { %3811 = vmatpush.bf16.msrb.mxu1 %v6834_v29  ;;  %v7377_v32 = vld [vmem:[#allocation8 + $0xec0] sm:$0xf]  ;;  %v7122_v33 = vor.u32 %v8267_v31, %v7121_v30  ;;  %v5686_v29 = vor.u32 %v7903_v20, %v5683_v21  ;;  %v8039_v30 = vld [vmem:[#allocation8 + $0x5c4] sm:$0xf]  ;;  %v6134_v21 = vor.u32 %v8015_v11, %v6131_v12 }
  0xb5   :  { %v8331_v34 = vld [vmem:[#allocation8 + $0xedc] sm:$0xf0]  ;;  %v6227_v31 = vld [vmem:[#allocation8 + $0x5e0] sm:$0xf0] }
  0xb6   :  { %v7378_v35 = vor.u32 %v8331_v34, %v7377_v32  ;;  %v6545_v36 = vld [vmem:[#allocation8 + $0x840] sm:$0xf]  ;;  %3823 = vmatpush.bf16.msrb.mxu2 %v7122_v33  ;;  %v8103_v32 = vld [vmem:[#allocation8 + $0x7c4] sm:$0xf] }
  0xb7   :  { %v8123_v37 = vld [vmem:[#allocation8 + $0x85c] sm:$0xf0]  ;;  %v5811_v20 = vld [vmem:[#allocation8 + $0x2a0] sm:$0xf0] }
  0xb8   :  { %v6546_v38 = vor.u32 %v8123_v37, %v6545_v36  ;;  %v6801_v39 = vld [vmem:[#allocation8 + $0xa40] sm:$0xf]  ;;  %3836 = vmatpush.bf16.msrb.mxu3 %v7378_v35  ;;  %v5942_v35 = vor.u32 %v7967_v23, %v5939_v24  ;;  %v6483_v36 = vld [vmem:[#allocation8 + $0x7e0] sm:$0xf0] }
  0xb9   :  { %v8187_v40 = vld [vmem:[#allocation8 + $0xa5c] sm:$0xf0]  ;;  %v7895_v37 = vld [vmem:[#allocation8 + $0x144] sm:$0xf] }
  0xba   :  { %v6802_v41 = vor.u32 %v8187_v40, %v6801_v39  ;;  %v7089_v50 = vld [vmem:[#allocation8 + $0xc80] sm:$0xf]  ;;  %3799 = vmatpush.bf16.msrb.mxu0 %v6546_v38  ;;  %v5651_v38 = vld [vmem:[#allocation8 + $0x160] sm:$0xf0] }
  0xbb   :  { %v8259_v42 = vld [vmem:[#allocation8 + $0xc9c] sm:$0xf0]  ;;  %v7959_v40 = vld [vmem:[#allocation8 + $0x344] sm:$0xf] }
  0xbc   :  { %v7345_v43 = vld [vmem:[#allocation8 + $0xe80] sm:$0xf]  ;;  %v7090_v44 = vor.u32 %v8259_v42, %v7089_v50  ;;  %3812 = vmatpush.bf16.msrb.mxu1 %v6802_v41  ;;  %v5907_v41 = vld [vmem:[#allocation8 + $0x360] sm:$0xf0]  ;;  %v6230_v42 = vor.u32 %v8039_v30, %v6227_v31 }
  0xbd   :  { %v8323_v45 = vld [vmem:[#allocation8 + $0xe9c] sm:$0xf0]  ;;  %v7863_v30 = vld [vmem:[#allocation8 + $0x44] sm:$0xf] }
  0xbe   :  { %v7346_v46 = vor.u32 %v8323_v45, %v7345_v43  ;;  %v6513_v47 = vld [vmem:[#allocation8 + $0x800] sm:$0xf]  ;;  %3824 = vmatpush.bf16.msrb.mxu2 %v7090_v44  ;;  %v6486_v44 = vor.u32 %v8103_v32, %v6483_v36  ;;  %v5654_v45 = vor.u32 %v7895_v37, %v5651_v38  ;;  %v5523_v31 = vld [vmem:[#allocation8 + $0x60] sm:$0xf0]  ;;  %v199_v32 = vperm.slane %v8731_v2, 4 }
  0xbf   :  { %v8115_v48 = vld [vmem:[#allocation8 + $0x81c] sm:$0xf0]  ;;  %v540_v5 = vpop.f32.mrf.mxu0  ;;  %v553_v7 = vpop.f32.mrf.mxu1  ;;  %v5526_v38 = vor.u32 %v7863_v30, %v5523_v31  ;;  %v8159_v12 = vld [vmem:[#allocation8 + $0x984] sm:$0xf] }
  0xc0   :  { %v6769_v49 = vld [vmem:[#allocation8 + $0xa00] sm:$0xf]  ;;  %v6514_v51 = vor.u32 %v8115_v48, %v6513_v47  ;;  %3837 = vmatpush.bf16.msrb.mxu3 %v7346_v46  ;;  %v541_v6 = vadd.f32 %v540_v5, %v195_v3  ;;  %v554_v10 = vadd.f32 %v553_v7, %v196_v4  ;;  %v8031_v46 = vld [vmem:[#allocation8 + $0x584] sm:$0xf] }
  0xc1   :  { %v8179_v52 = vld [vmem:[#allocation8 + $0xa1c] sm:$0xf0]  ;;  %v6195_v47 = vld [vmem:[#allocation8 + $0x5a0] sm:$0xf0] }
  0xc2   :  { %v6770_v53 = vor.u32 %v8179_v52, %v6769_v49  ;;  %3800 = vmatpush.bf16.msrb.mxu0 %v6514_v51  ;;  %v7057_v54 = vld [vmem:[#allocation8 + $0xc40] sm:$0xf]  ;;  %v635_v13 = vmax.f32 %v541_v6, 0.0  ;;  %v636_v14 = vmax.f32 %v554_v10, 0.0  ;;  %v8095_v48 = vld [vmem:[#allocation8 + $0x784] sm:$0xf]  ;;  %v5910_v51 = vor.u32 %v7959_v40, %v5907_v41 }
  0xc3   :  { %v8251_v55 = vld [vmem:[#allocation8 + $0xc5c] sm:$0xf0]  ;;  %v6451_v52 = vld [vmem:[#allocation8 + $0x7a0] sm:$0xf0] }
  0xc4   :  { %3813 = vmatpush.bf16.msrb.mxu1 %v6770_v53  ;;  %v7058_v56 = vor.u32 %v8251_v55, %v7057_v54  ;;  %v7313_v57 = vld [vmem:[#allocation8 + $0xe40] sm:$0xf]  ;;  %v8736_v17 = vpack.c.bf16 %v635_v13, %v635_v13  ;;  %v8739_v22 = vpack.c.bf16 %v636_v14, %v636_v14  ;;  %v7887_v53 = vld [vmem:[#allocation8 + $0x104] sm:$0xf] }
  0xc5   :  { %v8315_v58 = vld [vmem:[#allocation8 + $0xe5c] sm:$0xf0]  ;;  %v5619_v54 = vld [vmem:[#allocation8 + $0x120] sm:$0xf0] }
  0xc6   :  { %v7314_v59 = vor.u32 %v8315_v58, %v7313_v57  ;;  %3825 = vmatpush.bf16.msrb.mxu2 %v7058_v56  ;;  %v7025_v60 = vld [vmem:[#allocation8 + $0xc00] sm:$0xf]  ;;  %3749 = vmatmul.bf16.vlgmr.msra.gmra.mxu0 %v8736_v17  ;;  %v7951_v55 = vld [vmem:[#allocation8 + $0x304] sm:$0xf]  ;;  %v6198_v58 = vor.u32 %v8031_v46, %v6195_v47 }
  0xc7   :  { %v8243_v61 = vld [vmem:[#allocation8 + $0xc1c] sm:$0xf0]  ;;  %v579_v27 = vpop.f32.mrf.mxu3  ;;  %3762 = vmatmul.bf16.vlgmr.msra.gmra.mxu1 %v8739_v22  ;;  %3845 = vmatpush.bf16.msra.mxu0 %v5718_v16  ;;  %v542_v28 = vpop.f32.mrf.mxu0  ;;  %v5875_v56 = vld [vmem:[#allocation8 + $0x320] sm:$0xf0] }
  0xc8   :  { %3838 = vmatpush.bf16.msrb.mxu3 %v7314_v59  ;;  %v7026_v62 = vor.u32 %v8243_v61, %v7025_v60  ;;  %v7281_v63 = vld [vmem:[#allocation8 + $0xe00] sm:$0xf]  ;;  %v566_v25 = vpop.f32.mrf.mxu2  ;;  %v580_v33 = vadd.f32 %v579_v27, %v198_v18  ;;  %3858 = vmatpush.bf16.msra.mxu1 %v5974_v19  ;;  %v555_v34 = vpop.f32.mrf.mxu1  ;;  %v6454_v60 = vor.u32 %v8095_v48, %v6451_v52  ;;  %v6419_v3 = vld [vmem:[#allocation8 + $0x760] sm:$0xf0] }
  0xc9   :  { %v8307_v0 = vld [vmem:[#allocation8 + $0xe1c] sm:$0xf0]  ;;  %v567_v26 = vadd.f32 %v566_v25, %v197_v15  ;;  %v5622_v61 = vor.u32 %v7887_v53, %v5619_v54  ;;  %v7879_v4 = vld [vmem:[#allocation8 + $0xc4] sm:$0xf] }
  0xca   :  { %v7282_v1 = vor.u32 %v8307_v0, %v7281_v63  ;;  %3826 = vmatpush.bf16.msrb.mxu2 %v7026_v62  ;;  %v638_v50 = vmax.f32 %v580_v33, 0.0  ;;  %v8023_v62 = vld [vmem:[#allocation8 + $0x544] sm:$0xf] }
  0xcb   :  { %v637_v39 = vmax.f32 %v567_v26, 0.0  ;;  %3846 = vmatpush.bf16.msra.mxu0 %v5686_v29  ;;  %v6163_v63 = vld [vmem:[#allocation8 + $0x560] sm:$0xf0] }
  0xcc   :  { %3839 = vmatpush.bf16.msrb.mxu3 %v7282_v1  ;;  %v8745_v49 = vpack.c.bf16 %v638_v50, %v638_v50  ;;  %3859 = vmatpush.bf16.msra.mxu1 %v5942_v35  ;;  %v8087_v0 = vld [vmem:[#allocation8 + $0x744] sm:$0xf]  ;;  %v5878_v1 = vor.u32 %v7951_v55, %v5875_v56  ;;  %v6166_v8 = vor.u32 %v8023_v62, %v6163_v63  ;;  %v200_v35 = vperm.slane %v8731_v2, 5 }
  0xcd   :  { %v8743_v43 = vpack.c.bf16 %v637_v39, %v637_v39  ;;  %v5587_v5 = vld [vmem:[#allocation8 + $0xe0] sm:$0xf0]  ;;  %v6422_v9 = vor.u32 %v8087_v0, %v6419_v3 }
  0xce   :  { %3788 = vmatmul.bf16.vlgmr.msra.gmra.mxu3 %v8745_v49  ;;  %v7943_v6 = vld [vmem:[#allocation8 + $0x2c4] sm:$0xf]  ;;  %v5590_v10 = vor.u32 %v7879_v4, %v5587_v5 }
  0xcf   :  { %3775 = vmatmul.bf16.vlgmr.msra.gmra.mxu2 %v8743_v43  ;;  %v581_v59 = vpop.f32.mrf.mxu3  ;;  %3847 = vmatpush.bf16.msra.mxu0 %v5654_v45  ;;  %v5843_v7 = vld [vmem:[#allocation8 + $0x2e0] sm:$0xf0] }
  0xd0   :  { %3871 = vmatpush.bf16.msra.mxu2 %v6230_v42  ;;  %v568_v57 = vpop.f32.mrf.mxu2  ;;  %3884 = vmatpush.bf16.msra.mxu3 %v6486_v44  ;;  %v8079_v13 = vld [vmem:[#allocation8 + $0x704] sm:$0xf]  ;;  %v5846_v14 = vor.u32 %v7943_v6, %v5843_v7  ;;  %v202_v7 = vperm.slane %v8731_v2, 7 }
  0xd1   :  { %3860 = vmatpush.bf16.msra.mxu1 %v5910_v51  ;;  %v6387_v15 = vld [vmem:[#allocation8 + $0x720] sm:$0xf0] }
  0xd2   :  { %v7871_v16 = vld [vmem:[#allocation8 + $0x84] sm:$0xf]  ;;  %v6390_v23 = vor.u32 %v8079_v13, %v6387_v15 }
  0xd3   :  { %3848 = vmatpush.bf16.msra.mxu0 %v5622_v61  ;;  %v5555_v18 = vld [vmem:[#allocation8 + $0xa0] sm:$0xf0] }
  0xd4   :  { %3872 = vmatpush.bf16.msra.mxu2 %v6198_v58  ;;  %3885 = vmatpush.bf16.msra.mxu3 %v6454_v60  ;;  %v7935_v19 = vld [vmem:[#allocation8 + $0x284] sm:$0xf]  ;;  %v5558_v24 = vor.u32 %v7871_v16, %v5555_v18 }
  0xd5   :  { %3861 = vmatpush.bf16.msra.mxu1 %v5878_v1  ;;  %v8007_v25 = vld [vmem:[#allocation8 + $0x4c4] sm:$0xf]  ;;  %v5814_v28 = vor.u32 %v7935_v19, %v5811_v20  ;;  %v201_v1 = vperm.slane %v8731_v2, 6 }
  0xd6   :  { %v6099_v26 = vld [vmem:[#allocation8 + $0x4e0] sm:$0xf0] }
  0xd7   :  { %3849 = vmatpush.bf16.msra.mxu0 %v5590_v10  ;;  %v8071_v27 = vld [vmem:[#allocation8 + $0x6c4] sm:$0xf]  ;;  %v6102_v36 = vor.u32 %v8007_v25, %v6099_v26 }
  0xd8   :  { %3873 = vmatpush.bf16.msra.mxu2 %v6166_v8  ;;  %3886 = vmatpush.bf16.msra.mxu3 %v6422_v9  ;;  %v6355_v29 = vld [vmem:[#allocation8 + $0x6e0] sm:$0xf0] }
  0xd9   :  { %3862 = vmatpush.bf16.msra.mxu1 %v5846_v14  ;;  %v7927_v33 = vld [vmem:[#allocation8 + $0x244] sm:$0xf]  ;;  %v6358_v37 = vor.u32 %v8071_v27, %v6355_v29 }
  0xda   :  { %v5779_v34 = vld [vmem:[#allocation8 + $0x260] sm:$0xf0] }
  0xdb   :  { %3850 = vmatpush.bf16.msra.mxu0 %v5558_v24  ;;  %v7999_v39 = vld [vmem:[#allocation8 + $0x484] sm:$0xf]  ;;  %v5782_v42 = vor.u32 %v7927_v33, %v5779_v34 }
  0xdc   :  { %3874 = vmatpush.bf16.msra.mxu2 %v6134_v21  ;;  %3887 = vmatpush.bf16.msra.mxu3 %v6390_v23  ;;  %v6067_v40 = vld [vmem:[#allocation8 + $0x4a0] sm:$0xf0] }
  0xdd   :  { %v8063_v41 = vld [vmem:[#allocation8 + $0x684] sm:$0xf]  ;;  %3863 = vmatpush.bf16.msra.mxu1 %v5814_v28  ;;  %v6070_v55 = vor.u32 %v7999_v39, %v6067_v40 }
  0xde   :  { %v6323_v44 = vld [vmem:[#allocation8 + $0x6a0] sm:$0xf0] }
  0xdf   :  { %v592_v50 = vpop.f32.mrf.mxu0  ;;  %v7855_v45 = vld [vmem:[#allocation8 + $0x4] sm:$0xf]  ;;  %v605_v48 = vpop.f32.mrf.mxu1  ;;  %3851 = vmatpush.bf16.msra.mxu0 %v5526_v38  ;;  %v6326_v60 = vor.u32 %v8063_v41, %v6323_v44 }
  0xe0   :  { %v5491_v46 = vld [vmem:[#allocation8 + $0x20] sm:$0xf0]  ;;  %v593_v47 = vadd.f32 %v592_v50, %v199_v32  ;;  %v606_v54 = vadd.f32 %v605_v48, %v200_v35  ;;  %3875 = vmatpush.bf16.msra.mxu2 %v6102_v36  ;;  %3888 = vmatpush.bf16.msra.mxu3 %v6358_v37 }
  0xe1   :  { %v7919_v51 = vld [vmem:[#allocation8 + $0x204] sm:$0xf]  ;;  %v5494_v61 = vor.u32 %v7855_v45, %v5491_v46  ;;  %3864 = vmatpush.bf16.msra.mxu1 %v5782_v42 }
  0xe2   :  { %v5747_v52 = vld [vmem:[#allocation8 + $0x220] sm:$0xf0]  ;;  %v639_v59 = vmax.f32 %v593_v47, 0.0  ;;  %v640_v0 = vmax.f32 %v606_v54, 0.0 }
  0xe3   :  { %v8167_v53 = vld [vmem:[#allocation8 + $0x9c4] sm:$0xf]  ;;  %v5750_v3 = vor.u32 %v7919_v51, %v5747_v52  ;;  %3852 = vmatpush.bf16.msra.mxu0 %v5494_v61 }
  0xe4   :  { %v6739_v56 = vld [vmem:[#allocation8 + $0x9e0] sm:$0xf0]  ;;  %v8752_v6 = vpack.c.bf16 %v639_v59, %v639_v59  ;;  %v8755_v9 = vpack.c.bf16 %v640_v0, %v640_v0  ;;  %3876 = vmatpush.bf16.msra.mxu2 %v6070_v55  ;;  %3889 = vmatpush.bf16.msra.mxu3 %v6326_v60 }
  0xe5   :  { %v8231_v57 = vld [vmem:[#allocation8 + $0xbc4] sm:$0xf]  ;;  %v6742_v8 = vor.u32 %v8167_v53, %v6739_v56  ;;  %3865 = vmatpush.bf16.msra.mxu1 %v5750_v3 }
  0xe6   :  { %v6995_v58 = vld [vmem:[#allocation8 + $0xbe0] sm:$0xf0]  ;;  %3801 = vmatmul.bf16.vlgmr.msrb.gmra.mxu0 %v8752_v6  ;;  %3814 = vmatmul.bf16.vlgmr.msrb.gmra.mxu1 %v8755_v9 }
  0xe7   :  { %v7991_v62 = vld [vmem:[#allocation8 + $0x444] sm:$0xf]  ;;  %v6998_v10 = vor.u32 %v8231_v57, %v6995_v58  ;;  %v618_v15 = vpop.f32.mrf.mxu2  ;;  %v631_v23 = vpop.f32.mrf.mxu3  ;;  %3897 = vmatpush.bf16.msrb.mxu0 %v6742_v8 }
  0xe8   :  { %v6035_v63 = vld [vmem:[#allocation8 + $0x460] sm:$0xf0]  ;;  %v619_v21 = vadd.f32 %v618_v15, %v201_v1  ;;  %v594_v2 = vpop.f32.mrf.mxu0  ;;  %v632_v27 = vadd.f32 %v631_v23, %v202_v7  ;;  %v607_v28 = vpop.f32.mrf.mxu1 }
  0xe9   :  { %v8055_v4 = vld [vmem:[#allocation8 + $0x644] sm:$0xf]  ;;  %v6038_v11 = vor.u32 %v7991_v62, %v6035_v63  ;;  %3910 = vmatpush.bf16.msrb.mxu1 %v6998_v10 }
  0xea   :  { %v6291_v5 = vld [vmem:[#allocation8 + $0x660] sm:$0xf0]  ;;  %v641_v33 = vmax.f32 %v619_v21, 0.0  ;;  %v642_v38 = vmax.f32 %v632_v27, 0.0 }
  0xeb   :  { %v6707_v13 = vld [vmem:[#allocation8 + $0x9a0] sm:$0xf0]  ;;  %v6294_v16 = vor.u32 %v8055_v4, %v6291_v5  ;;  %3877 = vmatpush.bf16.msra.mxu2 %v6038_v11 }
  0xec   :  { %v8223_v14 = vld [vmem:[#allocation8 + $0xb84] sm:$0xf]  ;;  %v6710_v29 = vor.u32 %v8159_v12, %v6707_v13  ;;  %v8759_v50 = vpack.c.bf16 %v641_v33, %v641_v33  ;;  %v8761_v44 = vpack.c.bf16 %v642_v38, %v642_v38 }
  0xed   :  { %v6963_v18 = vld [vmem:[#allocation8 + $0xba0] sm:$0xf0]  ;;  %3890 = vmatpush.bf16.msra.mxu3 %v6294_v16 }
  0xee   :  { %v7983_v19 = vld [vmem:[#allocation8 + $0x404] sm:$0xf]  ;;  %v6966_v34 = vor.u32 %v8223_v14, %v6963_v18  ;;  %3898 = vmatpush.bf16.msrb.mxu0 %v6710_v29  ;;  %3827 = vmatmul.bf16.vlgmr.msrb.gmra.mxu2 %v8759_v50 }
  0xef   :  { %v6003_v20 = vld [vmem:[#allocation8 + $0x420] sm:$0xf0]  ;;  %v620_v56 = vpop.f32.mrf.mxu2  ;;  %3840 = vmatmul.bf16.vlgmr.msrb.gmra.mxu3 %v8761_v44  ;;  %v633_v59 = vpop.f32.mrf.mxu3 }
  0xf0   :  { %v8047_v24 = vld [vmem:[#allocation8 + $0x604] sm:$0xf]  ;;  %v6006_v35 = vor.u32 %v7983_v19, %v6003_v20  ;;  %3911 = vmatpush.bf16.msrb.mxu1 %v6966_v34  ;;  %v7980_v56 = vld [vmem:[#allocation8 + $0x3e4] sm:$0xf0] }
  0xf1   :  { %v6259_v25 = vld [vmem:[#allocation8 + $0x620] sm:$0xf0] }
  0xf2   :  { %v8295_v26 = vld [vmem:[#allocation8 + $0xdc4] sm:$0xf]  ;;  %v6262_v39 = vor.u32 %v8047_v24, %v6259_v25  ;;  %3878 = vmatpush.bf16.msra.mxu2 %v6006_v35 }
  0xf3   :  { %v7251_v30 = vld [vmem:[#allocation8 + $0xde0] sm:$0xf0] }
  0xf4   :  { %v8359_v31 = vld [vmem:[#allocation8 + $0xfc4] sm:$0xf]  ;;  %v7254_v42 = vor.u32 %v8295_v26, %v7251_v30  ;;  %3891 = vmatpush.bf16.msra.mxu3 %v6262_v39 }
  0xf5   :  { %v7507_v32 = vld [vmem:[#allocation8 + $0xfe0] sm:$0xf0] }
  0xf6   :  { %v8151_v36 = vld [vmem:[#allocation8 + $0x944] sm:$0xf]  ;;  %v7510_v45 = vor.u32 %v8359_v31, %v7507_v32  ;;  %3923 = vmatpush.bf16.msrb.mxu2 %v7254_v42  ;;  %3853 = vmatmul.bf16.vlgmr.msra.gmra.mxu0 %v8736_v17 }
  0xf7   :  { %v6675_v37 = vld [vmem:[#allocation8 + $0x960] sm:$0xf0]  ;;  %3866 = vmatmul.bf16.vlgmr.msra.gmra.mxu1 %v8739_v22 }
  0xf8   :  { %v8215_v40 = vld [vmem:[#allocation8 + $0xb44] sm:$0xf]  ;;  %v6678_v46 = vor.u32 %v8151_v36, %v6675_v37  ;;  %3936 = vmatpush.bf16.msrb.mxu3 %v7510_v45 }
  0xf9   :  { %v6931_v41 = vld [vmem:[#allocation8 + $0xb60] sm:$0xf0] }
  0xfa   :  { %v8287_v47 = vld [vmem:[#allocation8 + $0xd84] sm:$0xf]  ;;  %v6934_v52 = vor.u32 %v8215_v40, %v6931_v41  ;;  %3899 = vmatpush.bf16.msrb.mxu0 %v6678_v46 }
  0xfb   :  { %v7219_v48 = vld [vmem:[#allocation8 + $0xda0] sm:$0xf0] }
  0xfc   :  { %v8351_v51 = vld [vmem:[#allocation8 + $0xf84] sm:$0xf]  ;;  %v7222_v60 = vor.u32 %v8287_v47, %v7219_v48  ;;  %3912 = vmatpush.bf16.msrb.mxu1 %v6934_v52  ;;  %v5721_v52 = vld [vmem:[#allocation8 + $0x1c8] sm:$0xf] }
  0xfd   :  { %v7475_v53 = vld [vmem:[#allocation8 + $0xfa0] sm:$0xf0] }
  0xfe   :  { %v8143_v54 = vld [vmem:[#allocation8 + $0x904] sm:$0xf]  ;;  %v7478_v61 = vor.u32 %v8351_v51, %v7475_v53  ;;  %3924 = vmatpush.bf16.msrb.mxu2 %v7222_v60 }
  0xff   :  { %v6643_v55 = vld [vmem:[#allocation8 + $0x920] sm:$0xf0]  ;;  %3879 = vmatmul.bf16.vlgmr.msra.gmra.mxu2 %v8743_v43  ;;  %3892 = vmatmul.bf16.vlgmr.msra.gmra.mxu3 %v8745_v49 }
 0x100   :  { %v8207_v57 = vld [vmem:[#allocation8 + $0xb04] sm:$0xf]  ;;  %v6646_v62 = vor.u32 %v8143_v54, %v6643_v55  ;;  %3937 = vmatpush.bf16.msrb.mxu3 %v7478_v61  ;;  %v7916_v54 = vld [vmem:[#allocation8 + $0x1e4] sm:$0xf0] }
 0x101   :  { %v6899_v58 = vld [vmem:[#allocation8 + $0xb20] sm:$0xf0]  ;;  %v5977_v55 = vld [vmem:[#allocation8 + $0x3c8] sm:$0xf] }
 0x102   :  { %v8279_v63 = vld [vmem:[#allocation8 + $0xd44] sm:$0xf]  ;;  %v6902_v1 = vor.u32 %v8207_v57, %v6899_v58  ;;  %3900 = vmatpush.bf16.msrb.mxu0 %v6646_v62 }
 0x103   :  { %v7187_v0 = vld [vmem:[#allocation8 + $0xd60] sm:$0xf0] }
 0x104   :  { %v8343_v3 = vld [vmem:[#allocation8 + $0xf44] sm:$0xf]  ;;  %v7190_v11 = vor.u32 %v8279_v63, %v7187_v0  ;;  %3913 = vmatpush.bf16.msrb.mxu1 %v6902_v1  ;;  %v5722_v0 = vor.u32 %v7916_v54, %v5721_v52  ;;  %v5978_v1 = vor.u32 %v7980_v56, %v5977_v55  ;;  %v5593_v52 = vld [vmem:[#allocation8 + $0xc8] sm:$0xf] }
 0x105   :  { %v7443_v4 = vld [vmem:[#allocation8 + $0xf60] sm:$0xf0]  ;;  %v5849_v54 = vld [vmem:[#allocation8 + $0x2c8] sm:$0xf] }
 0x106   :  { %v8135_v5 = vld [vmem:[#allocation8 + $0x8c4] sm:$0xf]  ;;  %v7446_v12 = vor.u32 %v8343_v3, %v7443_v4  ;;  %3925 = vmatpush.bf16.msrb.mxu2 %v7190_v11  ;;  %v5689_v3 = vld [vmem:[#allocation8 + $0x188] sm:$0xf] }
 0x107   :  { %v6611_v7 = vld [vmem:[#allocation8 + $0x8e0] sm:$0xf0]  ;;  %v7948_v55 = vld [vmem:[#allocation8 + $0x2e4] sm:$0xf0] }
 0x108   :  { %v8199_v8 = vld [vmem:[#allocation8 + $0xac4] sm:$0xf]  ;;  %v6614_v15 = vor.u32 %v8135_v5, %v6611_v7  ;;  %3938 = vmatpush.bf16.msrb.mxu3 %v7446_v12  ;;  %v7908_v5 = vld [vmem:[#allocation8 + $0x1a4] sm:$0xf0] }
 0x109   :  { %v6867_v10 = vld [vmem:[#allocation8 + $0xae0] sm:$0xf0]  ;;  %v5945_v7 = vld [vmem:[#allocation8 + $0x388] sm:$0xf] }
 0x10a   :  { %v8271_v13 = vld [vmem:[#allocation8 + $0xd04] sm:$0xf]  ;;  %v6870_v16 = vor.u32 %v8199_v8, %v6867_v10  ;;  %3901 = vmatpush.bf16.msrb.mxu0 %v6614_v15  ;;  %v7972_v8 = vld [vmem:[#allocation8 + $0x3a4] sm:$0xf0] }
 0x10b   :  { %v7155_v14 = vld [vmem:[#allocation8 + $0xd20] sm:$0xf0]  ;;  %v6233_v15 = vld [vmem:[#allocation8 + $0x5c8] sm:$0xf] }
 0x10c   :  { %v8335_v18 = vld [vmem:[#allocation8 + $0xf04] sm:$0xf]  ;;  %v7158_v24 = vor.u32 %v8271_v13, %v7155_v14  ;;  %3914 = vmatpush.bf16.msrb.mxu1 %v6870_v16  ;;  %v8044_v16 = vld [vmem:[#allocation8 + $0x5e4] sm:$0xf0] }
 0x10d   :  { %v7411_v19 = vld [vmem:[#allocation8 + $0xf20] sm:$0xf0] }
 0x10e   :  { %v8127_v20 = vld [vmem:[#allocation8 + $0x884] sm:$0xf]  ;;  %v7414_v25 = vor.u32 %v8335_v18, %v7411_v19  ;;  %3926 = vmatpush.bf16.msrb.mxu2 %v7158_v24  ;;  %v5690_v18 = vor.u32 %v7908_v5, %v5689_v3  ;;  %v5946_v19 = vor.u32 %v7972_v8, %v5945_v7  ;;  %v7900_v24 = vld [vmem:[#allocation8 + $0x164] sm:$0xf0] }
 0x10f   :  { %v6579_v21 = vld [vmem:[#allocation8 + $0x8a0] sm:$0xf0]  ;;  %v5817_v3 = vld [vmem:[#allocation8 + $0x288] sm:$0xf] }
 0x110   :  { %v8191_v23 = vld [vmem:[#allocation8 + $0xa84] sm:$0xf]  ;;  %v6582_v28 = vor.u32 %v8127_v20, %v6579_v21  ;;  %3939 = vmatpush.bf16.msrb.mxu3 %v7414_v25  ;;  %v6489_v20 = vld [vmem:[#allocation8 + $0x7c8] sm:$0xf] }
 0x111   :  { %v6835_v2 = vld [vmem:[#allocation8 + $0xaa0] sm:$0xf0]  ;;  %v8108_v21 = vld [vmem:[#allocation8 + $0x7e4] sm:$0xf0] }
 0x112   :  { %v8263_v26 = vld [vmem:[#allocation8 + $0xcc4] sm:$0xf]  ;;  %v6838_v29 = vor.u32 %v8191_v23, %v6835_v2  ;;  %3902 = vmatpush.bf16.msrb.mxu0 %v6582_v28  ;;  %v5657_v23 = vld [vmem:[#allocation8 + $0x148] sm:$0xf]  ;;  %v6234_v28 = vor.u32 %v8044_v16, %v6233_v15 }
 0x113   :  { %v7123_v27 = vld [vmem:[#allocation8 + $0xce0] sm:$0xf0]  ;;  %v5913_v25 = vld [vmem:[#allocation8 + $0x348] sm:$0xf] }
 0x114   :  { %v8327_v30 = vld [vmem:[#allocation8 + $0xec4] sm:$0xf]  ;;  %v7126_v36 = vor.u32 %v8263_v26, %v7123_v27  ;;  %3915 = vmatpush.bf16.msrb.mxu1 %v6838_v29  ;;  %v7964_v26 = vld [vmem:[#allocation8 + $0x364] sm:$0xf0]  ;;  %v6490_v29 = vor.u32 %v8108_v21, %v6489_v20 }
 0x115   :  { %v7379_v31 = vld [vmem:[#allocation8 + $0xee0] sm:$0xf0]  ;;  %v6105_v8 = vld [vmem:[#allocation8 + $0x4c8] sm:$0xf] }
 0x116   :  { %v8119_v32 = vld [vmem:[#allocation8 + $0x844] sm:$0xf]  ;;  %v7382_v37 = vor.u32 %v8327_v30, %v7379_v31  ;;  %3927 = vmatpush.bf16.msrb.mxu2 %v7126_v36  ;;  %v6201_v30 = vld [vmem:[#allocation8 + $0x588] sm:$0xf] }
 0x117   :  { %v6547_v33 = vld [vmem:[#allocation8 + $0x860] sm:$0xf0]  ;;  %v8036_v31 = vld [vmem:[#allocation8 + $0x5a4] sm:$0xf0] }
 0x118   :  { %v8183_v34 = vld [vmem:[#allocation8 + $0xa44] sm:$0xf]  ;;  %v6550_v41 = vor.u32 %v8119_v32, %v6547_v33  ;;  %3940 = vmatpush.bf16.msrb.mxu3 %v7382_v37  ;;  %v5658_v32 = vor.u32 %v7900_v24, %v5657_v23  ;;  %v5914_v33 = vor.u32 %v7964_v26, %v5913_v25  ;;  %v5625_v36 = vld [vmem:[#allocation8 + $0x108] sm:$0xf] }
 0x119   :  { %v6803_v35 = vld [vmem:[#allocation8 + $0xa60] sm:$0xf0]  ;;  %v7892_v37 = vld [vmem:[#allocation8 + $0x124] sm:$0xf0] }
 0x11a   :  { %v8255_v38 = vld [vmem:[#allocation8 + $0xc84] sm:$0xf]  ;;  %v6806_v42 = vor.u32 %v8183_v34, %v6803_v35  ;;  %3903 = vmatpush.bf16.msrb.mxu0 %v6550_v41  ;;  %v6457_v34 = vld [vmem:[#allocation8 + $0x788] sm:$0xf] }
 0x11b   :  { %v7091_v39 = vld [vmem:[#allocation8 + $0xca0] sm:$0xf0]  ;;  %v8100_v35 = vld [vmem:[#allocation8 + $0x7a4] sm:$0xf0] }
 0x11c   :  { %v8319_v40 = vld [vmem:[#allocation8 + $0xe84] sm:$0xf]  ;;  %v7094_v53 = vor.u32 %v8255_v38, %v7091_v39  ;;  %3916 = vmatpush.bf16.msrb.mxu1 %v6806_v42  ;;  %v5881_v38 = vld [vmem:[#allocation8 + $0x308] sm:$0xf]  ;;  %v6458_v41 = vor.u32 %v8100_v35, %v6457_v34 }
 0x11d   :  { %v7347_v45 = vld [vmem:[#allocation8 + $0xea0] sm:$0xf0]  ;;  %v7956_v39 = vld [vmem:[#allocation8 + $0x324] sm:$0xf0] }
 0x11e   :  { %v8111_v46 = vld [vmem:[#allocation8 + $0x804] sm:$0xf]  ;;  %v7350_v57 = vor.u32 %v8319_v40, %v7347_v45  ;;  %3928 = vmatpush.bf16.msrb.mxu2 %v7094_v53  ;;  %v6202_v40 = vor.u32 %v8036_v31, %v6201_v30  ;;  %v6169_v42 = vld [vmem:[#allocation8 + $0x548] sm:$0xf] }
 0x11f   :  { %v6515_v47 = vld [vmem:[#allocation8 + $0x820] sm:$0xf0]  ;;  %v8028_v45 = vld [vmem:[#allocation8 + $0x564] sm:$0xf0] }
 0x120   :  { %v8175_v48 = vld [vmem:[#allocation8 + $0xa04] sm:$0xf]  ;;  %v6518_v60 = vor.u32 %v8111_v46, %v6515_v47  ;;  %3941 = vmatpush.bf16.msrb.mxu3 %v7350_v57  ;;  %v5626_v46 = vor.u32 %v7892_v37, %v5625_v36  ;;  %v5882_v47 = vor.u32 %v7956_v39, %v5881_v38  ;;  %v7884_v53 = vld [vmem:[#allocation8 + $0xe4] sm:$0xf0]  ;;  %v6170_v56 = vor.u32 %v8028_v45, %v6169_v42 }
 0x121   :  { %v6771_v51 = vld [vmem:[#allocation8 + $0xa20] sm:$0xf0]  ;;  %v5529_v15 = vld [vmem:[#allocation8 + $0x48] sm:$0xf] }
 0x122   :  { %v8247_v58 = vld [vmem:[#allocation8 + $0xc44] sm:$0xf]  ;;  %v6774_v61 = vor.u32 %v8175_v48, %v6771_v51  ;;  %3904 = vmatpush.bf16.msrb.mxu0 %v6518_v60  ;;  %v6425_v48 = vld [vmem:[#allocation8 + $0x748] sm:$0xf]  ;;  %v5594_v60 = vor.u32 %v7884_v53, %v5593_v52 }
 0x123   :  { %v7059_v59 = vld [vmem:[#allocation8 + $0xc60] sm:$0xf0]  ;;  %v8092_v51 = vld [vmem:[#allocation8 + $0x764] sm:$0xf0] }
 0x124   :  { %v8311_v62 = vld [vmem:[#allocation8 + $0xe44] sm:$0xf]  ;;  %v7062_v4 = vor.u32 %v8247_v58, %v7059_v59  ;;  %3917 = vmatpush.bf16.msrb.mxu1 %v6774_v61  ;;  %v6426_v57 = vor.u32 %v8092_v51, %v6425_v48  ;;  %v6137_v58 = vld [vmem:[#allocation8 + $0x508] sm:$0xf]  ;;  %v5850_v61 = vor.u32 %v7948_v55, %v5849_v54 }
 0x125   :  { %v7315_v63 = vld [vmem:[#allocation8 + $0xe60] sm:$0xf0]  ;;  %3905 = vmatmul.bf16.vlgmr.msrb.gmra.mxu0 %v8752_v6  ;;  %v8020_v59 = vld [vmem:[#allocation8 + $0x524] sm:$0xf0] }
 0x126   :  { %v7318_v10 = vor.u32 %v8311_v62, %v7315_v63  ;;  %v8239_v11 = vld [vmem:[#allocation8 + $0xc04] sm:$0xf]  ;;  %3949 = vmatpush.bf16.msra.mxu0 %v5722_v0  ;;  %3929 = vmatpush.bf16.msrb.mxu2 %v7062_v4  ;;  %v6393_v62 = vld [vmem:[#allocation8 + $0x708] sm:$0xf]  ;;  %v6138_v5 = vor.u32 %v8020_v59, %v6137_v58 }
 0x127   :  { %v7027_v12 = vld [vmem:[#allocation8 + $0xc20] sm:$0xf0]  ;;  %3918 = vmatmul.bf16.vlgmr.msrb.gmra.mxu1 %v8755_v9  ;;  %v8084_v63 = vld [vmem:[#allocation8 + $0x724] sm:$0xf0] }
 0x128   :  { %v8303_v13 = vld [vmem:[#allocation8 + $0xe04] sm:$0xf]  ;;  %3962 = vmatpush.bf16.msra.mxu1 %v5978_v1  ;;  %v7030_v2 = vor.u32 %v8239_v11, %v7027_v12  ;;  %3942 = vmatpush.bf16.msrb.mxu3 %v7318_v10  ;;  %v5561_v0 = vld [vmem:[#allocation8 + $0x88] sm:$0xf]  ;;  %v6394_v7 = vor.u32 %v8084_v63, %v6393_v62 }
 0x129   :  { %v7283_v14 = vld [vmem:[#allocation8 + $0xe20] sm:$0xf0]  ;;  %v7876_v1 = vld [vmem:[#allocation8 + $0xa4] sm:$0xf0] }
 0x12a   :  { %v7286_v27 = vor.u32 %v8303_v13, %v7283_v14  ;;  %3950 = vmatpush.bf16.msra.mxu0 %v5690_v18  ;;  %3930 = vmatpush.bf16.msrb.mxu2 %v7030_v2  ;;  %v7940_v4 = vld [vmem:[#allocation8 + $0x2a4] sm:$0xf0]  ;;  %v5562_v11 = vor.u32 %v7876_v1, %v5561_v0 }
 0x12b   :  { %v8012_v10 = vld [vmem:[#allocation8 + $0x4e4] sm:$0xf0]  ;;  %v5818_v12 = vor.u32 %v7940_v4, %v5817_v3 }
 0x12c   :  { %3963 = vmatpush.bf16.msra.mxu1 %v5946_v19  ;;  %3943 = vmatpush.bf16.msrb.mxu3 %v7286_v27  ;;  %v6361_v13 = vld [vmem:[#allocation8 + $0x6c8] sm:$0xf]  ;;  %v6106_v20 = vor.u32 %v8012_v10, %v6105_v8 }
 0x12d   :  { %3931 = vmatmul.bf16.vlgmr.msrb.gmra.mxu2 %v8759_v50  ;;  %v8076_v14 = vld [vmem:[#allocation8 + $0x6e4] sm:$0xf0] }
 0x12e   :  { %3975 = vmatpush.bf16.msra.mxu2 %v6234_v28  ;;  %3951 = vmatpush.bf16.msra.mxu0 %v5658_v32  ;;  %v7868_v16 = vld [vmem:[#allocation8 + $0x64] sm:$0xf0]  ;;  %v6362_v21 = vor.u32 %v8076_v14, %v6361_v13 }
 0x12f   :  { %3944 = vmatmul.bf16.vlgmr.msrb.gmra.mxu3 %v8761_v44  ;;  %v5785_v18 = vld [vmem:[#allocation8 + $0x248] sm:$0xf]  ;;  %v5530_v25 = vor.u32 %v7868_v16, %v5529_v15 }
 0x130   :  { %3988 = vmatpush.bf16.msra.mxu3 %v6490_v29  ;;  %3964 = vmatpush.bf16.msra.mxu1 %v5914_v33  ;;  %v7932_v19 = vld [vmem:[#allocation8 + $0x264] sm:$0xf0] }
 0x131   :  { %v6073_v23 = vld [vmem:[#allocation8 + $0x488] sm:$0xf]  ;;  %v5786_v26 = vor.u32 %v7932_v19, %v5785_v18 }
 0x132   :  { %3976 = vmatpush.bf16.msra.mxu2 %v6202_v40  ;;  %3952 = vmatpush.bf16.msra.mxu0 %v5626_v46  ;;  %v8004_v2 = vld [vmem:[#allocation8 + $0x4a4] sm:$0xf0] }
 0x133   :  { %v6329_v24 = vld [vmem:[#allocation8 + $0x688] sm:$0xf]  ;;  %v6074_v33 = vor.u32 %v8004_v2, %v6073_v23 }
 0x134   :  { %3989 = vmatpush.bf16.msra.mxu3 %v6458_v41  ;;  %3965 = vmatpush.bf16.msra.mxu1 %v5882_v47  ;;  %v8068_v27 = vld [vmem:[#allocation8 + $0x6a4] sm:$0xf0] }
 0x135   :  { %v5497_v28 = vld [vmem:[#allocation8 + $0x8] sm:$0xf]  ;;  %v6330_v37 = vor.u32 %v8068_v27, %v6329_v24 }
 0x136   :  { %3977 = vmatpush.bf16.msra.mxu2 %v6170_v56  ;;  %3953 = vmatpush.bf16.msra.mxu0 %v5594_v60  ;;  %v7860_v29 = vld [vmem:[#allocation8 + $0x24] sm:$0xf0] }
 0x137   :  { %v5753_v30 = vld [vmem:[#allocation8 + $0x208] sm:$0xf]  ;;  %v5498_v40 = vor.u32 %v7860_v29, %v5497_v28 }
 0x138   :  { %3990 = vmatpush.bf16.msra.mxu3 %v6426_v57  ;;  %3966 = vmatpush.bf16.msra.mxu1 %v5850_v61  ;;  %v7924_v31 = vld [vmem:[#allocation8 + $0x224] sm:$0xf0] }
 0x139   :  { %v6745_v32 = vld [vmem:[#allocation8 + $0x9c8] sm:$0xf]  ;;  %v5754_v41 = vor.u32 %v7924_v31, %v5753_v30 }
 0x13a   :  { %3978 = vmatpush.bf16.msra.mxu2 %v6138_v5  ;;  %3954 = vmatpush.bf16.msra.mxu0 %v5562_v11  ;;  %v8172_v34 = vld [vmem:[#allocation8 + $0x9e4] sm:$0xf0] }
 0x13b   :  { %v7001_v35 = vld [vmem:[#allocation8 + $0xbc8] sm:$0xf]  ;;  %v6746_v46 = vor.u32 %v8172_v34, %v6745_v32 }
 0x13c   :  { %3991 = vmatpush.bf16.msra.mxu3 %v6394_v7  ;;  %3967 = vmatpush.bf16.msra.mxu1 %v5818_v12  ;;  %v8236_v36 = vld [vmem:[#allocation8 + $0xbe4] sm:$0xf0] }
 0x13d   :  { %v6041_v38 = vld [vmem:[#allocation8 + $0x448] sm:$0xf]  ;;  %v7002_v47 = vor.u32 %v8236_v36, %v7001_v35 }
 0x13e   :  { %3979 = vmatpush.bf16.msra.mxu2 %v6106_v20  ;;  %v7996_v39 = vld [vmem:[#allocation8 + $0x464] sm:$0xf0]  ;;  %3955 = vmatpush.bf16.msra.mxu0 %v5530_v25 }
 0x13f   :  { %v6297_v42 = vld [vmem:[#allocation8 + $0x648] sm:$0xf]  ;;  %v6042_v51 = vor.u32 %v7996_v39, %v6041_v38 }
 0x140   :  { %3992 = vmatpush.bf16.msra.mxu3 %v6362_v21  ;;  %3968 = vmatpush.bf16.msra.mxu1 %v5786_v26  ;;  %v8060_v45 = vld [vmem:[#allocation8 + $0x664] sm:$0xf0] }
 0x141   :  { %v6713_v48 = vld [vmem:[#allocation8 + $0x988] sm:$0xf]  ;;  %v6298_v55 = vor.u32 %v8060_v45, %v6297_v42 }
 0x142   :  { %3980 = vmatpush.bf16.msra.mxu2 %v6074_v33  ;;  %v8164_v52 = vld [vmem:[#allocation8 + $0x9a4] sm:$0xf0]  ;;  %3956 = vmatpush.bf16.msra.mxu0 %v5498_v40 }
 0x143   :  { %v6969_v53 = vld [vmem:[#allocation8 + $0xb88] sm:$0xf]  ;;  %v6714_v62 = vor.u32 %v8164_v52, %v6713_v48 }
 0x144   :  { %v8228_v54 = vld [vmem:[#allocation8 + $0xba4] sm:$0xf0]  ;;  %3993 = vmatpush.bf16.msra.mxu3 %v6330_v37  ;;  %3969 = vmatpush.bf16.msra.mxu1 %v5754_v41 }
 0x145   :  { %v6009_v56 = vld [vmem:[#allocation8 + $0x408] sm:$0xf]  ;;  %v6970_v63 = vor.u32 %v8228_v54, %v6969_v53  ;;  %3957 = vmatmul.bf16.vlgmr.msra.gmra.mxu0 %v8736_v17 }
 0x146   :  { %v7988_v57 = vld [vmem:[#allocation8 + $0x424] sm:$0xf0]  ;;  %4001 = vmatpush.bf16.msrb.mxu0 %v6746_v46  ;;  %3981 = vmatpush.bf16.msra.mxu2 %v6042_v51 }
 0x147   :  { %v6265_v58 = vld [vmem:[#allocation8 + $0x608] sm:$0xf]  ;;  %v6010_v3 = vor.u32 %v7988_v57, %v6009_v56  ;;  %3970 = vmatmul.bf16.vlgmr.msra.gmra.mxu1 %v8739_v22 }
 0x148   :  { %v8052_v59 = vld [vmem:[#allocation8 + $0x624] sm:$0xf0]  ;;  %4014 = vmatpush.bf16.msrb.mxu1 %v7002_v47  ;;  %3994 = vmatpush.bf16.msra.mxu3 %v6298_v55 }
 0x149   :  { %v7257_v60 = vld [vmem:[#allocation8 + $0xdc8] sm:$0xf]  ;;  %v6266_v7 = vor.u32 %v8052_v59, %v6265_v58 }
 0x14a   :  { %v8300_v61 = vld [vmem:[#allocation8 + $0xde4] sm:$0xf0]  ;;  %4002 = vmatpush.bf16.msrb.mxu0 %v6714_v62  ;;  %3982 = vmatpush.bf16.msra.mxu2 %v6010_v3 }
 0x14b   :  { %v7513_v0 = vld [vmem:[#allocation8 + $0xfc8] sm:$0xf]  ;;  %v7258_v8 = vor.u32 %v8300_v61, %v7257_v60 }
 0x14c   :  { %v8364_v1 = vld [vmem:[#allocation8 + $0xfe4] sm:$0xf0]  ;;  %4015 = vmatpush.bf16.msrb.mxu1 %v6970_v63  ;;  %3995 = vmatpush.bf16.msra.mxu3 %v6266_v7 }
 0x14d   :  { %v6681_v4 = vld [vmem:[#allocation8 + $0x948] sm:$0xf]  ;;  %v7514_v12 = vor.u32 %v8364_v1, %v7513_v0  ;;  %3983 = vmatmul.bf16.vlgmr.msra.gmra.mxu2 %v8743_v43 }
 0x14e   :  { %v8156_v5 = vld [vmem:[#allocation8 + $0x964] sm:$0xf0]  ;;  %4027 = vmatpush.bf16.msrb.mxu2 %v7258_v8 }
 0x14f   :  { %v6937_v10 = vld [vmem:[#allocation8 + $0xb48] sm:$0xf]  ;;  %v6682_v15 = vor.u32 %v8156_v5, %v6681_v4  ;;  %3996 = vmatmul.bf16.vlgmr.msra.gmra.mxu3 %v8745_v49 }
 0x150   :  { %v8220_v11 = vld [vmem:[#allocation8 + $0xb64] sm:$0xf0]  ;;  %4040 = vmatpush.bf16.msrb.mxu3 %v7514_v12 }
 0x151   :  { %v7225_v13 = vld [vmem:[#allocation8 + $0xd88] sm:$0xf]  ;;  %v6938_v19 = vor.u32 %v8220_v11, %v6937_v10  ;;  %4003 = vmatpush.bf16.msrb.mxu0 %v6682_v15 }
 0x152   :  { %v8292_v14 = vld [vmem:[#allocation8 + $0xda4] sm:$0xf0] }
 0x153   :  { %v7481_v16 = vld [vmem:[#allocation8 + $0xf88] sm:$0xf]  ;;  %v7226_v23 = vor.u32 %v8292_v14, %v7225_v13  ;;  %4016 = vmatpush.bf16.msrb.mxu1 %v6938_v19  ;;  %v7976_v19 = vld [vmem:[#allocation8 + $0x3cc] sm:$0xf] }
 0x154   :  { %v8356_v18 = vld [vmem:[#allocation8 + $0xfa4] sm:$0xf0] }
 0x155   :  { %v6649_v20 = vld [vmem:[#allocation8 + $0x908] sm:$0xf]  ;;  %v7482_v25 = vor.u32 %v8356_v18, %v7481_v16  ;;  %4028 = vmatpush.bf16.msrb.mxu2 %v7226_v23  ;;  %v7912_v16 = vld [vmem:[#allocation8 + $0x1cc] sm:$0xf] }
 0x156   :  { %v8148_v21 = vld [vmem:[#allocation8 + $0x924] sm:$0xf0]  ;;  %v5723_v18 = vld [vmem:[#allocation8 + $0x1e8] sm:$0xf0] }
 0x157   :  { %v6905_v2 = vld [vmem:[#allocation8 + $0xb08] sm:$0xf]  ;;  %v6650_v28 = vor.u32 %v8148_v21, %v6649_v20  ;;  %4041 = vmatpush.bf16.msrb.mxu3 %v7482_v25  ;;  %v5979_v21 = vld [vmem:[#allocation8 + $0x3e8] sm:$0xf0] }
 0x158   :  { %v8212_v24 = vld [vmem:[#allocation8 + $0xb24] sm:$0xf0] }
 0x159   :  { %v7193_v26 = vld [vmem:[#allocation8 + $0xd48] sm:$0xf]  ;;  %v6906_v31 = vor.u32 %v8212_v24, %v6905_v2  ;;  %4004 = vmatpush.bf16.msrb.mxu0 %v6650_v28  ;;  %v5726_v28 = vor.u32 %v7912_v16, %v5723_v18  ;;  %v8088_v18 = vld [vmem:[#allocation8 + $0x74c] sm:$0xf] }
 0x15a   :  { %v8284_v27 = vld [vmem:[#allocation8 + $0xd64] sm:$0xf0] }
 0x15b   :  { %v7449_v29 = vld [vmem:[#allocation8 + $0xf48] sm:$0xf]  ;;  %v7194_v34 = vor.u32 %v8284_v27, %v7193_v26  ;;  %4017 = vmatpush.bf16.msrb.mxu1 %v6906_v31 }
 0x15c   :  { %v8348_v30 = vld [vmem:[#allocation8 + $0xf64] sm:$0xf0] }
 0x15d   :  { %v6617_v32 = vld [vmem:[#allocation8 + $0x8c8] sm:$0xf]  ;;  %v7450_v37 = vor.u32 %v8348_v30, %v7449_v29  ;;  %4029 = vmatpush.bf16.msrb.mxu2 %v7194_v34  ;;  %v7904_v29 = vld [vmem:[#allocation8 + $0x18c] sm:$0xf]  ;;  %v5982_v30 = vor.u32 %v7976_v19, %v5979_v21 }
 0x15e   :  { %v8140_v33 = vld [vmem:[#allocation8 + $0x8e4] sm:$0xf0]  ;;  %v5947_v34 = vld [vmem:[#allocation8 + $0x3a8] sm:$0xf0] }
 0x15f   :  { %v6873_v35 = vld [vmem:[#allocation8 + $0xac8] sm:$0xf]  ;;  %v6618_v40 = vor.u32 %v8140_v33, %v6617_v32  ;;  %4042 = vmatpush.bf16.msrb.mxu3 %v7450_v37  ;;  %v5691_v32 = vld [vmem:[#allocation8 + $0x1a8] sm:$0xf0] }
 0x160   :  { %v8204_v36 = vld [vmem:[#allocation8 + $0xae4] sm:$0xf0]  ;;  %v7968_v33 = vld [vmem:[#allocation8 + $0x38c] sm:$0xf] }
 0x161   :  { %v7161_v38 = vld [vmem:[#allocation8 + $0xd08] sm:$0xf]  ;;  %v6874_v45 = vor.u32 %v8204_v36, %v6873_v35  ;;  %4005 = vmatpush.bf16.msrb.mxu0 %v6618_v40  ;;  %v8040_v40 = vld [vmem:[#allocation8 + $0x5cc] sm:$0xf] }
 0x162   :  { %v8276_v39 = vld [vmem:[#allocation8 + $0xd24] sm:$0xf0]  ;;  %v6427_v19 = vld [vmem:[#allocation8 + $0x768] sm:$0xf0] }
 0x163   :  { %v7417_v41 = vld [vmem:[#allocation8 + $0xf08] sm:$0xf]  ;;  %v7162_v48 = vor.u32 %v8276_v39, %v7161_v38  ;;  %4018 = vmatpush.bf16.msrb.mxu1 %v6874_v45  ;;  %v8104_v45 = vld [vmem:[#allocation8 + $0x7cc] sm:$0xf] }
 0x164   :  { %v8340_v42 = vld [vmem:[#allocation8 + $0xf24] sm:$0xf0] }
 0x165   :  { %v6585_v46 = vld [vmem:[#allocation8 + $0x888] sm:$0xf]  ;;  %v7418_v53 = vor.u32 %v8340_v42, %v7417_v41  ;;  %4030 = vmatpush.bf16.msrb.mxu2 %v7162_v48  ;;  %v6235_v41 = vld [vmem:[#allocation8 + $0x5e8] sm:$0xf0]  ;;  %v5694_v42 = vor.u32 %v7904_v29, %v5691_v32  ;;  %v5950_v48 = vor.u32 %v7968_v33, %v5947_v34 }
 0x166   :  { %v8132_v47 = vld [vmem:[#allocation8 + $0x8a4] sm:$0xf0]  ;;  %v6139_v29 = vld [vmem:[#allocation8 + $0x528] sm:$0xf0] }
 0x167   :  { %v6841_v51 = vld [vmem:[#allocation8 + $0xa88] sm:$0xf]  ;;  %v6586_v56 = vor.u32 %v8132_v47, %v6585_v46  ;;  %4043 = vmatpush.bf16.msrb.mxu3 %v7418_v53  ;;  %v6491_v46 = vld [vmem:[#allocation8 + $0x7e8] sm:$0xf0]  ;;  %v8777_v47 = vld [vmem:[#allocation10] sm:$0xff] }
 0x168   :  { %v8196_v52 = vld [vmem:[#allocation8 + $0xaa4] sm:$0xf0]  ;;  %v5659_v53 = vld [vmem:[#allocation8 + $0x168] sm:$0xf0] }
 0x169   :  { %v7129_v54 = vld [vmem:[#allocation8 + $0xcc8] sm:$0xf]  ;;  %v6842_v59 = vor.u32 %v8196_v52, %v6841_v51  ;;  %4006 = vmatpush.bf16.msrb.mxu0 %v6586_v56  ;;  %v7896_v52 = vld [vmem:[#allocation8 + $0x14c] sm:$0xf] }
 0x16a   :  { %v8268_v55 = vld [vmem:[#allocation8 + $0xce4] sm:$0xf0]  ;;  %v7960_v56 = vld [vmem:[#allocation8 + $0x34c] sm:$0xf] }
 0x16b   :  { %v7385_v57 = vld [vmem:[#allocation8 + $0xec8] sm:$0xf]  ;;  %v7130_v62 = vor.u32 %v8268_v55, %v7129_v54  ;;  %4019 = vmatpush.bf16.msrb.mxu1 %v6842_v59  ;;  %v6238_v55 = vor.u32 %v8040_v40, %v6235_v41  ;;  %v1165_v59 = vperm.slane %v8777_v47, 0  ;;  %v6395_v32 = vld [vmem:[#allocation8 + $0x728] sm:$0xf0] }
 0x16c   :  { %v8332_v58 = vld [vmem:[#allocation8 + $0xee4] sm:$0xf0]  ;;  %v7872_v34 = vld [vmem:[#allocation8 + $0x8c] sm:$0xf] }
 0x16d   :  { %v6553_v60 = vld [vmem:[#allocation8 + $0x848] sm:$0xf]  ;;  %v7386_v1 = vor.u32 %v8332_v58, %v7385_v57  ;;  %4031 = vmatpush.bf16.msrb.mxu2 %v7130_v62  ;;  %v5915_v57 = vld [vmem:[#allocation8 + $0x368] sm:$0xf0]  ;;  %v6494_v58 = vor.u32 %v8104_v45, %v6491_v46  ;;  %v5662_v62 = vor.u32 %v7896_v52, %v5659_v53 }
 0x16e   :  { %v8124_v61 = vld [vmem:[#allocation8 + $0x864] sm:$0xf0]  ;;  %v6107_v45 = vld [vmem:[#allocation8 + $0x4e8] sm:$0xf0] }
 0x16f   :  { %v6809_v63 = vld [vmem:[#allocation8 + $0xa48] sm:$0xf]  ;;  %v6554_v5 = vor.u32 %v8124_v61, %v6553_v60  ;;  %4044 = vmatpush.bf16.msrb.mxu3 %v7386_v1  ;;  %v8032_v60 = vld [vmem:[#allocation8 + $0x58c] sm:$0xf]  ;;  %v5918_v1 = vor.u32 %v7960_v56, %v5915_v57 }
 0x170   :  { %v8188_v0 = vld [vmem:[#allocation8 + $0xa64] sm:$0xf0]  ;;  %v6203_v61 = vld [vmem:[#allocation8 + $0x5a8] sm:$0xf0] }
 0x171   :  { %v7097_v3 = vld [vmem:[#allocation8 + $0xc88] sm:$0xf]  ;;  %v6810_v11 = vor.u32 %v8188_v0, %v6809_v63  ;;  %4007 = vmatpush.bf16.msrb.mxu0 %v6554_v5  ;;  %v8096_v63 = vld [vmem:[#allocation8 + $0x78c] sm:$0xf]  ;;  %v3750_v5 = vpop.f32.mrf.mxu0 }
 0x172   :  { %v8260_v4 = vld [vmem:[#allocation8 + $0xca4] sm:$0xf0]  ;;  %v6459_v0 = vld [vmem:[#allocation8 + $0x7a8] sm:$0xf0] }
 0x173   :  { %v7353_v7 = vld [vmem:[#allocation8 + $0xe88] sm:$0xf]  ;;  %v7098_v15 = vor.u32 %v8260_v4, %v7097_v3  ;;  %4020 = vmatpush.bf16.msrb.mxu1 %v6810_v11  ;;  %v7888_v3 = vld [vmem:[#allocation8 + $0x10c] sm:$0xf]  ;;  %v3751_v11 = vadd.f32 %v3750_v5, %v1165_v59 }
 0x174   :  { %v8324_v8 = vld [vmem:[#allocation8 + $0xea4] sm:$0xf0]  ;;  %v5627_v4 = vld [vmem:[#allocation8 + $0x128] sm:$0xf0] }
 0x175   :  { %v6521_v10 = vld [vmem:[#allocation8 + $0x808] sm:$0xf]  ;;  %v7354_v20 = vor.u32 %v8324_v8, %v7353_v7  ;;  %4032 = vmatpush.bf16.msrb.mxu2 %v7098_v15  ;;  %v6206_v7 = vor.u32 %v8032_v60, %v6203_v61  ;;  %v7952_v8 = vld [vmem:[#allocation8 + $0x30c] sm:$0xf]  ;;  %v5630_v16 = vor.u32 %v7888_v3, %v5627_v4 }
 0x176   :  { %v8116_v12 = vld [vmem:[#allocation8 + $0x824] sm:$0xf0]  ;;  %v6171_v15 = vld [vmem:[#allocation8 + $0x568] sm:$0xf0] }
 0x177   :  { %v6777_v13 = vld [vmem:[#allocation8 + $0xa08] sm:$0xf]  ;;  %v6522_v24 = vor.u32 %v8116_v12, %v6521_v10  ;;  %4045 = vmatpush.bf16.msrb.mxu3 %v7354_v20  ;;  %v5883_v10 = vld [vmem:[#allocation8 + $0x328] sm:$0xf0]  ;;  %v6462_v12 = vor.u32 %v8096_v63, %v6459_v0  ;;  %v3789_v63 = vpop.f32.mrf.mxu3 }
 0x178   :  { %v8180_v14 = vld [vmem:[#allocation8 + $0xa24] sm:$0xf0]  ;;  %v5886_v21 = vor.u32 %v7952_v8, %v5883_v10  ;;  %v7864_v53 = vld [vmem:[#allocation8 + $0x4c] sm:$0xf] }
 0x179   :  { %v7065_v23 = vld [vmem:[#allocation8 + $0xc48] sm:$0xf]  ;;  %v6778_v27 = vor.u32 %v8180_v14, %v6777_v13  ;;  %4008 = vmatpush.bf16.msrb.mxu0 %v6522_v24  ;;  %v3763_v13 = vpop.f32.mrf.mxu1  ;;  %v8024_v14 = vld [vmem:[#allocation8 + $0x54c] sm:$0xf] }
 0x17a   :  { %v8252_v2 = vld [vmem:[#allocation8 + $0xc64] sm:$0xf0]  ;;  %v3764_v20 = vadd.f32 %v3763_v13, %v3751_v11  ;;  %v6174_v24 = vor.u32 %v8024_v14, %v6171_v15  ;;  %v7928_v56 = vld [vmem:[#allocation8 + $0x24c] sm:$0xf] }
 0x17b   :  { %v7321_v25 = vld [vmem:[#allocation8 + $0xe48] sm:$0xf]  ;;  %v7066_v31 = vor.u32 %v8252_v2, %v7065_v23  ;;  %4021 = vmatpush.bf16.msrb.mxu1 %v6778_v27  ;;  %v7880_v23 = vld [vmem:[#allocation8 + $0xcc] sm:$0xf]  ;;  %v6430_v27 = vor.u32 %v8088_v18, %v6427_v19 }
 0x17c   :  { %v8316_v26 = vld [vmem:[#allocation8 + $0xe64] sm:$0xf0]  ;;  %4009 = vmatmul.bf16.vlgmr.msrb.gmra.mxu0 %v8752_v6  ;;  %v5595_v2 = vld [vmem:[#allocation8 + $0xe8] sm:$0xf0] }
 0x17d   :  { %v7322_v35 = vor.u32 %v8316_v26, %v7321_v25  ;;  %v7033_v36 = vld [vmem:[#allocation8 + $0xc08] sm:$0xf]  ;;  %4053 = vmatpush.bf16.msra.mxu0 %v5726_v28  ;;  %4033 = vmatpush.bf16.msrb.mxu2 %v7066_v31  ;;  %v7944_v25 = vld [vmem:[#allocation8 + $0x2cc] sm:$0xf] }
 0x17e   :  { %v8244_v37 = vld [vmem:[#allocation8 + $0xc24] sm:$0xf0]  ;;  %4022 = vmatmul.bf16.vlgmr.msrb.gmra.mxu1 %v8755_v9  ;;  %v5851_v26 = vld [vmem:[#allocation8 + $0x2e8] sm:$0xf0] }
 0x17f   :  { %v7289_v38 = vld [vmem:[#allocation8 + $0xe08] sm:$0xf]  ;;  %4066 = vmatpush.bf16.msra.mxu1 %v5982_v30  ;;  %v7034_v51 = vor.u32 %v8244_v37, %v7033_v36  ;;  %4046 = vmatpush.bf16.msrb.mxu3 %v7322_v35  ;;  %v8016_v28 = vld [vmem:[#allocation8 + $0x50c] sm:$0xf]  ;;  %v5598_v30 = vor.u32 %v7880_v23, %v5595_v2  ;;  %v5854_v33 = vor.u32 %v7944_v25, %v5851_v26  ;;  %v3752_v36 = vpop.f32.mrf.mxu0 }
 0x180   :  { %v8308_v39 = vld [vmem:[#allocation8 + $0xe24] sm:$0xf0]  ;;  %v8080_v31 = vld [vmem:[#allocation8 + $0x70c] sm:$0xf]  ;;  %v6142_v37 = vor.u32 %v8016_v28, %v6139_v29 }
 0x181   :  { %v7290_v54 = vor.u32 %v8308_v39, %v7289_v38  ;;  %4054 = vmatpush.bf16.msra.mxu0 %v5694_v42  ;;  %4034 = vmatpush.bf16.msrb.mxu2 %v7034_v51  ;;  %v5563_v35 = vld [vmem:[#allocation8 + $0xa8] sm:$0xf0]  ;;  %v6398_v40 = vor.u32 %v8080_v31, %v6395_v32  ;;  %v3765_v41 = vpop.f32.mrf.mxu1 }
 0x182   :  { %v7936_v38 = vld [vmem:[#allocation8 + $0x28c] sm:$0xf]  ;;  %v5566_v46 = vor.u32 %v7872_v34, %v5563_v35 }
 0x183   :  { %4067 = vmatpush.bf16.msra.mxu1 %v5950_v48  ;;  %4047 = vmatpush.bf16.msrb.mxu3 %v7290_v54  ;;  %v5819_v39 = vld [vmem:[#allocation8 + $0x2a8] sm:$0xf0] }
 0x184   :  { %4035 = vmatmul.bf16.vlgmr.msrb.gmra.mxu2 %v8759_v50  ;;  %v8008_v42 = vld [vmem:[#allocation8 + $0x4cc] sm:$0xf]  ;;  %v5822_v52 = vor.u32 %v7936_v38, %v5819_v39 }
 0x185   :  { %4079 = vmatpush.bf16.msra.mxu2 %v6238_v55  ;;  %4055 = vmatpush.bf16.msra.mxu0 %v5662_v62  ;;  %v8072_v48 = vld [vmem:[#allocation8 + $0x6cc] sm:$0xf]  ;;  %v6110_v55 = vor.u32 %v8008_v42, %v6107_v45 }
 0x186   :  { %4048 = vmatmul.bf16.vlgmr.msrb.gmra.mxu3 %v8761_v44  ;;  %v6363_v51 = vld [vmem:[#allocation8 + $0x6e8] sm:$0xf0] }
 0x187   :  { %4092 = vmatpush.bf16.msra.mxu3 %v6494_v58  ;;  %4068 = vmatpush.bf16.msra.mxu1 %v5918_v1  ;;  %v5531_v54 = vld [vmem:[#allocation8 + $0x68] sm:$0xf0]  ;;  %v3776_v58 = vpop.f32.mrf.mxu2  ;;  %v6366_v59 = vor.u32 %v8072_v48, %v6363_v51 }
 0x188   :  { %v5787_v57 = vld [vmem:[#allocation8 + $0x268] sm:$0xf0]  ;;  %v3777_v62 = vadd.f32 %v3776_v58, %v3764_v20  ;;  %v5534_v0 = vor.u32 %v7864_v53, %v5531_v54 }
 0x189   :  { %4080 = vmatpush.bf16.msra.mxu2 %v6206_v7  ;;  %4056 = vmatpush.bf16.msra.mxu0 %v5630_v16  ;;  %v8000_v60 = vld [vmem:[#allocation8 + $0x48c] sm:$0xf]  ;;  %v5790_v5 = vor.u32 %v7928_v56, %v5787_v57 }
 0x18a   :  { %v6075_v61 = vld [vmem:[#allocation8 + $0x4a8] sm:$0xf0]  ;;  %v8784_v11 = vadd.f32 %v3789_v63, %v3777_v62 }
 0x18b   :  { %4093 = vmatpush.bf16.msra.mxu3 %v6462_v12  ;;  %4069 = vmatpush.bf16.msra.mxu1 %v5886_v21  ;;  %v8064_v1 = vld [vmem:[#allocation8 + $0x68c] sm:$0xf]  ;;  %v6078_v12 = vor.u32 %v8000_v60, %v6075_v61 }
 0x18c   :  { %v6331_v3 = vld [vmem:[#allocation8 + $0x6a8] sm:$0xf0] }
 0x18d   :  { %4081 = vmatpush.bf16.msra.mxu2 %v6174_v24  ;;  %4057 = vmatpush.bf16.msra.mxu0 %v5598_v30  ;;  %v7856_v4 = vld [vmem:[#allocation8 + $0xc] sm:$0xf]  ;;  %v6334_v16 = vor.u32 %v8064_v1, %v6331_v3 }
 0x18e   :  { %v5499_v7 = vld [vmem:[#allocation8 + $0x28] sm:$0xf0] }
 0x18f   :  { %4094 = vmatpush.bf16.msra.mxu3 %v6430_v27  ;;  %4070 = vmatpush.bf16.msra.mxu1 %v5854_v33  ;;  %v7920_v8 = vld [vmem:[#allocation8 + $0x20c] sm:$0xf]  ;;  %v5502_v21 = vor.u32 %v7856_v4, %v5499_v7  ;;  %v3778_v32 = vpop.f32.mrf.mxu2  ;;  %v3802_v7 = vpop.f32.mrf.mxu0 }
 0x190   :  { %v5755_v10 = vld [vmem:[#allocation8 + $0x228] sm:$0xf0] }
 0x191   :  { %4082 = vmatpush.bf16.msra.mxu2 %v6142_v37  ;;  %4058 = vmatpush.bf16.msra.mxu0 %v5566_v46  ;;  %v8168_v13 = vld [vmem:[#allocation8 + $0x9cc] sm:$0xf]  ;;  %v5758_v24 = vor.u32 %v7920_v8, %v5755_v10  ;;  %v3791_v37 = vpop.f32.mrf.mxu3 }
 0x192   :  { %v6747_v14 = vld [vmem:[#allocation8 + $0x9e8] sm:$0xf0] }
 0x193   :  { %4095 = vmatpush.bf16.msra.mxu3 %v6398_v40  ;;  %4071 = vmatpush.bf16.msra.mxu1 %v5822_v52  ;;  %v8232_v15 = vld [vmem:[#allocation8 + $0xbcc] sm:$0xf]  ;;  %v6750_v25 = vor.u32 %v8168_v13, %v6747_v14  ;;  %v3803_v13 = vadd.f32 %v3802_v7, %v8784_v11  ;;  %v3815_v14 = vpop.f32.mrf.mxu1 }
 0x194   :  { %v7003_v18 = vld [vmem:[#allocation8 + $0xbe8] sm:$0xf0] }
 0x195   :  { %4083 = vmatpush.bf16.msra.mxu2 %v6110_v55  ;;  %v7992_v19 = vld [vmem:[#allocation8 + $0x44c] sm:$0xf]  ;;  %4059 = vmatpush.bf16.msra.mxu0 %v5534_v0  ;;  %v7006_v27 = vor.u32 %v8232_v15, %v7003_v18 }
 0x196   :  { %v6043_v20 = vld [vmem:[#allocation8 + $0x468] sm:$0xf0] }
 0x197   :  { %4096 = vmatpush.bf16.msra.mxu3 %v6366_v59  ;;  %v8056_v23 = vld [vmem:[#allocation8 + $0x64c] sm:$0xf]  ;;  %4072 = vmatpush.bf16.msra.mxu1 %v5790_v5  ;;  %v6046_v28 = vor.u32 %v7992_v19, %v6043_v20  ;;  %v3804_v37 = vpop.f32.mrf.mxu0 }
 0x198   :  { %v6299_v2 = vld [vmem:[#allocation8 + $0x668] sm:$0xf0] }
 0x199   :  { %v8160_v26 = vld [vmem:[#allocation8 + $0x98c] sm:$0xf]  ;;  %4084 = vmatpush.bf16.msra.mxu2 %v6078_v12  ;;  %v6302_v33 = vor.u32 %v8056_v23, %v6299_v2  ;;  %4060 = vmatpush.bf16.msra.mxu0 %v5502_v21  ;;  %v3816_v23 = vadd.f32 %v3815_v14, %v3803_v13  ;;  %v7917_v13 = vld [vmem:[#allocation8 + $0x1ec] sm:$0xf0] }
 0x19a   :  { %v6715_v29 = vld [vmem:[#allocation8 + $0x9a8] sm:$0xf0]  ;;  %v5985_v14 = vld [vmem:[#allocation8 + $0x3d0] sm:$0xf] }
 0x19b   :  { %v8224_v30 = vld [vmem:[#allocation8 + $0xb8c] sm:$0xf]  ;;  %4097 = vmatpush.bf16.msra.mxu3 %v6334_v16  ;;  %4073 = vmatpush.bf16.msra.mxu1 %v5758_v24  ;;  %v6718_v41 = vor.u32 %v8160_v26, %v6715_v29 }
 0x19c   :  { %v6971_v31 = vld [vmem:[#allocation8 + $0xba8] sm:$0xf0]  ;;  %4061 = vmatmul.bf16.vlgmr.msra.gmra.mxu0 %v8736_v17 }
 0x19d   :  { %v7984_v34 = vld [vmem:[#allocation8 + $0x40c] sm:$0xf]  ;;  %4105 = vmatpush.bf16.msrb.mxu0 %v6750_v25  ;;  %4085 = vmatpush.bf16.msra.mxu2 %v6046_v28  ;;  %v6974_v46 = vor.u32 %v8224_v30, %v6971_v31 }
 0x19e   :  { %v6011_v35 = vld [vmem:[#allocation8 + $0x428] sm:$0xf0]  ;;  %4074 = vmatmul.bf16.vlgmr.msra.gmra.mxu1 %v8739_v22 }
 0x19f   :  { %v8048_v36 = vld [vmem:[#allocation8 + $0x60c] sm:$0xf]  ;;  %4118 = vmatpush.bf16.msrb.mxu1 %v7006_v27  ;;  %v6014_v48 = vor.u32 %v7984_v34, %v6011_v35  ;;  %4098 = vmatpush.bf16.msra.mxu3 %v6302_v33 }
 0x1a0   :  { %v6267_v38 = vld [vmem:[#allocation8 + $0x628] sm:$0xf0] }
 0x1a1   :  { %v8296_v39 = vld [vmem:[#allocation8 + $0xdcc] sm:$0xf]  ;;  %v6270_v53 = vor.u32 %v8048_v36, %v6267_v38  ;;  %4106 = vmatpush.bf16.msrb.mxu0 %v6718_v41  ;;  %4086 = vmatpush.bf16.msra.mxu2 %v6014_v48  ;;  %v3817_v41 = vpop.f32.mrf.mxu1 }
 0x1a2   :  { %v7259_v40 = vld [vmem:[#allocation8 + $0xde8] sm:$0xf0]  ;;  %v6241_v41 = vld [vmem:[#allocation8 + $0x5d0] sm:$0xf] }
 0x1a3   :  { %v8360_v42 = vld [vmem:[#allocation8 + $0xfcc] sm:$0xf]  ;;  %v7262_v54 = vor.u32 %v8296_v39, %v7259_v40  ;;  %4119 = vmatpush.bf16.msrb.mxu1 %v6974_v46  ;;  %4099 = vmatpush.bf16.msra.mxu3 %v6270_v53 }
 0x1a4   :  { %v7515_v45 = vld [vmem:[#allocation8 + $0xfe8] sm:$0xf0]  ;;  %4087 = vmatmul.bf16.vlgmr.msra.gmra.mxu2 %v8743_v43 }
 0x1a5   :  { %v8152_v51 = vld [vmem:[#allocation8 + $0x94c] sm:$0xf]  ;;  %v7518_v57 = vor.u32 %v8360_v42, %v7515_v45  ;;  %4131 = vmatpush.bf16.msrb.mxu2 %v7262_v54 }
 0x1a6   :  { %v6683_v52 = vld [vmem:[#allocation8 + $0x968] sm:$0xf0]  ;;  %4100 = vmatmul.bf16.vlgmr.msra.gmra.mxu3 %v8745_v49 }
 0x1a7   :  { %v8216_v55 = vld [vmem:[#allocation8 + $0xb4c] sm:$0xf]  ;;  %v6686_v60 = vor.u32 %v8152_v51, %v6683_v52  ;;  %4144 = vmatpush.bf16.msrb.mxu3 %v7518_v57 }
 0x1a8   :  { %v6939_v56 = vld [vmem:[#allocation8 + $0xb68] sm:$0xf0] }
 0x1a9   :  { %v8288_v58 = vld [vmem:[#allocation8 + $0xd8c] sm:$0xf]  ;;  %v6942_v63 = vor.u32 %v8216_v55, %v6939_v56  ;;  %4107 = vmatpush.bf16.msrb.mxu0 %v6686_v60  ;;  %v3828_v60 = vpop.f32.mrf.mxu2 }
 0x1aa   :  { %v7227_v59 = vld [vmem:[#allocation8 + $0xda8] sm:$0xf0] }
 0x1ab   :  { %v8352_v61 = vld [vmem:[#allocation8 + $0xf8c] sm:$0xf]  ;;  %v7230_v3 = vor.u32 %v8288_v58, %v7227_v59  ;;  %4120 = vmatpush.bf16.msrb.mxu1 %v6942_v63 }
 0x1ac   :  { %v7483_v62 = vld [vmem:[#allocation8 + $0xfa8] sm:$0xf0] }
 0x1ad   :  { %v8144_v0 = vld [vmem:[#allocation8 + $0x90c] sm:$0xf]  ;;  %v7486_v8 = vor.u32 %v8352_v61, %v7483_v62  ;;  %4132 = vmatpush.bf16.msrb.mxu2 %v7230_v3  ;;  %v1166_v62 = vperm.slane %v8777_v47, 1  ;;  %v3841_v3 = vpop.f32.mrf.mxu3 }
 0x1ae   :  { %v6651_v1 = vld [vmem:[#allocation8 + $0x928] sm:$0xf0] }
 0x1af   :  { %v8208_v4 = vld [vmem:[#allocation8 + $0xb0c] sm:$0xf]  ;;  %v6654_v15 = vor.u32 %v8144_v0, %v6651_v1  ;;  %4145 = vmatpush.bf16.msrb.mxu3 %v7486_v8  ;;  %v3829_v1 = vadd.f32 %v3828_v60, %v3816_v23  ;;  %v7965_v60 = vld [vmem:[#allocation8 + $0x36c] sm:$0xf0] }
 0x1b0   :  { %v6907_v5 = vld [vmem:[#allocation8 + $0xb28] sm:$0xf0] }
 0x1b1   :  { %v8280_v10 = vld [vmem:[#allocation8 + $0xd4c] sm:$0xf]  ;;  %v6910_v19 = vor.u32 %v8208_v4, %v6907_v5  ;;  %4108 = vmatpush.bf16.msrb.mxu0 %v6654_v15  ;;  %v8792_v15 = vadd.f32 %v3841_v3, %v3829_v1  ;;  %v6465_v3 = vld [vmem:[#allocation8 + $0x790] sm:$0xf] }
 0x1b2   :  { %v7195_v12 = vld [vmem:[#allocation8 + $0xd68] sm:$0xf0] }
 0x1b3   :  { %v8344_v16 = vld [vmem:[#allocation8 + $0xf4c] sm:$0xf]  ;;  %v7198_v2 = vor.u32 %v8280_v10, %v7195_v12  ;;  %4121 = vmatpush.bf16.msrb.mxu1 %v6910_v19  ;;  %v5729_v12 = vld [vmem:[#allocation8 + $0x1d0] sm:$0xf] }
 0x1b4   :  { %v7451_v18 = vld [vmem:[#allocation8 + $0xf68] sm:$0xf0]  ;;  %v7981_v19 = vld [vmem:[#allocation8 + $0x3ec] sm:$0xf0] }
 0x1b5   :  { %v8136_v20 = vld [vmem:[#allocation8 + $0x8cc] sm:$0xf]  ;;  %v7454_v26 = vor.u32 %v8344_v16, %v7451_v18  ;;  %4133 = vmatpush.bf16.msrb.mxu2 %v7198_v2  ;;  %v3854_v16 = vpop.f32.mrf.mxu0  ;;  %v3867_v2 = vpop.f32.mrf.mxu1 }
 0x1b6   :  { %v6619_v21 = vld [vmem:[#allocation8 + $0x8e8] sm:$0xf0]  ;;  %v3855_v23 = vadd.f32 %v3854_v16, %v1166_v62 }
 0x1b7   :  { %v8200_v24 = vld [vmem:[#allocation8 + $0xacc] sm:$0xf]  ;;  %v6622_v11 = vor.u32 %v8136_v20, %v6619_v21  ;;  %4146 = vmatpush.bf16.msrb.mxu3 %v7454_v26 }
 0x1b8   :  { %v6875_v25 = vld [vmem:[#allocation8 + $0xae8] sm:$0xf0] }
 0x1b9   :  { %v8272_v27 = vld [vmem:[#allocation8 + $0xd0c] sm:$0xf]  ;;  %v6878_v31 = vor.u32 %v8200_v24, %v6875_v25  ;;  %4109 = vmatpush.bf16.msrb.mxu0 %v6622_v11  ;;  %v5697_v11 = vld [vmem:[#allocation8 + $0x190] sm:$0xf] }
 0x1ba   :  { %v7163_v28 = vld [vmem:[#allocation8 + $0xd28] sm:$0xf0] }
 0x1bb   :  { %v8336_v29 = vld [vmem:[#allocation8 + $0xf0c] sm:$0xf]  ;;  %v7166_v34 = vor.u32 %v8272_v27, %v7163_v28  ;;  %4122 = vmatpush.bf16.msrb.mxu1 %v6878_v31  ;;  %v5730_v28 = vor.u32 %v7917_v13, %v5729_v12  ;;  %v5889_v12 = vld [vmem:[#allocation8 + $0x310] sm:$0xf] }
 0x1bc   :  { %v7419_v30 = vld [vmem:[#allocation8 + $0xf28] sm:$0xf0]  ;;  %v7957_v13 = vld [vmem:[#allocation8 + $0x32c] sm:$0xf0] }
 0x1bd   :  { %v8128_v32 = vld [vmem:[#allocation8 + $0x88c] sm:$0xf]  ;;  %v7422_v38 = vor.u32 %v8336_v29, %v7419_v30  ;;  %4134 = vmatpush.bf16.msrb.mxu2 %v7166_v34  ;;  %v3868_v29 = vadd.f32 %v3867_v2, %v3855_v23  ;;  %v5986_v30 = vor.u32 %v7981_v19, %v5985_v14  ;;  %v7973_v34 = vld [vmem:[#allocation8 + $0x3ac] sm:$0xf0] }
 0x1be   :  { %v6587_v33 = vld [vmem:[#allocation8 + $0x8a8] sm:$0xf0]  ;;  %v8029_v19 = vld [vmem:[#allocation8 + $0x56c] sm:$0xf0] }
 0x1bf   :  { %v8192_v35 = vld [vmem:[#allocation8 + $0xa8c] sm:$0xf]  ;;  %v6590_v42 = vor.u32 %v8128_v32, %v6587_v33  ;;  %4147 = vmatpush.bf16.msrb.mxu3 %v7422_v38  ;;  %v7909_v32 = vld [vmem:[#allocation8 + $0x1ac] sm:$0xf0] }
 0x1c0   :  { %v6843_v36 = vld [vmem:[#allocation8 + $0xaa8] sm:$0xf0]  ;;  %v5953_v33 = vld [vmem:[#allocation8 + $0x390] sm:$0xf] }
 0x1c1   :  { %v8264_v39 = vld [vmem:[#allocation8 + $0xccc] sm:$0xf]  ;;  %v6846_v48 = vor.u32 %v8192_v35, %v6843_v36  ;;  %4110 = vmatpush.bf16.msrb.mxu0 %v6590_v42  ;;  %v8045_v42 = vld [vmem:[#allocation8 + $0x5ec] sm:$0xf0] }
 0x1c2   :  { %v7131_v40 = vld [vmem:[#allocation8 + $0xce8] sm:$0xf0]  ;;  %v6433_v2 = vld [vmem:[#allocation8 + $0x750] sm:$0xf] }
 0x1c3   :  { %v8328_v45 = vld [vmem:[#allocation8 + $0xecc] sm:$0xf]  ;;  %v7134_v53 = vor.u32 %v8264_v39, %v7131_v40  ;;  %4123 = vmatpush.bf16.msrb.mxu1 %v6846_v48  ;;  %v3830_v39 = vpop.f32.mrf.mxu2  ;;  %v6497_v48 = vld [vmem:[#allocation8 + $0x7d0] sm:$0xf] }
 0x1c4   :  { %v7387_v46 = vld [vmem:[#allocation8 + $0xee8] sm:$0xf0]  ;;  %v8085_v39 = vld [vmem:[#allocation8 + $0x72c] sm:$0xf0] }
 0x1c5   :  { %v8120_v51 = vld [vmem:[#allocation8 + $0x84c] sm:$0xf]  ;;  %v7390_v56 = vor.u32 %v8328_v45, %v7387_v46  ;;  %4135 = vmatpush.bf16.msrb.mxu2 %v7134_v53  ;;  %v3843_v45 = vpop.f32.mrf.mxu3  ;;  %v5698_v46 = vor.u32 %v7909_v32, %v5697_v11 }
 0x1c6   :  { %v6555_v52 = vld [vmem:[#allocation8 + $0x868] sm:$0xf0] }
 0x1c7   :  { %v8184_v54 = vld [vmem:[#allocation8 + $0xa4c] sm:$0xf]  ;;  %v6558_v61 = vor.u32 %v8120_v51, %v6555_v52  ;;  %4148 = vmatpush.bf16.msrb.mxu3 %v7390_v56  ;;  %v8109_v51 = vld [vmem:[#allocation8 + $0x7ec] sm:$0xf0]  ;;  %v5954_v52 = vor.u32 %v7973_v34, %v5953_v33  ;;  %v3856_v56 = vpop.f32.mrf.mxu0 }
 0x1c8   :  { %v6811_v55 = vld [vmem:[#allocation8 + $0xa68] sm:$0xf0]  ;;  %v6498_v62 = vor.u32 %v8109_v51, %v6497_v48  ;;  %v6145_v33 = vld [vmem:[#allocation8 + $0x510] sm:$0xf] }
 0x1c9   :  { %v8256_v57 = vld [vmem:[#allocation8 + $0xc8c] sm:$0xf]  ;;  %v6814_v4 = vor.u32 %v8184_v54, %v6811_v55  ;;  %4111 = vmatpush.bf16.msrb.mxu0 %v6558_v61  ;;  %v5665_v54 = vld [vmem:[#allocation8 + $0x150] sm:$0xf]  ;;  %v3869_v61 = vpop.f32.mrf.mxu1 }
 0x1ca   :  { %v7099_v58 = vld [vmem:[#allocation8 + $0xca8] sm:$0xf0]  ;;  %v7901_v55 = vld [vmem:[#allocation8 + $0x16c] sm:$0xf0] }
 0x1cb   :  { %v8320_v59 = vld [vmem:[#allocation8 + $0xe8c] sm:$0xf]  ;;  %v7102_v10 = vor.u32 %v8256_v57, %v7099_v58  ;;  %4124 = vmatpush.bf16.msrb.mxu1 %v6814_v4  ;;  %v6242_v58 = vor.u32 %v8045_v42, %v6241_v41  ;;  %v5666_v1 = vor.u32 %v7901_v55, %v5665_v54  ;;  %v8101_v4 = vld [vmem:[#allocation8 + $0x7ac] sm:$0xf0]  ;;  %v3880_v14 = vpop.f32.mrf.mxu2 }
 0x1cc   :  { %v7355_v63 = vld [vmem:[#allocation8 + $0xea8] sm:$0xf0]  ;;  %v6466_v16 = vor.u32 %v8101_v4, %v6465_v3  ;;  %v8021_v34 = vld [vmem:[#allocation8 + $0x52c] sm:$0xf0] }
 0x1cd   :  { %v8112_v0 = vld [vmem:[#allocation8 + $0x80c] sm:$0xf]  ;;  %v7358_v18 = vor.u32 %v8320_v59, %v7355_v63  ;;  %4136 = vmatpush.bf16.msrb.mxu2 %v7102_v10  ;;  %v5921_v59 = vld [vmem:[#allocation8 + $0x350] sm:$0xf] }
 0x1ce   :  { %v6523_v5 = vld [vmem:[#allocation8 + $0x828] sm:$0xf0]  ;;  %v6209_v63 = vld [vmem:[#allocation8 + $0x590] sm:$0xf] }
 0x1cf   :  { %v8176_v7 = vld [vmem:[#allocation8 + $0xa0c] sm:$0xf]  ;;  %v6526_v24 = vor.u32 %v8112_v0, %v6523_v5  ;;  %4149 = vmatpush.bf16.msrb.mxu3 %v7358_v18  ;;  %v8037_v0 = vld [vmem:[#allocation8 + $0x5ac] sm:$0xf0]  ;;  %v5922_v5 = vor.u32 %v7965_v60, %v5921_v59 }
 0x1d0   :  { %v6779_v8 = vld [vmem:[#allocation8 + $0xa28] sm:$0xf0]  ;;  %v6210_v10 = vor.u32 %v8037_v0, %v6209_v63  ;;  %v6177_v18 = vld [vmem:[#allocation8 + $0x550] sm:$0xf] }
 0x1d1   :  { %v8248_v20 = vld [vmem:[#allocation8 + $0xc4c] sm:$0xf]  ;;  %v6782_v27 = vor.u32 %v8176_v7, %v6779_v8  ;;  %4112 = vmatpush.bf16.msrb.mxu0 %v6526_v24  ;;  %v5633_v7 = vld [vmem:[#allocation8 + $0x110] sm:$0xf]  ;;  %v6178_v11 = vor.u32 %v8029_v19, %v6177_v18 }
 0x1d2   :  { %v7067_v21 = vld [vmem:[#allocation8 + $0xc68] sm:$0xf0]  ;;  %v7893_v8 = vld [vmem:[#allocation8 + $0x12c] sm:$0xf0] }
 0x1d3   :  { %v8312_v25 = vld [vmem:[#allocation8 + $0xe4c] sm:$0xf]  ;;  %v7070_v31 = vor.u32 %v8248_v20, %v7067_v21  ;;  %4125 = vmatpush.bf16.msrb.mxu1 %v6782_v27  ;;  %v3881_v20 = vadd.f32 %v3880_v14, %v3868_v29  ;;  %v3893_v21 = vpop.f32.mrf.mxu3  ;;  %v5634_v23 = vor.u32 %v7893_v8, %v5633_v7  ;;  %v8093_v24 = vld [vmem:[#allocation8 + $0x76c] sm:$0xf0]  ;;  %v3906_v29 = vpop.f32.mrf.mxu0 }
 0x1d4   :  { %v7323_v26 = vld [vmem:[#allocation8 + $0xe68] sm:$0xf0]  ;;  %4113 = vmatmul.bf16.vlgmr.msrb.gmra.mxu0 %v8752_v6  ;;  %v7885_v27 = vld [vmem:[#allocation8 + $0xec] sm:$0xf0]  ;;  %v6434_v32 = vor.u32 %v8093_v24, %v6433_v2 }
 0x1d5   :  { %v7326_v35 = vor.u32 %v8312_v25, %v7323_v26  ;;  %v8240_v36 = vld [vmem:[#allocation8 + $0xc0c] sm:$0xf]  ;;  %4157 = vmatpush.bf16.msra.mxu0 %v5730_v28  ;;  %4137 = vmatpush.bf16.msrb.mxu2 %v7070_v31  ;;  %v5890_v25 = vor.u32 %v7957_v13, %v5889_v12  ;;  %v5601_v26 = vld [vmem:[#allocation8 + $0xd0] sm:$0xf]  ;;  %v3894_v28 = vadd.f32 %v3893_v21, %v3881_v20 }
 0x1d6   :  { %v7035_v37 = vld [vmem:[#allocation8 + $0xc28] sm:$0xf0]  ;;  %4126 = vmatmul.bf16.vlgmr.msrb.gmra.mxu1 %v8755_v9  ;;  %v7949_v31 = vld [vmem:[#allocation8 + $0x2ec] sm:$0xf0] }
 0x1d7   :  { %v8304_v38 = vld [vmem:[#allocation8 + $0xe0c] sm:$0xf]  ;;  %4170 = vmatpush.bf16.msra.mxu1 %v5986_v30  ;;  %v7038_v53 = vor.u32 %v8240_v36, %v7035_v37  ;;  %4150 = vmatpush.bf16.msrb.mxu3 %v7326_v35  ;;  %v5857_v30 = vld [vmem:[#allocation8 + $0x2d0] sm:$0xf]  ;;  %v3907_v35 = vadd.f32 %v3906_v29, %v3894_v28  ;;  %v3919_v36 = vpop.f32.mrf.mxu1  ;;  %v5602_v37 = vor.u32 %v7885_v27, %v5601_v26 }
 0x1d8   :  { %v7291_v40 = vld [vmem:[#allocation8 + $0xe28] sm:$0xf0]  ;;  %v5569_v41 = vld [vmem:[#allocation8 + $0x90] sm:$0xf] }
 0x1d9   :  { %v7294_v57 = vor.u32 %v8304_v38, %v7291_v40  ;;  %4158 = vmatpush.bf16.msra.mxu0 %v5698_v46  ;;  %4138 = vmatpush.bf16.msrb.mxu2 %v7038_v53  ;;  %v6401_v38 = vld [vmem:[#allocation8 + $0x710] sm:$0xf]  ;;  %v5858_v40 = vor.u32 %v7949_v31, %v5857_v30  ;;  %v3920_v45 = vadd.f32 %v3919_v36, %v3907_v35 }
 0x1da   :  { %v7877_v42 = vld [vmem:[#allocation8 + $0xac] sm:$0xf0]  ;;  %v6146_v46 = vor.u32 %v8021_v34, %v6145_v33  ;;  %v6402_v53 = vor.u32 %v8085_v39, %v6401_v38 }
 0x1db   :  { %4171 = vmatpush.bf16.msra.mxu1 %v5954_v52  ;;  %4151 = vmatpush.bf16.msrb.mxu3 %v7294_v57  ;;  %v5825_v48 = vld [vmem:[#allocation8 + $0x290] sm:$0xf]  ;;  %v3882_v52 = vpop.f32.mrf.mxu2  ;;  %v3895_v56 = vpop.f32.mrf.mxu3  ;;  %v5570_v57 = vor.u32 %v7877_v42, %v5569_v41 }
 0x1dc   :  { %4139 = vmatmul.bf16.vlgmr.msrb.gmra.mxu2 %v8759_v50  ;;  %v7941_v51 = vld [vmem:[#allocation8 + $0x2ac] sm:$0xf0]  ;;  %v3908_v3 = vpop.f32.mrf.mxu0 }
 0x1dd   :  { %4183 = vmatpush.bf16.msra.mxu2 %v6242_v58  ;;  %4159 = vmatpush.bf16.msra.mxu0 %v5666_v1  ;;  %v6113_v54 = vld [vmem:[#allocation8 + $0x4d0] sm:$0xf]  ;;  %v5826_v60 = vor.u32 %v7941_v51, %v5825_v48 }
 0x1de   :  { %4152 = vmatmul.bf16.vlgmr.msrb.gmra.mxu3 %v8761_v44  ;;  %v8013_v55 = vld [vmem:[#allocation8 + $0x4ec] sm:$0xf0] }
 0x1df   :  { %4196 = vmatpush.bf16.msra.mxu3 %v6498_v62  ;;  %4172 = vmatpush.bf16.msra.mxu1 %v5922_v5  ;;  %v6369_v58 = vld [vmem:[#allocation8 + $0x6d0] sm:$0xf]  ;;  %v6114_v63 = vor.u32 %v8013_v55, %v6113_v54  ;;  %v3921_v8 = vpop.f32.mrf.mxu1 }
 0x1e0   :  { %v8077_v59 = vld [vmem:[#allocation8 + $0x6ec] sm:$0xf0] }
 0x1e1   :  { %4184 = vmatpush.bf16.msra.mxu2 %v6210_v10  ;;  %4160 = vmatpush.bf16.msra.mxu0 %v5634_v23  ;;  %v5537_v61 = vld [vmem:[#allocation8 + $0x50] sm:$0xf]  ;;  %v6370_v4 = vor.u32 %v8077_v59, %v6369_v58 }
 0x1e2   :  { %v7869_v62 = vld [vmem:[#allocation8 + $0x6c] sm:$0xf0] }
 0x1e3   :  { %4197 = vmatpush.bf16.msra.mxu3 %v6466_v16  ;;  %4173 = vmatpush.bf16.msra.mxu1 %v5890_v25  ;;  %v5793_v0 = vld [vmem:[#allocation8 + $0x250] sm:$0xf]  ;;  %v5538_v10 = vor.u32 %v7869_v62, %v5537_v61  ;;  %v3945_v30 = vpop.f32.mrf.mxu3 }
 0x1e4   :  { %v7933_v1 = vld [vmem:[#allocation8 + $0x26c] sm:$0xf0] }
 0x1e5   :  { %4185 = vmatpush.bf16.msra.mxu2 %v6178_v11  ;;  %4161 = vmatpush.bf16.msra.mxu0 %v5602_v37  ;;  %v6081_v5 = vld [vmem:[#allocation8 + $0x490] sm:$0xf]  ;;  %v5794_v16 = vor.u32 %v7933_v1, %v5793_v0  ;;  %v3932_v11 = vpop.f32.mrf.mxu2 }
 0x1e6   :  { %v8005_v7 = vld [vmem:[#allocation8 + $0x4ac] sm:$0xf0]  ;;  %v3933_v33 = vadd.f32 %v3932_v11, %v3920_v45 }
 0x1e7   :  { %4198 = vmatpush.bf16.msra.mxu3 %v6434_v32  ;;  %4174 = vmatpush.bf16.msra.mxu1 %v5858_v40  ;;  %v6337_v12 = vld [vmem:[#allocation8 + $0x690] sm:$0xf]  ;;  %v6082_v21 = vor.u32 %v8005_v7, %v6081_v5 }
 0x1e8   :  { %v8069_v13 = vld [vmem:[#allocation8 + $0x6ac] sm:$0xf0]  ;;  %v8798_v42 = vadd.f32 %v3945_v30, %v3933_v33 }
 0x1e9   :  { %4186 = vmatpush.bf16.msra.mxu2 %v6146_v46  ;;  %4162 = vmatpush.bf16.msra.mxu0 %v5570_v57  ;;  %v5505_v14 = vld [vmem:[#allocation8 + $0x10] sm:$0xf]  ;;  %v6338_v25 = vor.u32 %v8069_v13, %v6337_v12 }
 0x1ea   :  { %v7861_v18 = vld [vmem:[#allocation8 + $0x2c] sm:$0xf0] }
 0x1eb   :  { %4199 = vmatpush.bf16.msra.mxu3 %v6402_v53  ;;  %4175 = vmatpush.bf16.msra.mxu1 %v5826_v60  ;;  %v5761_v19 = vld [vmem:[#allocation8 + $0x210] sm:$0xf]  ;;  %v5506_v31 = vor.u32 %v7861_v18, %v5505_v14 }
 0x1ec   :  { %v7925_v20 = vld [vmem:[#allocation8 + $0x22c] sm:$0xf0] }
 0x1ed   :  { %4187 = vmatpush.bf16.msra.mxu2 %v6114_v63  ;;  %v6753_v23 = vld [vmem:[#allocation8 + $0x9d0] sm:$0xf]  ;;  %4163 = vmatpush.bf16.msra.mxu0 %v5538_v10  ;;  %v5762_v34 = vor.u32 %v7925_v20, %v5761_v19  ;;  %v3934_v3 = vpop.f32.mrf.mxu2 }
 0x1ee   :  { %v8173_v2 = vld [vmem:[#allocation8 + $0x9ec] sm:$0xf0] }
 0x1ef   :  { %v7009_v24 = vld [vmem:[#allocation8 + $0xbd0] sm:$0xf]  ;;  %4200 = vmatpush.bf16.msra.mxu3 %v6370_v4  ;;  %4176 = vmatpush.bf16.msra.mxu1 %v5794_v16  ;;  %v6754_v35 = vor.u32 %v8173_v2, %v6753_v23  ;;  %v3947_v4 = vpop.f32.mrf.mxu3 }
 0x1f0   :  { %v8237_v26 = vld [vmem:[#allocation8 + $0xbec] sm:$0xf0] }
 0x1f1   :  { %v6049_v27 = vld [vmem:[#allocation8 + $0x450] sm:$0xf]  ;;  %4188 = vmatpush.bf16.msra.mxu2 %v6082_v21  ;;  %v7010_v37 = vor.u32 %v8237_v26, %v7009_v24  ;;  %4164 = vmatpush.bf16.msra.mxu0 %v5506_v31 }
 0x1f2   :  { %v7997_v28 = vld [vmem:[#allocation8 + $0x46c] sm:$0xf0] }
 0x1f3   :  { %v6305_v29 = vld [vmem:[#allocation8 + $0x650] sm:$0xf]  ;;  %v6050_v38 = vor.u32 %v7997_v28, %v6049_v27  ;;  %4201 = vmatpush.bf16.msra.mxu3 %v6338_v25  ;;  %4177 = vmatpush.bf16.msra.mxu1 %v5762_v34  ;;  %v1167_v25 = vperm.slane %v8777_v47, 2  ;;  %v3958_v34 = vpop.f32.mrf.mxu0  ;;  %v3971_v47 = vpop.f32.mrf.mxu1 }
 0x1f4   :  { %v8061_v32 = vld [vmem:[#allocation8 + $0x66c] sm:$0xf0]  ;;  %4165 = vmatmul.bf16.vlgmr.msra.gmra.mxu0 %v8736_v17 }
 0x1f5   :  { %v6721_v36 = vld [vmem:[#allocation8 + $0x990] sm:$0xf]  ;;  %v6306_v46 = vor.u32 %v8061_v32, %v6305_v29  ;;  %4209 = vmatpush.bf16.msrb.mxu0 %v6754_v35  ;;  %4189 = vmatpush.bf16.msra.mxu2 %v6050_v38  ;;  %v3959_v38 = vadd.f32 %v3958_v34, %v1167_v25  ;;  %v7977_v25 = vld [vmem:[#allocation8 + $0x3d4] sm:$0xf] }
 0x1f6   :  { %v8165_v39 = vld [vmem:[#allocation8 + $0x9ac] sm:$0xf0]  ;;  %4178 = vmatmul.bf16.vlgmr.msra.gmra.mxu1 %v8739_v22 }
 0x1f7   :  { %v6977_v40 = vld [vmem:[#allocation8 + $0xb90] sm:$0xf]  ;;  %v6722_v55 = vor.u32 %v8165_v39, %v6721_v36  ;;  %4222 = vmatpush.bf16.msrb.mxu1 %v7010_v37  ;;  %4202 = vmatpush.bf16.msra.mxu3 %v6306_v46 }
 0x1f8   :  { %v8229_v41 = vld [vmem:[#allocation8 + $0xbac] sm:$0xf0] }
 0x1f9   :  { %v6017_v48 = vld [vmem:[#allocation8 + $0x410] sm:$0xf]  ;;  %v6978_v58 = vor.u32 %v8229_v41, %v6977_v40  ;;  %4210 = vmatpush.bf16.msrb.mxu0 %v6722_v55 }
 0x1fa   :  { %v7989_v51 = vld [vmem:[#allocation8 + $0x42c] sm:$0xf0] }
 0x1fb   :  { %v6273_v52 = vld [vmem:[#allocation8 + $0x610] sm:$0xf]  ;;  %v6018_v59 = vor.u32 %v7989_v51, %v6017_v48  ;;  %4223 = vmatpush.bf16.msrb.mxu1 %v6978_v58  ;;  %v3960_v4 = vpop.f32.mrf.mxu0 }
 0x1fc   :  { %v8053_v53 = vld [vmem:[#allocation8 + $0x62c] sm:$0xf0]  ;;  %v5923_v4 = vld [vmem:[#allocation8 + $0x370] sm:$0xf0] }
 0x1fd   :  { %v7265_v45 = vld [vmem:[#allocation8 + $0xdd0] sm:$0xf]  ;;  %v6274_v62 = vor.u32 %v8053_v53, %v6273_v52  ;;  %4190 = vmatpush.bf16.msra.mxu2 %v6018_v59  ;;  %v3972_v52 = vadd.f32 %v3971_v47, %v3959_v38 }
 0x1fe   :  { %v8301_v54 = vld [vmem:[#allocation8 + $0xdec] sm:$0xf0] }
 0x1ff   :  { %v7521_v56 = vld [vmem:[#allocation8 + $0xfd0] sm:$0xf]  ;;  %v7266_v63 = vor.u32 %v8301_v54, %v7265_v45  ;;  %4203 = vmatpush.bf16.msra.mxu3 %v6274_v62 }
 0x200   :  { %v8365_v57 = vld [vmem:[#allocation8 + $0xfec] sm:$0xf0]  ;;  %4191 = vmatmul.bf16.vlgmr.msra.gmra.mxu2 %v8743_v43 }
 0x201   :  { %v6689_v60 = vld [vmem:[#allocation8 + $0x950] sm:$0xf]  ;;  %v7522_v5 = vor.u32 %v8365_v57, %v7521_v56  ;;  %4235 = vmatpush.bf16.msrb.mxu2 %v7266_v63 }
 0x202   :  { %v8157_v61 = vld [vmem:[#allocation8 + $0x96c] sm:$0xf0]  ;;  %4204 = vmatmul.bf16.vlgmr.msra.gmra.mxu3 %v8745_v49 }
 0x203   :  { %v6945_v0 = vld [vmem:[#allocation8 + $0xb50] sm:$0xf]  ;;  %v6690_v10 = vor.u32 %v8157_v61, %v6689_v60  ;;  %4248 = vmatpush.bf16.msrb.mxu3 %v7522_v5 }
 0x204   :  { %v8221_v1 = vld [vmem:[#allocation8 + $0xb6c] sm:$0xf0] }
 0x205   :  { %v7233_v7 = vld [vmem:[#allocation8 + $0xd90] sm:$0xf]  ;;  %v6946_v14 = vor.u32 %v8221_v1, %v6945_v0  ;;  %4211 = vmatpush.bf16.msrb.mxu0 %v6690_v10  ;;  %v3973_v10 = vpop.f32.mrf.mxu1 }
 0x206   :  { %v8293_v8 = vld [vmem:[#allocation8 + $0xdac] sm:$0xf0]  ;;  %v6211_v10 = vld [vmem:[#allocation8 + $0x5b0] sm:$0xf0] }
 0x207   :  { %v7489_v12 = vld [vmem:[#allocation8 + $0xf90] sm:$0xf]  ;;  %v7234_v19 = vor.u32 %v8293_v8, %v7233_v7  ;;  %4224 = vmatpush.bf16.msrb.mxu1 %v6946_v14 }
 0x208   :  { %v8357_v13 = vld [vmem:[#allocation8 + $0xfac] sm:$0xf0] }
 0x209   :  { %v6657_v16 = vld [vmem:[#allocation8 + $0x910] sm:$0xf]  ;;  %v7490_v23 = vor.u32 %v8357_v13, %v7489_v12  ;;  %4236 = vmatpush.bf16.msrb.mxu2 %v7234_v19 }
 0x20a   :  { %v8149_v18 = vld [vmem:[#allocation8 + $0x92c] sm:$0xf0] }
 0x20b   :  { %v6913_v20 = vld [vmem:[#allocation8 + $0xb10] sm:$0xf]  ;;  %v6658_v26 = vor.u32 %v8149_v18, %v6657_v16  ;;  %4249 = vmatpush.bf16.msrb.mxu3 %v7490_v23 }
 0x20c   :  { %v8213_v21 = vld [vmem:[#allocation8 + $0xb2c] sm:$0xf0] }
 0x20d   :  { %v7201_v2 = vld [vmem:[#allocation8 + $0xd50] sm:$0xf]  ;;  %v6914_v11 = vor.u32 %v8213_v21, %v6913_v20  ;;  %4212 = vmatpush.bf16.msrb.mxu0 %v6658_v26  ;;  %v3984_v26 = vpop.f32.mrf.mxu2 }
 0x20e   :  { %v8285_v24 = vld [vmem:[#allocation8 + $0xd6c] sm:$0xf0] }
 0x20f   :  { %v7457_v27 = vld [vmem:[#allocation8 + $0xf50] sm:$0xf]  ;;  %v7202_v29 = vor.u32 %v8285_v24, %v7201_v2  ;;  %4225 = vmatpush.bf16.msrb.mxu1 %v6914_v11  ;;  %v7913_v2 = vld [vmem:[#allocation8 + $0x1d4] sm:$0xf] }
 0x210   :  { %v8349_v28 = vld [vmem:[#allocation8 + $0xf6c] sm:$0xf0]  ;;  %v5731_v24 = vld [vmem:[#allocation8 + $0x1f0] sm:$0xf0] }
 0x211   :  { %v6625_v30 = vld [vmem:[#allocation8 + $0x8d0] sm:$0xf]  ;;  %v7458_v35 = vor.u32 %v8349_v28, %v7457_v27  ;;  %4237 = vmatpush.bf16.msrb.mxu2 %v7202_v29  ;;  %v5987_v28 = vld [vmem:[#allocation8 + $0x3f0] sm:$0xf0]  ;;  %v3997_v29 = vpop.f32.mrf.mxu3 }
 0x212   :  { %v8141_v31 = vld [vmem:[#allocation8 + $0x8ec] sm:$0xf0]  ;;  %v5990_v47 = vor.u32 %v7977_v25, %v5987_v28  ;;  %v6179_v25 = vld [vmem:[#allocation8 + $0x570] sm:$0xf0] }
 0x213   :  { %v6881_v32 = vld [vmem:[#allocation8 + $0xad0] sm:$0xf]  ;;  %v6626_v39 = vor.u32 %v8141_v31, %v6625_v30  ;;  %4250 = vmatpush.bf16.msrb.mxu3 %v7458_v35  ;;  %v3985_v31 = vadd.f32 %v3984_v26, %v3972_v52  ;;  %v6435_v28 = vld [vmem:[#allocation8 + $0x770] sm:$0xf0] }
 0x214   :  { %v8205_v33 = vld [vmem:[#allocation8 + $0xaec] sm:$0xf0] }
 0x215   :  { %v7169_v36 = vld [vmem:[#allocation8 + $0xd10] sm:$0xf]  ;;  %v6882_v46 = vor.u32 %v8205_v33, %v6881_v32  ;;  %4213 = vmatpush.bf16.msrb.mxu0 %v6626_v39  ;;  %v8805_v38 = vadd.f32 %v3997_v29, %v3985_v31  ;;  %v5603_v31 = vld [vmem:[#allocation8 + $0xf0] sm:$0xf0] }
 0x216   :  { %v8277_v37 = vld [vmem:[#allocation8 + $0xd2c] sm:$0xf0] }
 0x217   :  { %v7425_v40 = vld [vmem:[#allocation8 + $0xf10] sm:$0xf]  ;;  %v7170_v53 = vor.u32 %v8277_v37, %v7169_v36  ;;  %4226 = vmatpush.bf16.msrb.mxu1 %v6882_v46  ;;  %v5734_v36 = vor.u32 %v7913_v2, %v5731_v24  ;;  %v7905_v37 = vld [vmem:[#allocation8 + $0x194] sm:$0xf] }
 0x218   :  { %v8341_v41 = vld [vmem:[#allocation8 + $0xf2c] sm:$0xf0]  ;;  %v5955_v46 = vld [vmem:[#allocation8 + $0x3b0] sm:$0xf0] }
 0x219   :  { %v6593_v48 = vld [vmem:[#allocation8 + $0x890] sm:$0xf]  ;;  %v7426_v55 = vor.u32 %v8341_v41, %v7425_v40  ;;  %4238 = vmatpush.bf16.msrb.mxu2 %v7170_v53  ;;  %v5699_v40 = vld [vmem:[#allocation8 + $0x1b0] sm:$0xf0] }
 0x21a   :  { %v8133_v51 = vld [vmem:[#allocation8 + $0x8ac] sm:$0xf0]  ;;  %v7969_v41 = vld [vmem:[#allocation8 + $0x394] sm:$0xf] }
 0x21b   :  { %v6849_v45 = vld [vmem:[#allocation8 + $0xa90] sm:$0xf]  ;;  %v6594_v58 = vor.u32 %v8133_v51, %v6593_v48  ;;  %4251 = vmatpush.bf16.msrb.mxu3 %v7426_v55  ;;  %v6243_v55 = vld [vmem:[#allocation8 + $0x5f0] sm:$0xf0] }
 0x21c   :  { %v8197_v54 = vld [vmem:[#allocation8 + $0xaac] sm:$0xf0]  ;;  %v8025_v24 = vld [vmem:[#allocation8 + $0x554] sm:$0xf] }
 0x21d   :  { %v7137_v56 = vld [vmem:[#allocation8 + $0xcd0] sm:$0xf]  ;;  %v6850_v61 = vor.u32 %v8197_v54, %v6849_v45  ;;  %4214 = vmatpush.bf16.msrb.mxu0 %v6594_v58  ;;  %v8041_v54 = vld [vmem:[#allocation8 + $0x5d4] sm:$0xf]  ;;  %v6182_v29 = vor.u32 %v8025_v24, %v6179_v25 }
 0x21e   :  { %v8269_v57 = vld [vmem:[#allocation8 + $0xcec] sm:$0xf0]  ;;  %v6499_v58 = vld [vmem:[#allocation8 + $0x7f0] sm:$0xf0] }
 0x21f   :  { %v7393_v59 = vld [vmem:[#allocation8 + $0xed0] sm:$0xf]  ;;  %v7138_v0 = vor.u32 %v8269_v57, %v7137_v56  ;;  %4227 = vmatpush.bf16.msrb.mxu1 %v6850_v61  ;;  %v5702_v56 = vor.u32 %v7905_v37, %v5699_v40  ;;  %v8105_v57 = vld [vmem:[#allocation8 + $0x7d4] sm:$0xf] }
 0x220   :  { %v8333_v60 = vld [vmem:[#allocation8 + $0xeec] sm:$0xf0]  ;;  %v7897_v61 = vld [vmem:[#allocation8 + $0x154] sm:$0xf] }
 0x221   :  { %v6561_v62 = vld [vmem:[#allocation8 + $0x850] sm:$0xf]  ;;  %v7394_v5 = vor.u32 %v8333_v60, %v7393_v59  ;;  %4239 = vmatpush.bf16.msrb.mxu2 %v7138_v0  ;;  %v5958_v59 = vor.u32 %v7969_v41, %v5955_v46  ;;  %v6147_v37 = vld [vmem:[#allocation8 + $0x530] sm:$0xf0] }
 0x222   :  { %v8125_v63 = vld [vmem:[#allocation8 + $0x86c] sm:$0xf0]  ;;  %v8081_v41 = vld [vmem:[#allocation8 + $0x714] sm:$0xf] }
 0x223   :  { %v6817_v1 = vld [vmem:[#allocation8 + $0xa50] sm:$0xf]  ;;  %v6562_v12 = vor.u32 %v8125_v63, %v6561_v62  ;;  %4252 = vmatpush.bf16.msrb.mxu3 %v7394_v5  ;;  %v5667_v62 = vld [vmem:[#allocation8 + $0x170] sm:$0xf0]  ;;  %v3986_v63 = vpop.f32.mrf.mxu2  ;;  %v3999_v5 = vpop.f32.mrf.mxu3 }
 0x224   :  { %v8189_v3 = vld [vmem:[#allocation8 + $0xa6c] sm:$0xf0]  ;;  %v6403_v46 = vld [vmem:[#allocation8 + $0x730] sm:$0xf0] }
 0x225   :  { %v7105_v7 = vld [vmem:[#allocation8 + $0xc90] sm:$0xf]  ;;  %v6818_v18 = vor.u32 %v8189_v3, %v6817_v1  ;;  %4215 = vmatpush.bf16.msrb.mxu0 %v6562_v12  ;;  %v6246_v1 = vor.u32 %v8041_v54, %v6243_v55  ;;  %v7961_v3 = vld [vmem:[#allocation8 + $0x354] sm:$0xf]  ;;  %v5670_v12 = vor.u32 %v7897_v61, %v5667_v62 }
 0x226   :  { %v8261_v8 = vld [vmem:[#allocation8 + $0xcac] sm:$0xf0]  ;;  %v7937_v54 = vld [vmem:[#allocation8 + $0x294] sm:$0xf] }
 0x227   :  { %v7361_v13 = vld [vmem:[#allocation8 + $0xe90] sm:$0xf]  ;;  %v7106_v23 = vor.u32 %v8261_v8, %v7105_v7  ;;  %4228 = vmatpush.bf16.msrb.mxu1 %v6818_v18  ;;  %v6502_v7 = vor.u32 %v8105_v57, %v6499_v58  ;;  %v8033_v8 = vld [vmem:[#allocation8 + $0x594] sm:$0xf] }
 0x228   :  { %v8325_v14 = vld [vmem:[#allocation8 + $0xeac] sm:$0xf0]  ;;  %v7889_v18 = vld [vmem:[#allocation8 + $0x114] sm:$0xf] }
 0x229   :  { %v6529_v16 = vld [vmem:[#allocation8 + $0x810] sm:$0xf]  ;;  %v7362_v27 = vor.u32 %v8325_v14, %v7361_v13  ;;  %4240 = vmatpush.bf16.msrb.mxu2 %v7106_v23  ;;  %v8097_v13 = vld [vmem:[#allocation8 + $0x794] sm:$0xf] }
 0x22a   :  { %v8117_v19 = vld [vmem:[#allocation8 + $0x82c] sm:$0xf0]  ;;  %v6467_v14 = vld [vmem:[#allocation8 + $0x7b0] sm:$0xf0] }
 0x22b   :  { %v6785_v20 = vld [vmem:[#allocation8 + $0xa10] sm:$0xf]  ;;  %v6530_v32 = vor.u32 %v8117_v19, %v6529_v16  ;;  %4253 = vmatpush.bf16.msrb.mxu3 %v7362_v27  ;;  %v5926_v16 = vor.u32 %v7961_v3, %v5923_v4  ;;  %v5635_v19 = vld [vmem:[#allocation8 + $0x130] sm:$0xf0]  ;;  %v6470_v2 = vor.u32 %v8097_v13, %v6467_v14 }
 0x22c   :  { %v8181_v21 = vld [vmem:[#allocation8 + $0xa2c] sm:$0xf0]  ;;  %v5891_v23 = vld [vmem:[#allocation8 + $0x330] sm:$0xf0]  ;;  %v5638_v26 = vor.u32 %v7889_v18, %v5635_v19 }
 0x22d   :  { %v7073_v11 = vld [vmem:[#allocation8 + $0xc50] sm:$0xf]  ;;  %v6786_v35 = vor.u32 %v8181_v21, %v6785_v20  ;;  %4216 = vmatpush.bf16.msrb.mxu0 %v6530_v32  ;;  %v6214_v20 = vor.u32 %v8033_v8, %v6211_v10  ;;  %v7953_v21 = vld [vmem:[#allocation8 + $0x314] sm:$0xf] }
 0x22e   :  { %v8253_v30 = vld [vmem:[#allocation8 + $0xc6c] sm:$0xf0]  ;;  %v8089_v27 = vld [vmem:[#allocation8 + $0x754] sm:$0xf] }
 0x22f   :  { %v7329_v33 = vld [vmem:[#allocation8 + $0xe50] sm:$0xf]  ;;  %v7074_v39 = vor.u32 %v8253_v30, %v7073_v11  ;;  %4229 = vmatpush.bf16.msrb.mxu1 %v6786_v35  ;;  %v5894_v11 = vor.u32 %v7953_v21, %v5891_v23  ;;  %v7881_v30 = vld [vmem:[#allocation8 + $0xd4] sm:$0xf]  ;;  %v6438_v35 = vor.u32 %v8089_v27, %v6435_v28 }
 0x230   :  { %v8317_v34 = vld [vmem:[#allocation8 + $0xe6c] sm:$0xf0]  ;;  %4217 = vmatmul.bf16.vlgmr.msrb.gmra.mxu0 %v8752_v6  ;;  %v7945_v32 = vld [vmem:[#allocation8 + $0x2d4] sm:$0xf]  ;;  %v5606_v40 = vor.u32 %v7881_v30, %v5603_v31 }
 0x231   :  { %v7330_v48 = vor.u32 %v8317_v34, %v7329_v33  ;;  %v7041_v51 = vld [vmem:[#allocation8 + $0xc10] sm:$0xf]  ;;  %4261 = vmatpush.bf16.msra.mxu0 %v5734_v36  ;;  %4241 = vmatpush.bf16.msrb.mxu2 %v7074_v39  ;;  %v5859_v33 = vld [vmem:[#allocation8 + $0x2f0] sm:$0xf0]  ;;  %v4010_v34 = vpop.f32.mrf.mxu0  ;;  %v4023_v39 = vpop.f32.mrf.mxu1 }
 0x232   :  { %v8245_v52 = vld [vmem:[#allocation8 + $0xc2c] sm:$0xf0]  ;;  %4230 = vmatmul.bf16.vlgmr.msrb.gmra.mxu1 %v8755_v9  ;;  %v8017_v36 = vld [vmem:[#allocation8 + $0x514] sm:$0xf] }
 0x233   :  { %v7297_v53 = vld [vmem:[#allocation8 + $0xe10] sm:$0xf]  ;;  %4274 = vmatpush.bf16.msra.mxu1 %v5990_v47  ;;  %v7042_v60 = vor.u32 %v8245_v52, %v7041_v51  ;;  %4254 = vmatpush.bf16.msrb.mxu3 %v7330_v48  ;;  %v4011_v47 = vadd.f32 %v4010_v34, %v8805_v38  ;;  %v5862_v48 = vor.u32 %v7945_v32, %v5859_v33  ;;  %v7873_v51 = vld [vmem:[#allocation8 + $0x94] sm:$0xf] }
 0x234   :  { %v8309_v45 = vld [vmem:[#allocation8 + $0xe2c] sm:$0xf0]  ;;  %v5571_v52 = vld [vmem:[#allocation8 + $0xb0] sm:$0xf0] }
 0x235   :  { %v7298_v0 = vor.u32 %v8309_v45, %v7297_v53  ;;  %4262 = vmatpush.bf16.msra.mxu0 %v5702_v56  ;;  %4242 = vmatpush.bf16.msrb.mxu2 %v7042_v60  ;;  %v4024_v53 = vadd.f32 %v4023_v39, %v4011_v47  ;;  %v6150_v45 = vor.u32 %v8017_v36, %v6147_v37  ;;  %v5827_v55 = vld [vmem:[#allocation8 + $0x2b0] sm:$0xf0] }
 0x236   :  { %v6406_v56 = vor.u32 %v8081_v41, %v6403_v46  ;;  %v8009_v57 = vld [vmem:[#allocation8 + $0x4d4] sm:$0xf]  ;;  %v5574_v38 = vor.u32 %v7873_v51, %v5571_v52  ;;  %v5830_v61 = vor.u32 %v7937_v54, %v5827_v55 }
 0x237   :  { %4275 = vmatpush.bf16.msra.mxu1 %v5958_v59  ;;  %4255 = vmatpush.bf16.msrb.mxu3 %v7298_v0  ;;  %v6115_v58 = vld [vmem:[#allocation8 + $0x4f0] sm:$0xf0] }
 0x238   :  { %4243 = vmatmul.bf16.vlgmr.msrb.gmra.mxu2 %v8759_v50  ;;  %v8073_v59 = vld [vmem:[#allocation8 + $0x6d4] sm:$0xf]  ;;  %v6118_v0 = vor.u32 %v8009_v57, %v6115_v58 }
 0x239   :  { %4287 = vmatpush.bf16.msra.mxu2 %v6246_v1  ;;  %4263 = vmatpush.bf16.msra.mxu0 %v5670_v12  ;;  %v6371_v60 = vld [vmem:[#allocation8 + $0x6f0] sm:$0xf0]  ;;  %v4012_v4 = vpop.f32.mrf.mxu0  ;;  %v4025_v10 = vpop.f32.mrf.mxu1 }
 0x23a   :  { %4256 = vmatmul.bf16.vlgmr.msrb.gmra.mxu3 %v8761_v44  ;;  %v7865_v62 = vld [vmem:[#allocation8 + $0x54] sm:$0xf]  ;;  %v6374_v5 = vor.u32 %v8073_v59, %v6371_v60 }
 0x23b   :  { %4300 = vmatpush.bf16.msra.mxu3 %v6502_v7  ;;  %4276 = vmatpush.bf16.msra.mxu1 %v5926_v16  ;;  %v5539_v63 = vld [vmem:[#allocation8 + $0x70] sm:$0xf0] }
 0x23c   :  { %v7929_v1 = vld [vmem:[#allocation8 + $0x254] sm:$0xf]  ;;  %v5542_v12 = vor.u32 %v7865_v62, %v5539_v63 }
 0x23d   :  { %4288 = vmatpush.bf16.msra.mxu2 %v6214_v20  ;;  %4264 = vmatpush.bf16.msra.mxu0 %v5638_v26  ;;  %v5795_v3 = vld [vmem:[#allocation8 + $0x270] sm:$0xf0]  ;;  %v4036_v26 = vpop.f32.mrf.mxu2 }
 0x23e   :  { %v8001_v7 = vld [vmem:[#allocation8 + $0x494] sm:$0xf]  ;;  %v5798_v18 = vor.u32 %v7929_v1, %v5795_v3  ;;  %v4037_v31 = vadd.f32 %v4036_v26, %v4024_v53  ;;  %v8817_v26 = vld [vmem:[#allocation10] sm:$0xff] }
 0x23f   :  { %4301 = vmatpush.bf16.msra.mxu3 %v6470_v2  ;;  %4277 = vmatpush.bf16.msra.mxu1 %v5894_v11  ;;  %v6083_v8 = vld [vmem:[#allocation8 + $0x4b0] sm:$0xf0] }
 0x240   :  { %v8065_v13 = vld [vmem:[#allocation8 + $0x694] sm:$0xf]  ;;  %v6086_v23 = vor.u32 %v8001_v7, %v6083_v8 }
 0x241   :  { %4289 = vmatpush.bf16.msra.mxu2 %v6182_v29  ;;  %4265 = vmatpush.bf16.msra.mxu0 %v5606_v40  ;;  %v6339_v14 = vld [vmem:[#allocation8 + $0x6b0] sm:$0xf0]  ;;  %v4049_v29 = vpop.f32.mrf.mxu3 }
 0x242   :  { %v7857_v16 = vld [vmem:[#allocation8 + $0x14] sm:$0xf]  ;;  %v6342_v27 = vor.u32 %v8065_v13, %v6339_v14  ;;  %v8812_v47 = vadd.f32 %v4049_v29, %v4037_v31 }
 0x243   :  { %4302 = vmatpush.bf16.msra.mxu3 %v6438_v35  ;;  %4278 = vmatpush.bf16.msra.mxu1 %v5862_v48  ;;  %v5507_v19 = vld [vmem:[#allocation8 + $0x30] sm:$0xf0] }
 0x244   :  { %v7921_v20 = vld [vmem:[#allocation8 + $0x214] sm:$0xf]  ;;  %v5510_v32 = vor.u32 %v7857_v16, %v5507_v19 }
 0x245   :  { %4290 = vmatpush.bf16.msra.mxu2 %v6150_v45  ;;  %4266 = vmatpush.bf16.msra.mxu0 %v5574_v38  ;;  %v5763_v21 = vld [vmem:[#allocation8 + $0x230] sm:$0xf0]  ;;  %v4038_v63 = vpop.f32.mrf.mxu2 }
 0x246   :  { %v8169_v2 = vld [vmem:[#allocation8 + $0x9d4] sm:$0xf]  ;;  %v5766_v35 = vor.u32 %v7921_v20, %v5763_v21 }
 0x247   :  { %4303 = vmatpush.bf16.msra.mxu3 %v6406_v56  ;;  %4279 = vmatpush.bf16.msra.mxu1 %v5830_v61  ;;  %v6755_v24 = vld [vmem:[#allocation8 + $0x9f0] sm:$0xf0] }
 0x248   :  { %v8233_v25 = vld [vmem:[#allocation8 + $0xbd4] sm:$0xf]  ;;  %v6758_v36 = vor.u32 %v8169_v2, %v6755_v24 }
 0x249   :  { %4291 = vmatpush.bf16.msra.mxu2 %v6118_v0  ;;  %v7011_v28 = vld [vmem:[#allocation8 + $0xbf0] sm:$0xf0]  ;;  %4267 = vmatpush.bf16.msra.mxu0 %v5542_v12 }
 0x24a   :  { %v7993_v11 = vld [vmem:[#allocation8 + $0x454] sm:$0xf]  ;;  %v7014_v39 = vor.u32 %v8233_v25, %v7011_v28 }
 0x24b   :  { %4304 = vmatpush.bf16.msra.mxu3 %v6374_v5  ;;  %v6051_v30 = vld [vmem:[#allocation8 + $0x470] sm:$0xf0]  ;;  %4280 = vmatpush.bf16.msra.mxu1 %v5798_v18  ;;  %v4051_v5 = vpop.f32.mrf.mxu3 }
 0x24c   :  { %v8057_v33 = vld [vmem:[#allocation8 + $0x654] sm:$0xf]  ;;  %v6054_v40 = vor.u32 %v7993_v11, %v6051_v30 }
 0x24d   :  { %v6307_v34 = vld [vmem:[#allocation8 + $0x670] sm:$0xf0]  ;;  %4292 = vmatpush.bf16.msra.mxu2 %v6086_v23  ;;  %4268 = vmatpush.bf16.msra.mxu0 %v5510_v32 }
 0x24e   :  { %v8161_v37 = vld [vmem:[#allocation8 + $0x994] sm:$0xf]  ;;  %v6310_v51 = vor.u32 %v8057_v33, %v6307_v34 }
 0x24f   :  { %v6723_v41 = vld [vmem:[#allocation8 + $0x9b0] sm:$0xf0]  ;;  %4305 = vmatpush.bf16.msra.mxu3 %v6342_v27  ;;  %4281 = vmatpush.bf16.msra.mxu1 %v5766_v35  ;;  %v1168_v27 = vperm.slane %v8817_v26, 3 }
 0x250   :  { %v8225_v46 = vld [vmem:[#allocation8 + $0xb94] sm:$0xf]  ;;  %v6726_v57 = vor.u32 %v8161_v37, %v6723_v41  ;;  %4269 = vmatmul.bf16.vlgmr.msra.gmra.mxu0 %v8736_v17 }
 0x251   :  { %v6979_v48 = vld [vmem:[#allocation8 + $0xbb0] sm:$0xf0]  ;;  %4313 = vmatpush.bf16.msrb.mxu0 %v6758_v36  ;;  %4293 = vmatpush.bf16.msra.mxu2 %v6054_v40  ;;  %v4062_v36 = vpop.f32.mrf.mxu0 }
 0x252   :  { %v7985_v52 = vld [vmem:[#allocation8 + $0x414] sm:$0xf]  ;;  %v6982_v59 = vor.u32 %v8225_v46, %v6979_v48  ;;  %4282 = vmatmul.bf16.vlgmr.msra.gmra.mxu1 %v8739_v22  ;;  %v4063_v41 = vadd.f32 %v4062_v36, %v1168_v27  ;;  %v4075_v46 = vpop.f32.mrf.mxu1  ;;  %v5737_v27 = vld [vmem:[#allocation8 + $0x1d8] sm:$0xf] }
 0x253   :  { %v6019_v53 = vld [vmem:[#allocation8 + $0x430] sm:$0xf0]  ;;  %4326 = vmatpush.bf16.msrb.mxu1 %v7014_v39  ;;  %4306 = vmatpush.bf16.msra.mxu3 %v6310_v51 }
 0x254   :  { %v8049_v45 = vld [vmem:[#allocation8 + $0x614] sm:$0xf]  ;;  %v6022_v60 = vor.u32 %v7985_v52, %v6019_v53 }
 0x255   :  { %v6275_v54 = vld [vmem:[#allocation8 + $0x630] sm:$0xf0]  ;;  %4314 = vmatpush.bf16.msrb.mxu0 %v6726_v57 }
 0x256   :  { %v8297_v55 = vld [vmem:[#allocation8 + $0xdd4] sm:$0xf]  ;;  %v6278_v0 = vor.u32 %v8049_v45, %v6275_v54  ;;  %4294 = vmatpush.bf16.msra.mxu2 %v6022_v60 }
 0x257   :  { %v7267_v56 = vld [vmem:[#allocation8 + $0xdf0] sm:$0xf0]  ;;  %4327 = vmatpush.bf16.msrb.mxu1 %v6982_v59 }
 0x258   :  { %v8361_v58 = vld [vmem:[#allocation8 + $0xfd4] sm:$0xf]  ;;  %v7270_v1 = vor.u32 %v8297_v55, %v7267_v56  ;;  %4307 = vmatpush.bf16.msra.mxu3 %v6278_v0  ;;  %v4076_v55 = vadd.f32 %v4075_v46, %v4063_v41  ;;  %v5705_v46 = vld [vmem:[#allocation8 + $0x198] sm:$0xf] }
 0x259   :  { %v7523_v38 = vld [vmem:[#allocation8 + $0xff0] sm:$0xf0]  ;;  %4295 = vmatmul.bf16.vlgmr.msra.gmra.mxu2 %v8743_v43 }
 0x25a   :  { %v8153_v61 = vld [vmem:[#allocation8 + $0x954] sm:$0xf]  ;;  %v7526_v7 = vor.u32 %v8361_v58, %v7523_v38  ;;  %4339 = vmatpush.bf16.msrb.mxu2 %v7270_v1 }
 0x25b   :  { %v6691_v62 = vld [vmem:[#allocation8 + $0x970] sm:$0xf0]  ;;  %4308 = vmatmul.bf16.vlgmr.msra.gmra.mxu3 %v8745_v49 }
 0x25c   :  { %v8217_v3 = vld [vmem:[#allocation8 + $0xb54] sm:$0xf]  ;;  %v6694_v12 = vor.u32 %v8153_v61, %v6691_v62  ;;  %4352 = vmatpush.bf16.msrb.mxu3 %v7526_v7 }
 0x25d   :  { %v6947_v4 = vld [vmem:[#allocation8 + $0xb70] sm:$0xf0] }
 0x25e   :  { %v8289_v8 = vld [vmem:[#allocation8 + $0xd94] sm:$0xf]  ;;  %v6950_v16 = vor.u32 %v8217_v3, %v6947_v4  ;;  %4315 = vmatpush.bf16.msrb.mxu0 %v6694_v12 }
 0x25f   :  { %v7235_v10 = vld [vmem:[#allocation8 + $0xdb0] sm:$0xf0] }
 0x260   :  { %v8353_v13 = vld [vmem:[#allocation8 + $0xf94] sm:$0xf]  ;;  %v7238_v20 = vor.u32 %v8289_v8, %v7235_v10  ;;  %4328 = vmatpush.bf16.msrb.mxu1 %v6950_v16  ;;  %v4064_v8 = vpop.f32.mrf.mxu0 }
 0x261   :  { %v7491_v14 = vld [vmem:[#allocation8 + $0xfb0] sm:$0xf0] }
 0x262   :  { %v8145_v18 = vld [vmem:[#allocation8 + $0x914] sm:$0xf]  ;;  %v7494_v2 = vor.u32 %v8353_v13, %v7491_v14  ;;  %4340 = vmatpush.bf16.msrb.mxu2 %v7238_v20  ;;  %v4077_v14 = vpop.f32.mrf.mxu1 }
 0x263   :  { %v6659_v19 = vld [vmem:[#allocation8 + $0x930] sm:$0xf0] }
 0x264   :  { %v8209_v21 = vld [vmem:[#allocation8 + $0xb14] sm:$0xf]  ;;  %v6662_v28 = vor.u32 %v8145_v18, %v6659_v19  ;;  %4353 = vmatpush.bf16.msrb.mxu3 %v7494_v2 }
 0x265   :  { %v6915_v23 = vld [vmem:[#allocation8 + $0xb30] sm:$0xf0] }
 0x266   :  { %v8281_v24 = vld [vmem:[#allocation8 + $0xd54] sm:$0xf]  ;;  %v6918_v31 = vor.u32 %v8209_v21, %v6915_v23  ;;  %4316 = vmatpush.bf16.msrb.mxu0 %v6662_v28  ;;  %v7918_v28 = vld [vmem:[#allocation8 + $0x1f4] sm:$0xf0] }
 0x267   :  { %v7203_v25 = vld [vmem:[#allocation8 + $0xd70] sm:$0xf0]  ;;  %v5738_v41 = vor.u32 %v7918_v28, %v5737_v27  ;;  %v5897_v27 = vld [vmem:[#allocation8 + $0x318] sm:$0xf] }
 0x268   :  { %v8345_v11 = vld [vmem:[#allocation8 + $0xf54] sm:$0xf]  ;;  %v7206_v33 = vor.u32 %v8281_v24, %v7203_v25  ;;  %4329 = vmatpush.bf16.msrb.mxu1 %v6918_v31  ;;  %v7958_v28 = vld [vmem:[#allocation8 + $0x334] sm:$0xf0] }
 0x269   :  { %v7459_v30 = vld [vmem:[#allocation8 + $0xf70] sm:$0xf0] }
 0x26a   :  { %v8137_v29 = vld [vmem:[#allocation8 + $0x8d4] sm:$0xf]  ;;  %v7462_v37 = vor.u32 %v8345_v11, %v7459_v30  ;;  %4341 = vmatpush.bf16.msrb.mxu2 %v7206_v33  ;;  %v5993_v11 = vld [vmem:[#allocation8 + $0x3d8] sm:$0xf]  ;;  %v4088_v30 = vpop.f32.mrf.mxu2 }
 0x26b   :  { %v6627_v32 = vld [vmem:[#allocation8 + $0x8f0] sm:$0xf0] }
 0x26c   :  { %v8201_v34 = vld [vmem:[#allocation8 + $0xad4] sm:$0xf]  ;;  %v6630_v48 = vor.u32 %v8137_v29, %v6627_v32  ;;  %4354 = vmatpush.bf16.msrb.mxu3 %v7462_v37  ;;  %v7982_v29 = vld [vmem:[#allocation8 + $0x3f4] sm:$0xf0] }
 0x26d   :  { %v6883_v35 = vld [vmem:[#allocation8 + $0xaf0] sm:$0xf0] }
 0x26e   :  { %v8273_v39 = vld [vmem:[#allocation8 + $0xd14] sm:$0xf]  ;;  %v6886_v53 = vor.u32 %v8201_v34, %v6883_v35  ;;  %4317 = vmatpush.bf16.msrb.mxu0 %v6630_v48  ;;  %v4089_v34 = vadd.f32 %v4088_v30, %v4076_v55  ;;  %v4101_v35 = vpop.f32.mrf.mxu3  ;;  %v6185_v30 = vld [vmem:[#allocation8 + $0x558] sm:$0xf] }
 0x26f   :  { %v7171_v40 = vld [vmem:[#allocation8 + $0xd30] sm:$0xf0] }
 0x270   :  { %v8337_v51 = vld [vmem:[#allocation8 + $0xf14] sm:$0xf]  ;;  %v7174_v56 = vor.u32 %v8273_v39, %v7171_v40  ;;  %4330 = vmatpush.bf16.msrb.mxu1 %v6886_v53  ;;  %v8821_v48 = vadd.f32 %v4101_v35, %v4089_v34  ;;  %v7910_v53 = vld [vmem:[#allocation8 + $0x1b4] sm:$0xf0]  ;;  %v5898_v34 = vor.u32 %v7958_v28, %v5897_v27 }
 0x271   :  { %v7427_v52 = vld [vmem:[#allocation8 + $0xf30] sm:$0xf0]  ;;  %v5609_v35 = vld [vmem:[#allocation8 + $0xd8] sm:$0xf] }
 0x272   :  { %v8129_v45 = vld [vmem:[#allocation8 + $0x894] sm:$0xf]  ;;  %v7430_v38 = vor.u32 %v8337_v51, %v7427_v52  ;;  %4342 = vmatpush.bf16.msrb.mxu2 %v7174_v56  ;;  %v5994_v51 = vor.u32 %v7982_v29, %v5993_v11  ;;  %v7862_v27 = vld [vmem:[#allocation8 + $0x34] sm:$0xf0] }
 0x273   :  { %v6595_v54 = vld [vmem:[#allocation8 + $0x8b0] sm:$0xf0]  ;;  %v5769_v28 = vld [vmem:[#allocation8 + $0x218] sm:$0xf] }
 0x274   :  { %v8193_v57 = vld [vmem:[#allocation8 + $0xa94] sm:$0xf]  ;;  %v6598_v61 = vor.u32 %v8129_v45, %v6595_v54  ;;  %4355 = vmatpush.bf16.msrb.mxu3 %v7430_v38  ;;  %v5961_v45 = vld [vmem:[#allocation8 + $0x398] sm:$0xf] }
 0x275   :  { %v6851_v58 = vld [vmem:[#allocation8 + $0xab0] sm:$0xf0]  ;;  %v7974_v54 = vld [vmem:[#allocation8 + $0x3b4] sm:$0xf0] }
 0x276   :  { %v8265_v59 = vld [vmem:[#allocation8 + $0xcd4] sm:$0xf]  ;;  %v6854_v0 = vor.u32 %v8193_v57, %v6851_v58  ;;  %4318 = vmatpush.bf16.msrb.mxu0 %v6598_v61  ;;  %v5706_v61 = vor.u32 %v7910_v53, %v5705_v46 }
 0x277   :  { %v7139_v60 = vld [vmem:[#allocation8 + $0xcf0] sm:$0xf0] }
 0x278   :  { %v8329_v62 = vld [vmem:[#allocation8 + $0xed4] sm:$0xf]  ;;  %v7142_v4 = vor.u32 %v8265_v59, %v7139_v60  ;;  %4331 = vmatpush.bf16.msrb.mxu1 %v6854_v0  ;;  %v6249_v59 = vld [vmem:[#allocation8 + $0x5d8] sm:$0xf]  ;;  %v5962_v0 = vor.u32 %v7974_v54, %v5961_v45  ;;  %v4127_v45 = vpop.f32.mrf.mxu1 }
 0x279   :  { %v7395_v63 = vld [vmem:[#allocation8 + $0xef0] sm:$0xf0]  ;;  %v8046_v60 = vld [vmem:[#allocation8 + $0x5f4] sm:$0xf0] }
 0x27a   :  { %v8121_v1 = vld [vmem:[#allocation8 + $0x854] sm:$0xf]  ;;  %v7398_v10 = vor.u32 %v8329_v62, %v7395_v63  ;;  %4343 = vmatpush.bf16.msrb.mxu2 %v7142_v4  ;;  %v6505_v62 = vld [vmem:[#allocation8 + $0x7d8] sm:$0xf]  ;;  %v6250_v8 = vor.u32 %v8046_v60, %v6249_v59 }
 0x27b   :  { %v6563_v3 = vld [vmem:[#allocation8 + $0x870] sm:$0xf0]  ;;  %v8110_v63 = vld [vmem:[#allocation8 + $0x7f4] sm:$0xf0] }
 0x27c   :  { %v8185_v5 = vld [vmem:[#allocation8 + $0xa54] sm:$0xf]  ;;  %v6566_v16 = vor.u32 %v8121_v1, %v6563_v3  ;;  %4356 = vmatpush.bf16.msrb.mxu3 %v7398_v10  ;;  %v5673_v3 = vld [vmem:[#allocation8 + $0x158] sm:$0xf]  ;;  %v6506_v14 = vor.u32 %v8110_v63, %v6505_v62 }
 0x27d   :  { %v6819_v7 = vld [vmem:[#allocation8 + $0xa70] sm:$0xf0]  ;;  %v7902_v4 = vld [vmem:[#allocation8 + $0x174] sm:$0xf0] }
 0x27e   :  { %v8257_v12 = vld [vmem:[#allocation8 + $0xc94] sm:$0xf]  ;;  %v6822_v21 = vor.u32 %v8185_v5, %v6819_v7  ;;  %4319 = vmatpush.bf16.msrb.mxu0 %v6566_v16  ;;  %v4090_v5 = vpop.f32.mrf.mxu2  ;;  %v5929_v10 = vld [vmem:[#allocation8 + $0x358] sm:$0xf] }
 0x27f   :  { %v7107_v13 = vld [vmem:[#allocation8 + $0xcb0] sm:$0xf0]  ;;  %v6217_v16 = vld [vmem:[#allocation8 + $0x598] sm:$0xf] }
 0x280   :  { %v8321_v18 = vld [vmem:[#allocation8 + $0xe94] sm:$0xf]  ;;  %v7110_v25 = vor.u32 %v8257_v12, %v7107_v13  ;;  %4332 = vmatpush.bf16.msrb.mxu1 %v6822_v21  ;;  %v7966_v12 = vld [vmem:[#allocation8 + $0x374] sm:$0xf0]  ;;  %v4103_v13 = vpop.f32.mrf.mxu3 }
 0x281   :  { %v7363_v19 = vld [vmem:[#allocation8 + $0xeb0] sm:$0xf0]  ;;  %v8102_v21 = vld [vmem:[#allocation8 + $0x7b4] sm:$0xf0] }
 0x282   :  { %v8113_v20 = vld [vmem:[#allocation8 + $0x814] sm:$0xf]  ;;  %v7366_v31 = vor.u32 %v8321_v18, %v7363_v19  ;;  %4344 = vmatpush.bf16.msrb.mxu2 %v7110_v25  ;;  %v8038_v18 = vld [vmem:[#allocation8 + $0x5b4] sm:$0xf0]  ;;  %v5674_v19 = vor.u32 %v7902_v4, %v5673_v3 }
 0x283   :  { %v6531_v23 = vld [vmem:[#allocation8 + $0x830] sm:$0xf0]  ;;  %v6218_v25 = vor.u32 %v8038_v18, %v6217_v16  ;;  %v7942_v62 = vld [vmem:[#allocation8 + $0x2b4] sm:$0xf0] }
 0x284   :  { %v8177_v2 = vld [vmem:[#allocation8 + $0xa14] sm:$0xf]  ;;  %v6534_v36 = vor.u32 %v8113_v20, %v6531_v23  ;;  %4357 = vmatpush.bf16.msrb.mxu3 %v7366_v31  ;;  %v6473_v20 = vld [vmem:[#allocation8 + $0x798] sm:$0xf]  ;;  %v5930_v23 = vor.u32 %v7966_v12, %v5929_v10 }
 0x285   :  { %v6787_v24 = vld [vmem:[#allocation8 + $0xa30] sm:$0xf0]  ;;  %v6474_v11 = vor.u32 %v8102_v21, %v6473_v20  ;;  %v8030_v31 = vld [vmem:[#allocation8 + $0x574] sm:$0xf0]  ;;  %v4129_v20 = vpop.f32.mrf.mxu1 }
 0x286   :  { %v8249_v32 = vld [vmem:[#allocation8 + $0xc54] sm:$0xf]  ;;  %v6790_v40 = vor.u32 %v8177_v2, %v6787_v24  ;;  %4320 = vmatpush.bf16.msrb.mxu0 %v6534_v36  ;;  %v5641_v2 = vld [vmem:[#allocation8 + $0x118] sm:$0xf] }
 0x287   :  { %v7075_v33 = vld [vmem:[#allocation8 + $0xc70] sm:$0xf0]  ;;  %v7894_v24 = vld [vmem:[#allocation8 + $0x134] sm:$0xf0] }
 0x288   :  { %v8313_v37 = vld [vmem:[#allocation8 + $0xe54] sm:$0xf]  ;;  %v7078_v52 = vor.u32 %v8249_v32, %v7075_v33  ;;  %4333 = vmatpush.bf16.msrb.mxu1 %v6790_v40  ;;  %v5642_v29 = vor.u32 %v7894_v24, %v5641_v2  ;;  %v6441_v32 = vld [vmem:[#allocation8 + $0x758] sm:$0xf] }
 0x289   :  { %v7331_v39 = vld [vmem:[#allocation8 + $0xe70] sm:$0xf0]  ;;  %4321 = vmatmul.bf16.vlgmr.msrb.gmra.mxu0 %v8752_v6  ;;  %v8094_v33 = vld [vmem:[#allocation8 + $0x774] sm:$0xf0] }
 0x28a   :  { %v7334_v56 = vor.u32 %v8313_v37, %v7331_v39  ;;  %v8241_v55 = vld [vmem:[#allocation8 + $0xc14] sm:$0xf]  ;;  %4365 = vmatpush.bf16.msra.mxu0 %v5738_v41  ;;  %4345 = vmatpush.bf16.msrb.mxu2 %v7078_v52  ;;  %v7886_v36 = vld [vmem:[#allocation8 + $0xf4] sm:$0xf0]  ;;  %v6186_v37 = vor.u32 %v8030_v31, %v6185_v30  ;;  %v4114_v41 = vpop.f32.mrf.mxu0  ;;  %v6442_v46 = vor.u32 %v8094_v33, %v6441_v32  ;;  %v4140_v33 = vpop.f32.mrf.mxu2 }
 0x28b   :  { %v7043_v57 = vld [vmem:[#allocation8 + $0xc30] sm:$0xf0]  ;;  %4334 = vmatmul.bf16.vlgmr.msrb.gmra.mxu1 %v8755_v9  ;;  %v5865_v39 = vld [vmem:[#allocation8 + $0x2d8] sm:$0xf]  ;;  %v4115_v53 = vadd.f32 %v4114_v41, %v8821_v48  ;;  %v5610_v54 = vor.u32 %v7886_v36, %v5609_v35 }
 0x28c   :  { %v8305_v58 = vld [vmem:[#allocation8 + $0xe14] sm:$0xf]  ;;  %4378 = vmatpush.bf16.msra.mxu1 %v5994_v51  ;;  %v7046_v1 = vor.u32 %v8241_v55, %v7043_v57  ;;  %4358 = vmatpush.bf16.msrb.mxu3 %v7334_v56  ;;  %v7950_v40 = vld [vmem:[#allocation8 + $0x2f4] sm:$0xf0] }
 0x28d   :  { %v7299_v38 = vld [vmem:[#allocation8 + $0xe30] sm:$0xf0]  ;;  %v6153_v51 = vld [vmem:[#allocation8 + $0x518] sm:$0xf]  ;;  %v5866_v57 = vor.u32 %v7950_v40, %v5865_v39  ;;  %v4128_v59 = vadd.f32 %v4127_v45, %v4115_v53  ;;  %v4153_v40 = vpop.f32.mrf.mxu3 }
 0x28e   :  { %v7302_v7 = vor.u32 %v8305_v58, %v7299_v38  ;;  %4366 = vmatpush.bf16.msra.mxu0 %v5706_v61  ;;  %4346 = vmatpush.bf16.msrb.mxu2 %v7046_v1  ;;  %v8022_v52 = vld [vmem:[#allocation8 + $0x534] sm:$0xf0] }
 0x28f   :  { %v6409_v56 = vld [vmem:[#allocation8 + $0x718] sm:$0xf]  ;;  %v6154_v60 = vor.u32 %v8022_v52, %v6153_v51  ;;  %v4141_v39 = vadd.f32 %v4140_v33, %v4128_v59 }
 0x290   :  { %4379 = vmatpush.bf16.msra.mxu1 %v5962_v0  ;;  %4359 = vmatpush.bf16.msrb.mxu3 %v7302_v7  ;;  %v8086_v55 = vld [vmem:[#allocation8 + $0x734] sm:$0xf0] }
 0x291   :  { %4347 = vmatmul.bf16.vlgmr.msrb.gmra.mxu2 %v8759_v50  ;;  %v5577_v58 = vld [vmem:[#allocation8 + $0x98] sm:$0xf]  ;;  %v6410_v63 = vor.u32 %v8086_v55, %v6409_v56 }
 0x292   :  { %4391 = vmatpush.bf16.msra.mxu2 %v6250_v8  ;;  %4367 = vmatpush.bf16.msra.mxu0 %v5674_v19  ;;  %v7878_v38 = vld [vmem:[#allocation8 + $0xb4] sm:$0xf0] }
 0x293   :  { %4360 = vmatmul.bf16.vlgmr.msrb.gmra.mxu3 %v8761_v44  ;;  %v5833_v61 = vld [vmem:[#allocation8 + $0x298] sm:$0xf]  ;;  %v5578_v48 = vor.u32 %v7878_v38, %v5577_v58 }
 0x294   :  { %4404 = vmatpush.bf16.msra.mxu3 %v6506_v14  ;;  %4380 = vmatpush.bf16.msra.mxu1 %v5930_v23  ;;  %v6121_v0 = vld [vmem:[#allocation8 + $0x4d8] sm:$0xf]  ;;  %v5834_v5 = vor.u32 %v7942_v62, %v5833_v61  ;;  %v4116_v14 = vpop.f32.mrf.mxu0 }
 0x295   :  { %v8014_v1 = vld [vmem:[#allocation8 + $0x4f4] sm:$0xf0] }
 0x296   :  { %4392 = vmatpush.bf16.msra.mxu2 %v6218_v25  ;;  %4368 = vmatpush.bf16.msra.mxu0 %v5642_v29  ;;  %v6377_v3 = vld [vmem:[#allocation8 + $0x6d8] sm:$0xf]  ;;  %v6122_v10 = vor.u32 %v8014_v1, %v6121_v0 }
 0x297   :  { %v8078_v4 = vld [vmem:[#allocation8 + $0x6f4] sm:$0xf0] }
 0x298   :  { %4405 = vmatpush.bf16.msra.mxu3 %v6474_v11  ;;  %4381 = vmatpush.bf16.msra.mxu1 %v5898_v34  ;;  %v5545_v7 = vld [vmem:[#allocation8 + $0x58] sm:$0xf]  ;;  %v6378_v16 = vor.u32 %v8078_v4, %v6377_v3 }
 0x299   :  { %v7870_v8 = vld [vmem:[#allocation8 + $0x74] sm:$0xf0] }
 0x29a   :  { %4393 = vmatpush.bf16.msra.mxu2 %v6186_v37  ;;  %4369 = vmatpush.bf16.msra.mxu0 %v5610_v54  ;;  %v5801_v12 = vld [vmem:[#allocation8 + $0x258] sm:$0xf]  ;;  %v5546_v21 = vor.u32 %v7870_v8, %v5545_v7  ;;  %v8828_v54 = vadd.f32 %v4153_v40, %v4141_v39 }
 0x29b   :  { %v7934_v13 = vld [vmem:[#allocation8 + $0x274] sm:$0xf0] }
 0x29c   :  { %4406 = vmatpush.bf16.msra.mxu3 %v6442_v46  ;;  %4382 = vmatpush.bf16.msra.mxu1 %v5866_v57  ;;  %v6089_v18 = vld [vmem:[#allocation8 + $0x498] sm:$0xf]  ;;  %v5802_v25 = vor.u32 %v7934_v13, %v5801_v12  ;;  %v4142_v12 = vpop.f32.mrf.mxu2 }
 0x29d   :  { %v8006_v19 = vld [vmem:[#allocation8 + $0x4b4] sm:$0xf0] }
 0x29e   :  { %4394 = vmatpush.bf16.msra.mxu2 %v6154_v60  ;;  %4370 = vmatpush.bf16.msra.mxu0 %v5578_v48  ;;  %v6345_v23 = vld [vmem:[#allocation8 + $0x698] sm:$0xf]  ;;  %v6090_v30 = vor.u32 %v8006_v19, %v6089_v18  ;;  %v4155_v19 = vpop.f32.mrf.mxu3 }
 0x29f   :  { %v8070_v2 = vld [vmem:[#allocation8 + $0x6b4] sm:$0xf0] }
 0x2a0   :  { %4407 = vmatpush.bf16.msra.mxu3 %v6410_v63  ;;  %v5513_v24 = vld [vmem:[#allocation8 + $0x18] sm:$0xf]  ;;  %4383 = vmatpush.bf16.msra.mxu1 %v5834_v5  ;;  %v6346_v34 = vor.u32 %v8070_v2, %v6345_v23 }
 0x2a1   :  { %v7926_v11 = vld [vmem:[#allocation8 + $0x234] sm:$0xf0]  ;;  %v5514_v41 = vor.u32 %v7862_v27, %v5513_v24 }
 0x2a2   :  { %4395 = vmatpush.bf16.msra.mxu2 %v6122_v10  ;;  %v6761_v31 = vld [vmem:[#allocation8 + $0x9d8] sm:$0xf]  ;;  %4371 = vmatpush.bf16.msra.mxu0 %v5546_v21  ;;  %v5770_v52 = vor.u32 %v7926_v11, %v5769_v28 }
 0x2a3   :  { %v8174_v29 = vld [vmem:[#allocation8 + $0x9f4] sm:$0xf0] }
 0x2a4   :  { %v7017_v32 = vld [vmem:[#allocation8 + $0xbd8] sm:$0xf]  ;;  %4408 = vmatpush.bf16.msra.mxu3 %v6378_v16  ;;  %4384 = vmatpush.bf16.msra.mxu1 %v5802_v25  ;;  %v6762_v53 = vor.u32 %v8174_v29, %v6761_v31 }
 0x2a5   :  { %v8238_v35 = vld [vmem:[#allocation8 + $0xbf4] sm:$0xf0] }
 0x2a6   :  { %v6057_v36 = vld [vmem:[#allocation8 + $0x458] sm:$0xf]  ;;  %4396 = vmatpush.bf16.msra.mxu2 %v6090_v30  ;;  %v7018_v56 = vor.u32 %v8238_v35, %v7017_v32  ;;  %4372 = vmatpush.bf16.msra.mxu0 %v5514_v41  ;;  %v1169_v35 = vperm.slane %v8817_v26, 4  ;;  %v4179_v26 = vpop.f32.mrf.mxu1 }
 0x2a7   :  { %v7998_v37 = vld [vmem:[#allocation8 + $0x474] sm:$0xf0] }
 0x2a8   :  { %v6313_v46 = vld [vmem:[#allocation8 + $0x658] sm:$0xf]  ;;  %v6058_v55 = vor.u32 %v7998_v37, %v6057_v36  ;;  %4409 = vmatpush.bf16.msra.mxu3 %v6346_v34  ;;  %4385 = vmatpush.bf16.msra.mxu1 %v5770_v52 }
 0x2a9   :  { %v8062_v51 = vld [vmem:[#allocation8 + $0x674] sm:$0xf0]  ;;  %4373 = vmatmul.bf16.vlgmr.msra.gmra.mxu0 %v8736_v17 }
 0x2aa   :  { %v6729_v45 = vld [vmem:[#allocation8 + $0x998] sm:$0xf]  ;;  %v6314_v60 = vor.u32 %v8062_v51, %v6313_v46  ;;  %4417 = vmatpush.bf16.msrb.mxu0 %v6762_v53  ;;  %4397 = vmatpush.bf16.msra.mxu2 %v6058_v55 }
 0x2ab   :  { %v8166_v57 = vld [vmem:[#allocation8 + $0x9b4] sm:$0xf0]  ;;  %4386 = vmatmul.bf16.vlgmr.msra.gmra.mxu1 %v8739_v22 }
 0x2ac   :  { %v6985_v58 = vld [vmem:[#allocation8 + $0xb98] sm:$0xf]  ;;  %v6730_v48 = vor.u32 %v8166_v57, %v6729_v45  ;;  %4430 = vmatpush.bf16.msrb.mxu1 %v7018_v56  ;;  %4410 = vmatpush.bf16.msra.mxu3 %v6314_v60  ;;  %v4166_v45 = vpop.f32.mrf.mxu0 }
 0x2ad   :  { %v8230_v38 = vld [vmem:[#allocation8 + $0xbb4] sm:$0xf0] }
 0x2ae   :  { %v6025_v59 = vld [vmem:[#allocation8 + $0x418] sm:$0xf]  ;;  %v6986_v5 = vor.u32 %v8230_v38, %v6985_v58  ;;  %4418 = vmatpush.bf16.msrb.mxu0 %v6730_v48  ;;  %v4167_v58 = vadd.f32 %v4166_v45, %v1169_v35  ;;  %v7914_v35 = vld [vmem:[#allocation8 + $0x1dc] sm:$0xf] }
 0x2af   :  { %v7990_v61 = vld [vmem:[#allocation8 + $0x434] sm:$0xf0] }
 0x2b0   :  { %v6281_v62 = vld [vmem:[#allocation8 + $0x618] sm:$0xf]  ;;  %v6026_v7 = vor.u32 %v7990_v61, %v6025_v59  ;;  %4431 = vmatpush.bf16.msrb.mxu1 %v6986_v5 }
 0x2b1   :  { %v8054_v63 = vld [vmem:[#allocation8 + $0x634] sm:$0xf0] }
 0x2b2   :  { %v7273_v0 = vld [vmem:[#allocation8 + $0xdd8] sm:$0xf]  ;;  %v6282_v13 = vor.u32 %v8054_v63, %v6281_v62  ;;  %4398 = vmatpush.bf16.msra.mxu2 %v6026_v7 }
 0x2b3   :  { %v8302_v1 = vld [vmem:[#allocation8 + $0xdf4] sm:$0xf0] }
 0x2b4   :  { %v7529_v3 = vld [vmem:[#allocation8 + $0xfd8] sm:$0xf]  ;;  %v7274_v14 = vor.u32 %v8302_v1, %v7273_v0  ;;  %4411 = vmatpush.bf16.msra.mxu3 %v6282_v13  ;;  %v4180_v0 = vadd.f32 %v4179_v26, %v4167_v58  ;;  %v7906_v26 = vld [vmem:[#allocation8 + $0x19c] sm:$0xf] }
 0x2b5   :  { %v8366_v4 = vld [vmem:[#allocation8 + $0xff4] sm:$0xf0]  ;;  %4399 = vmatmul.bf16.vlgmr.msra.gmra.mxu2 %v8743_v43 }
 0x2b6   :  { %v6697_v8 = vld [vmem:[#allocation8 + $0x958] sm:$0xf]  ;;  %v7530_v20 = vor.u32 %v8366_v4, %v7529_v3  ;;  %4443 = vmatpush.bf16.msrb.mxu2 %v7274_v14 }
 0x2b7   :  { %v8158_v10 = vld [vmem:[#allocation8 + $0x974] sm:$0xf0]  ;;  %4412 = vmatmul.bf16.vlgmr.msra.gmra.mxu3 %v8745_v49 }
 0x2b8   :  { %v6953_v16 = vld [vmem:[#allocation8 + $0xb58] sm:$0xf]  ;;  %v6698_v2 = vor.u32 %v8158_v10, %v6697_v8  ;;  %4456 = vmatpush.bf16.msrb.mxu3 %v7530_v20 }
 0x2b9   :  { %v8222_v18 = vld [vmem:[#allocation8 + $0xb74] sm:$0xf0] }
 0x2ba   :  { %v7241_v21 = vld [vmem:[#allocation8 + $0xd98] sm:$0xf]  ;;  %v6954_v27 = vor.u32 %v8222_v18, %v6953_v16  ;;  %4419 = vmatpush.bf16.msrb.mxu0 %v6698_v2 }
 0x2bb   :  { %v8294_v23 = vld [vmem:[#allocation8 + $0xdb4] sm:$0xf0] }
 0x2bc   :  { %v7497_v24 = vld [vmem:[#allocation8 + $0xf98] sm:$0xf]  ;;  %v7242_v30 = vor.u32 %v8294_v23, %v7241_v21  ;;  %4432 = vmatpush.bf16.msrb.mxu1 %v6954_v27  ;;  %v4168_v21 = vpop.f32.mrf.mxu0 }
 0x2bd   :  { %v8358_v25 = vld [vmem:[#allocation8 + $0xfb4] sm:$0xf0] }
 0x2be   :  { %v6665_v28 = vld [vmem:[#allocation8 + $0x918] sm:$0xf]  ;;  %v7498_v32 = vor.u32 %v8358_v25, %v7497_v24  ;;  %4444 = vmatpush.bf16.msrb.mxu2 %v7242_v30  ;;  %v4181_v25 = vpop.f32.mrf.mxu1 }
 0x2bf   :  { %v8150_v11 = vld [vmem:[#allocation8 + $0x934] sm:$0xf0] }
 0x2c0   :  { %v6921_v31 = vld [vmem:[#allocation8 + $0xb18] sm:$0xf]  ;;  %v6666_v36 = vor.u32 %v8150_v11, %v6665_v28  ;;  %4457 = vmatpush.bf16.msrb.mxu3 %v7498_v32 }
 0x2c1   :  { %v8214_v29 = vld [vmem:[#allocation8 + $0xb34] sm:$0xf0] }
 0x2c2   :  { %v7209_v33 = vld [vmem:[#allocation8 + $0xd58] sm:$0xf]  ;;  %v6922_v40 = vor.u32 %v8214_v29, %v6921_v31  ;;  %4420 = vmatpush.bf16.msrb.mxu0 %v6666_v36  ;;  %v5739_v36 = vld [vmem:[#allocation8 + $0x1f8] sm:$0xf0] }
 0x2c3   :  { %v8286_v34 = vld [vmem:[#allocation8 + $0xd74] sm:$0xf0]  ;;  %v5742_v58 = vor.u32 %v7914_v35, %v5739_v36  ;;  %v7954_v35 = vld [vmem:[#allocation8 + $0x31c] sm:$0xf] }
 0x2c4   :  { %v7465_v37 = vld [vmem:[#allocation8 + $0xf58] sm:$0xf]  ;;  %v7210_v51 = vor.u32 %v8286_v34, %v7209_v33  ;;  %4433 = vmatpush.bf16.msrb.mxu1 %v6922_v40  ;;  %v5899_v36 = vld [vmem:[#allocation8 + $0x338] sm:$0xf0] }
 0x2c5   :  { %v8350_v39 = vld [vmem:[#allocation8 + $0xf74] sm:$0xf0] }
 0x2c6   :  { %v6633_v41 = vld [vmem:[#allocation8 + $0x8d8] sm:$0xf]  ;;  %v7466_v56 = vor.u32 %v8350_v39, %v7465_v37  ;;  %4445 = vmatpush.bf16.msrb.mxu2 %v7210_v51  ;;  %v7978_v37 = vld [vmem:[#allocation8 + $0x3dc] sm:$0xf]  ;;  %v4192_v39 = vpop.f32.mrf.mxu2 }
 0x2c7   :  { %v8142_v46 = vld [vmem:[#allocation8 + $0x8f4] sm:$0xf0] }
 0x2c8   :  { %v6889_v52 = vld [vmem:[#allocation8 + $0xad8] sm:$0xf]  ;;  %v6634_v38 = vor.u32 %v8142_v46, %v6633_v41  ;;  %4458 = vmatpush.bf16.msrb.mxu3 %v7466_v56  ;;  %v5995_v41 = vld [vmem:[#allocation8 + $0x3f8] sm:$0xf0] }
 0x2c9   :  { %v8206_v53 = vld [vmem:[#allocation8 + $0xaf4] sm:$0xf0] }
 0x2ca   :  { %v7177_v55 = vld [vmem:[#allocation8 + $0xd18] sm:$0xf]  ;;  %v6890_v61 = vor.u32 %v8206_v53, %v6889_v52  ;;  %4421 = vmatpush.bf16.msrb.mxu0 %v6634_v38  ;;  %v4193_v52 = vadd.f32 %v4192_v39, %v4180_v0  ;;  %v4205_v53 = vpop.f32.mrf.mxu3  ;;  %v8026_v39 = vld [vmem:[#allocation8 + $0x55c] sm:$0xf] }
 0x2cb   :  { %v8278_v57 = vld [vmem:[#allocation8 + $0xd34] sm:$0xf0] }
 0x2cc   :  { %v7433_v60 = vld [vmem:[#allocation8 + $0xf18] sm:$0xf]  ;;  %v7178_v1 = vor.u32 %v8278_v57, %v7177_v55  ;;  %4434 = vmatpush.bf16.msrb.mxu1 %v6890_v61  ;;  %v8835_v38 = vadd.f32 %v4205_v53, %v4193_v52  ;;  %v5707_v61 = vld [vmem:[#allocation8 + $0x1b8] sm:$0xf0]  ;;  %v5902_v52 = vor.u32 %v7954_v35, %v5899_v36 }
 0x2cd   :  { %v8342_v59 = vld [vmem:[#allocation8 + $0xf34] sm:$0xf0]  ;;  %v7882_v53 = vld [vmem:[#allocation8 + $0xdc] sm:$0xf] }
 0x2ce   :  { %v6601_v62 = vld [vmem:[#allocation8 + $0x898] sm:$0xf]  ;;  %v7434_v4 = vor.u32 %v8342_v59, %v7433_v60  ;;  %4446 = vmatpush.bf16.msrb.mxu2 %v7178_v1  ;;  %v5998_v60 = vor.u32 %v7978_v37, %v5995_v41  ;;  %v5515_v35 = vld [vmem:[#allocation8 + $0x38] sm:$0xf0] }
 0x2cf   :  { %v8134_v63 = vld [vmem:[#allocation8 + $0x8b4] sm:$0xf0]  ;;  %v7922_v36 = vld [vmem:[#allocation8 + $0x21c] sm:$0xf] }
 0x2d0   :  { %v6857_v48 = vld [vmem:[#allocation8 + $0xa98] sm:$0xf]  ;;  %v6602_v8 = vor.u32 %v8134_v63, %v6601_v62  ;;  %4459 = vmatpush.bf16.msrb.mxu3 %v7434_v4  ;;  %v7970_v62 = vld [vmem:[#allocation8 + $0x39c] sm:$0xf] }
 0x2d1   :  { %v8198_v3 = vld [vmem:[#allocation8 + $0xab4] sm:$0xf0]  ;;  %v5963_v63 = vld [vmem:[#allocation8 + $0x3b8] sm:$0xf0] }
 0x2d2   :  { %v7145_v5 = vld [vmem:[#allocation8 + $0xcd8] sm:$0xf]  ;;  %v6858_v13 = vor.u32 %v8198_v3, %v6857_v48  ;;  %4422 = vmatpush.bf16.msrb.mxu0 %v6602_v8  ;;  %v5710_v8 = vor.u32 %v7906_v26, %v5707_v61 }
 0x2d3   :  { %v8270_v7 = vld [vmem:[#allocation8 + $0xcf4] sm:$0xf0] }
 0x2d4   :  { %v7401_v10 = vld [vmem:[#allocation8 + $0xed8] sm:$0xf]  ;;  %v7146_v18 = vor.u32 %v8270_v7, %v7145_v5  ;;  %4435 = vmatpush.bf16.msrb.mxu1 %v6858_v13  ;;  %v8042_v5 = vld [vmem:[#allocation8 + $0x5dc] sm:$0xf]  ;;  %v5966_v13 = vor.u32 %v7970_v62, %v5963_v63  ;;  %v4231_v62 = vpop.f32.mrf.mxu1 }
 0x2d5   :  { %v8334_v12 = vld [vmem:[#allocation8 + $0xef4] sm:$0xf0]  ;;  %v6251_v7 = vld [vmem:[#allocation8 + $0x5f8] sm:$0xf0] }
 0x2d6   :  { %v6569_v14 = vld [vmem:[#allocation8 + $0x858] sm:$0xf]  ;;  %v7402_v23 = vor.u32 %v8334_v12, %v7401_v10  ;;  %4447 = vmatpush.bf16.msrb.mxu2 %v7146_v18  ;;  %v8106_v10 = vld [vmem:[#allocation8 + $0x7dc] sm:$0xf]  ;;  %v6254_v21 = vor.u32 %v8042_v5, %v6251_v7 }
 0x2d7   :  { %v8126_v16 = vld [vmem:[#allocation8 + $0x874] sm:$0xf0]  ;;  %v6507_v12 = vld [vmem:[#allocation8 + $0x7f8] sm:$0xf0] }
 0x2d8   :  { %v6825_v19 = vld [vmem:[#allocation8 + $0xa58] sm:$0xf]  ;;  %v6570_v27 = vor.u32 %v8126_v16, %v6569_v14  ;;  %4460 = vmatpush.bf16.msrb.mxu3 %v7402_v23  ;;  %v7898_v16 = vld [vmem:[#allocation8 + $0x15c] sm:$0xf]  ;;  %v6510_v25 = vor.u32 %v8106_v10, %v6507_v12 }
 0x2d9   :  { %v8190_v20 = vld [vmem:[#allocation8 + $0xa74] sm:$0xf0]  ;;  %v5675_v18 = vld [vmem:[#allocation8 + $0x178] sm:$0xf0] }
 0x2da   :  { %v7113_v2 = vld [vmem:[#allocation8 + $0xc98] sm:$0xf]  ;;  %v6826_v31 = vor.u32 %v8190_v20, %v6825_v19  ;;  %4423 = vmatpush.bf16.msrb.mxu0 %v6570_v27  ;;  %v4194_v19 = vpop.f32.mrf.mxu2  ;;  %v7962_v23 = vld [vmem:[#allocation8 + $0x35c] sm:$0xf] }
 0x2db   :  { %v8262_v24 = vld [vmem:[#allocation8 + $0xcb4] sm:$0xf0]  ;;  %v8034_v27 = vld [vmem:[#allocation8 + $0x59c] sm:$0xf] }
 0x2dc   :  { %v7369_v28 = vld [vmem:[#allocation8 + $0xe98] sm:$0xf]  ;;  %v7114_v34 = vor.u32 %v8262_v24, %v7113_v2  ;;  %4436 = vmatpush.bf16.msrb.mxu1 %v6826_v31  ;;  %v5931_v2 = vld [vmem:[#allocation8 + $0x378] sm:$0xf0]  ;;  %v4207_v24 = vpop.f32.mrf.mxu3 }
 0x2dd   :  { %v8326_v11 = vld [vmem:[#allocation8 + $0xeb4] sm:$0xf0]  ;;  %v6475_v31 = vld [vmem:[#allocation8 + $0x7b8] sm:$0xf0] }
 0x2de   :  { %v6537_v30 = vld [vmem:[#allocation8 + $0x818] sm:$0xf]  ;;  %v7370_v40 = vor.u32 %v8326_v11, %v7369_v28  ;;  %4448 = vmatpush.bf16.msrb.mxu2 %v7114_v34  ;;  %v6219_v28 = vld [vmem:[#allocation8 + $0x5b8] sm:$0xf0]  ;;  %v5678_v11 = vor.u32 %v7898_v16, %v5675_v18 }
 0x2df   :  { %v8118_v29 = vld [vmem:[#allocation8 + $0x834] sm:$0xf0]  ;;  %v6222_v34 = vor.u32 %v8034_v27, %v6219_v28  ;;  %v5835_v10 = vld [vmem:[#allocation8 + $0x2b8] sm:$0xf0] }
 0x2e0   :  { %v6793_v32 = vld [vmem:[#allocation8 + $0xa18] sm:$0xf]  ;;  %v6538_v45 = vor.u32 %v8118_v29, %v6537_v30  ;;  %4461 = vmatpush.bf16.msrb.mxu3 %v7370_v40  ;;  %v8098_v30 = vld [vmem:[#allocation8 + $0x79c] sm:$0xf]  ;;  %v5934_v29 = vor.u32 %v7962_v23, %v5931_v2 }
 0x2e1   :  { %v8182_v33 = vld [vmem:[#allocation8 + $0xa34] sm:$0xf0]  ;;  %v6478_v37 = vor.u32 %v8098_v30, %v6475_v31  ;;  %v6187_v40 = vld [vmem:[#allocation8 + $0x578] sm:$0xf0]  ;;  %v4233_v30 = vpop.f32.mrf.mxu1 }
 0x2e2   :  { %v7081_v46 = vld [vmem:[#allocation8 + $0xc58] sm:$0xf]  ;;  %v6794_v57 = vor.u32 %v8182_v33, %v6793_v32  ;;  %4424 = vmatpush.bf16.msrb.mxu0 %v6538_v45  ;;  %v7890_v32 = vld [vmem:[#allocation8 + $0x11c] sm:$0xf] }
 0x2e3   :  { %v8254_v51 = vld [vmem:[#allocation8 + $0xc74] sm:$0xf0]  ;;  %v5643_v33 = vld [vmem:[#allocation8 + $0x138] sm:$0xf0] }
 0x2e4   :  { %v7337_v56 = vld [vmem:[#allocation8 + $0xe58] sm:$0xf]  ;;  %v7082_v59 = vor.u32 %v8254_v51, %v7081_v46  ;;  %4437 = vmatpush.bf16.msrb.mxu1 %v6794_v57  ;;  %v5646_v41 = vor.u32 %v7890_v32, %v5643_v33  ;;  %v8090_v46 = vld [vmem:[#allocation8 + $0x75c] sm:$0xf] }
 0x2e5   :  { %v8318_v55 = vld [vmem:[#allocation8 + $0xe74] sm:$0xf0]  ;;  %4425 = vmatmul.bf16.vlgmr.msrb.gmra.mxu0 %v8752_v6  ;;  %v6443_v51 = vld [vmem:[#allocation8 + $0x778] sm:$0xf0] }
 0x2e6   :  { %v7338_v1 = vor.u32 %v8318_v55, %v7337_v56  ;;  %v7049_v0 = vld [vmem:[#allocation8 + $0xc18] sm:$0xf]  ;;  %4469 = vmatpush.bf16.msra.mxu0 %v5742_v58  ;;  %4449 = vmatpush.bf16.msrb.mxu2 %v7082_v59  ;;  %v5611_v45 = vld [vmem:[#allocation8 + $0xf8] sm:$0xf0]  ;;  %v6190_v56 = vor.u32 %v8026_v39, %v6187_v40  ;;  %v4218_v58 = vpop.f32.mrf.mxu0  ;;  %v6446_v26 = vor.u32 %v8090_v46, %v6443_v51  ;;  %v4244_v51 = vpop.f32.mrf.mxu2 }
 0x2e7   :  { %v8246_v48 = vld [vmem:[#allocation8 + $0xc34] sm:$0xf0]  ;;  %4438 = vmatmul.bf16.vlgmr.msrb.gmra.mxu1 %v8755_v9  ;;  %v7946_v55 = vld [vmem:[#allocation8 + $0x2dc] sm:$0xf]  ;;  %v4219_v61 = vadd.f32 %v4218_v58, %v8835_v38  ;;  %v5614_v63 = vor.u32 %v7882_v53, %v5611_v45 }
 0x2e8   :  { %v7305_v3 = vld [vmem:[#allocation8 + $0xe18] sm:$0xf]  ;;  %4482 = vmatpush.bf16.msra.mxu1 %v5998_v60  ;;  %v7050_v14 = vor.u32 %v8246_v48, %v7049_v0  ;;  %4462 = vmatpush.bf16.msrb.mxu3 %v7338_v1  ;;  %v5867_v57 = vld [vmem:[#allocation8 + $0x2f8] sm:$0xf0] }
 0x2e9   :  { %v8310_v4 = vld [vmem:[#allocation8 + $0xe34] sm:$0xf0]  ;;  %v8018_v60 = vld [vmem:[#allocation8 + $0x51c] sm:$0xf]  ;;  %v5870_v48 = vor.u32 %v7946_v55, %v5867_v57  ;;  %v4232_v5 = vadd.f32 %v4231_v62, %v4219_v61  ;;  %v4257_v57 = vpop.f32.mrf.mxu3 }
 0x2ea   :  { %v7306_v20 = vor.u32 %v8310_v4, %v7305_v3  ;;  %4470 = vmatpush.bf16.msra.mxu0 %v5710_v8  ;;  %4450 = vmatpush.bf16.msrb.mxu2 %v7050_v14  ;;  %v6155_v59 = vld [vmem:[#allocation8 + $0x538] sm:$0xf0] }
 0x2eb   :  { %v8082_v1 = vld [vmem:[#allocation8 + $0x71c] sm:$0xf]  ;;  %v6158_v7 = vor.u32 %v8018_v60, %v6155_v59  ;;  %v4245_v55 = vadd.f32 %v4244_v51, %v4232_v5 }
 0x2ec   :  { %4483 = vmatpush.bf16.msra.mxu1 %v5966_v13  ;;  %4463 = vmatpush.bf16.msrb.mxu3 %v7306_v20  ;;  %v6411_v0 = vld [vmem:[#allocation8 + $0x738] sm:$0xf0] }
 0x2ed   :  { %4451 = vmatmul.bf16.vlgmr.msrb.gmra.mxu2 %v8759_v50  ;;  %v7874_v3 = vld [vmem:[#allocation8 + $0x9c] sm:$0xf]  ;;  %v6414_v12 = vor.u32 %v8082_v1, %v6411_v0 }
 0x2ee   :  { %4495 = vmatpush.bf16.msra.mxu2 %v6254_v21  ;;  %4471 = vmatpush.bf16.msra.mxu0 %v5678_v11  ;;  %v5579_v4 = vld [vmem:[#allocation8 + $0xb8] sm:$0xf0] }
 0x2ef   :  { %4464 = vmatmul.bf16.vlgmr.msrb.gmra.mxu3 %v8761_v44  ;;  %v7938_v8 = vld [vmem:[#allocation8 + $0x29c] sm:$0xf]  ;;  %v5582_v38 = vor.u32 %v7874_v3, %v5579_v4 }
 0x2f0   :  { %4508 = vmatpush.bf16.msra.mxu3 %v6510_v25  ;;  %4484 = vmatpush.bf16.msra.mxu1 %v5934_v29  ;;  %v8010_v13 = vld [vmem:[#allocation8 + $0x4dc] sm:$0xf]  ;;  %v5838_v19 = vor.u32 %v7938_v8, %v5835_v10  ;;  %v4220_v25 = vpop.f32.mrf.mxu0 }
 0x2f1   :  { %v6123_v14 = vld [vmem:[#allocation8 + $0x4f8] sm:$0xf0] }
 0x2f2   :  { %4496 = vmatpush.bf16.msra.mxu2 %v6222_v34  ;;  %4472 = vmatpush.bf16.msra.mxu0 %v5646_v41  ;;  %v8074_v16 = vld [vmem:[#allocation8 + $0x6dc] sm:$0xf]  ;;  %v6126_v23 = vor.u32 %v8010_v13, %v6123_v14 }
 0x2f3   :  { %v6379_v18 = vld [vmem:[#allocation8 + $0x6f8] sm:$0xf0] }
 0x2f4   :  { %4509 = vmatpush.bf16.msra.mxu3 %v6478_v37  ;;  %4485 = vmatpush.bf16.msra.mxu1 %v5902_v52  ;;  %v7866_v20 = vld [vmem:[#allocation8 + $0x5c] sm:$0xf]  ;;  %v6382_v27 = vor.u32 %v8074_v16, %v6379_v18 }
 0x2f5   :  { %v5547_v21 = vld [vmem:[#allocation8 + $0x78] sm:$0xf0] }
 0x2f6   :  { %4497 = vmatpush.bf16.msra.mxu2 %v6190_v56  ;;  %4473 = vmatpush.bf16.msra.mxu0 %v5614_v63  ;;  %v7930_v2 = vld [vmem:[#allocation8 + $0x25c] sm:$0xf]  ;;  %v5550_v31 = vor.u32 %v7866_v20, %v5547_v21  ;;  %v8842_v63 = vadd.f32 %v4257_v57, %v4245_v55 }
 0x2f7   :  { %v5803_v24 = vld [vmem:[#allocation8 + $0x278] sm:$0xf0] }
 0x2f8   :  { %4510 = vmatpush.bf16.msra.mxu3 %v6446_v26  ;;  %4486 = vmatpush.bf16.msra.mxu1 %v5870_v48  ;;  %v8002_v28 = vld [vmem:[#allocation8 + $0x49c] sm:$0xf]  ;;  %v5806_v34 = vor.u32 %v7930_v2, %v5803_v24  ;;  %v4246_v2 = vpop.f32.mrf.mxu2 }
 0x2f9   :  { %v6091_v11 = vld [vmem:[#allocation8 + $0x4b8] sm:$0xf0] }
 0x2fa   :  { %4498 = vmatpush.bf16.msra.mxu2 %v6158_v7  ;;  %4474 = vmatpush.bf16.msra.mxu0 %v5582_v38  ;;  %v8066_v29 = vld [vmem:[#allocation8 + $0x69c] sm:$0xf]  ;;  %v6094_v39 = vor.u32 %v8002_v28, %v6091_v11  ;;  %v4259_v11 = vpop.f32.mrf.mxu3 }
 0x2fb   :  { %v6347_v32 = vld [vmem:[#allocation8 + $0x6b8] sm:$0xf0] }
 0x2fc   :  { %4511 = vmatpush.bf16.msra.mxu3 %v6414_v12  ;;  %v7858_v33 = vld [vmem:[#allocation8 + $0x1c] sm:$0xf]  ;;  %4487 = vmatpush.bf16.msra.mxu1 %v5838_v19  ;;  %v6350_v52 = vor.u32 %v8066_v29, %v6347_v32 }
 0x2fd   :  { %v5771_v37 = vld [vmem:[#allocation8 + $0x238] sm:$0xf0]  ;;  %v5518_v58 = vor.u32 %v7858_v33, %v5515_v35 }
 0x2fe   :  { %4499 = vmatpush.bf16.msra.mxu2 %v6126_v23  ;;  %v8170_v40 = vld [vmem:[#allocation8 + $0x9dc] sm:$0xf]  ;;  %4475 = vmatpush.bf16.msra.mxu0 %v5550_v31  ;;  %v5774_v59 = vor.u32 %v7922_v36, %v5771_v37 }
 0x2ff   :  { %v6763_v41 = vld [vmem:[#allocation8 + $0x9f8] sm:$0xf0] }
 0x300   :  { %v8234_v46 = vld [vmem:[#allocation8 + $0xbdc] sm:$0xf]  ;;  %4512 = vmatpush.bf16.msra.mxu3 %v6382_v27  ;;  %4488 = vmatpush.bf16.msra.mxu1 %v5806_v34  ;;  %v6766_v61 = vor.u32 %v8170_v40, %v6763_v41 }
 0x301   :  { %v7019_v53 = vld [vmem:[#allocation8 + $0xbf8] sm:$0xf0] }
 0x302   :  { %v7994_v45 = vld [vmem:[#allocation8 + $0x45c] sm:$0xf]  ;;  %4500 = vmatpush.bf16.msra.mxu2 %v6094_v39  ;;  %v7022_v1 = vor.u32 %v8234_v46, %v7019_v53  ;;  %4476 = vmatpush.bf16.msra.mxu0 %v5518_v58 }
 0x303   :  { %v6059_v56 = vld [vmem:[#allocation8 + $0x478] sm:$0xf0] }
 0x304   :  { %v8058_v26 = vld [vmem:[#allocation8 + $0x65c] sm:$0xf]  ;;  %v6062_v0 = vor.u32 %v7994_v45, %v6059_v56  ;;  %4513 = vmatpush.bf16.msra.mxu3 %v6350_v52  ;;  %4489 = vmatpush.bf16.msra.mxu1 %v5774_v59 }
 0x305   :  { %v6315_v60 = vld [vmem:[#allocation8 + $0x678] sm:$0xf0]  ;;  %4477 = vmatmul.bf16.vlgmr.msra.gmra.mxu0 %v8736_v17 }
 0x306   :  { %v8162_v62 = vld [vmem:[#allocation8 + $0x99c] sm:$0xf]  ;;  %v6318_v7 = vor.u32 %v8058_v26, %v6315_v60  ;;  %4521 = vmatpush.bf16.msrb.mxu0 %v6766_v61  ;;  %4501 = vmatpush.bf16.msra.mxu2 %v6062_v0  ;;  %v8848_v60 = vpop.f32.mrf.mxu0 }
 0x307   :  { %v6731_v48 = vld [vmem:[#allocation8 + $0x9b8] sm:$0xf0]  ;;  %4490 = vmatmul.bf16.vlgmr.msra.gmra.mxu1 %v8739_v22 }
 0x308   :  { %v8226_v3 = vld [vmem:[#allocation8 + $0xb9c] sm:$0xf]  ;;  %v6734_v38 = vor.u32 %v8162_v62, %v6731_v48  ;;  %4534 = vmatpush.bf16.msrb.mxu1 %v7022_v1  ;;  %4514 = vmatpush.bf16.msra.mxu3 %v6318_v7  ;;  %v8850_v62 = vpop.f32.mrf.mxu1 }
 0x309   :  { %v6987_v4 = vld [vmem:[#allocation8 + $0xbb8] sm:$0xf0] }
 0x30a   :  { %v7986_v5 = vld [vmem:[#allocation8 + $0x41c] sm:$0xf]  ;;  %v6990_v19 = vor.u32 %v8226_v3, %v6987_v4  ;;  %4522 = vmatpush.bf16.msrb.mxu0 %v6734_v38 }
 0x30b   :  { %v6027_v8 = vld [vmem:[#allocation8 + $0x438] sm:$0xf0] }
 0x30c   :  { %v8050_v10 = vld [vmem:[#allocation8 + $0x61c] sm:$0xf]  ;;  %v6030_v20 = vor.u32 %v7986_v5, %v6027_v8  ;;  %4535 = vmatpush.bf16.msrb.mxu1 %v6990_v19 }
 0x30d   :  { %v6283_v12 = vld [vmem:[#allocation8 + $0x638] sm:$0xf0] }
 0x30e   :  { %v8298_v13 = vld [vmem:[#allocation8 + $0xddc] sm:$0xf]  ;;  %v6286_v24 = vor.u32 %v8050_v10, %v6283_v12  ;;  %4502 = vmatpush.bf16.msra.mxu2 %v6030_v20 }
 0x30f   :  { %v7275_v14 = vld [vmem:[#allocation8 + $0xdf8] sm:$0xf0] }
 0x310   :  { %v8362_v16 = vld [vmem:[#allocation8 + $0xfdc] sm:$0xf]  ;;  %v7278_v25 = vor.u32 %v8298_v13, %v7275_v14  ;;  %4515 = vmatpush.bf16.msra.mxu3 %v6286_v24  ;;  %v4272_v24 = vpop.f32.mrf.mxu0  ;;  %v4285_v11 = vpop.f32.mrf.mxu1 }
 0x311   :  { %v7531_v18 = vld [vmem:[#allocation8 + $0xff8] sm:$0xf0]  ;;  %4503 = vmatmul.bf16.vlgmr.msra.gmra.mxu2 %v8743_v43  ;;  %v8394_v24 = vld [vmem:[#allocation11 + $0xd8] sm:$0xff] }
 0x312   :  { %v8154_v21 = vld [vmem:[#allocation8 + $0x95c] sm:$0xf]  ;;  %v7534_v30 = vor.u32 %v8362_v16, %v7531_v18  ;;  %4547 = vmatpush.bf16.msrb.mxu2 %v7278_v25 }
 0x313   :  { %v6699_v23 = vld [vmem:[#allocation8 + $0x978] sm:$0xf0]  ;;  %4516 = vmatmul.bf16.vlgmr.msra.gmra.mxu3 %v8745_v49 }
 0x314   :  { %v8218_v27 = vld [vmem:[#allocation8 + $0xb5c] sm:$0xf]  ;;  %v6702_v32 = vor.u32 %v8154_v21, %v6699_v23  ;;  %4560 = vmatpush.bf16.msrb.mxu3 %v7534_v30 }
 0x315   :  { %v6955_v28 = vld [vmem:[#allocation8 + $0xb78] sm:$0xf0] }
 0x316   :  { %v8290_v31 = vld [vmem:[#allocation8 + $0xd9c] sm:$0xf]  ;;  %v6958_v35 = vor.u32 %v8218_v27, %v6955_v28  ;;  %4523 = vmatpush.bf16.msrb.mxu0 %v6702_v32 }
 0x317   :  { %v7243_v29 = vld [vmem:[#allocation8 + $0xdb8] sm:$0xf0] }
 0x318   :  { %v8354_v33 = vld [vmem:[#allocation8 + $0xf9c] sm:$0xf]  ;;  %v7246_v17 = vor.u32 %v8290_v31, %v7243_v29  ;;  %4536 = vmatpush.bf16.msrb.mxu1 %v6958_v35 }
 0x319   :  { %v7499_v34 = vld [vmem:[#allocation8 + $0xfb8] sm:$0xf0] }
 0x31a   :  { %v8146_v36 = vld [vmem:[#allocation8 + $0x91c] sm:$0xf]  ;;  %v7502_v41 = vor.u32 %v8354_v33, %v7499_v34  ;;  %4548 = vmatpush.bf16.msrb.mxu2 %v7246_v17  ;;  %v8852_v17 = vpop.f32.mrf.mxu2 }
 0x31b   :  { %v6667_v37 = vld [vmem:[#allocation8 + $0x938] sm:$0xf0] }
 0x31c   :  { %v8210_v39 = vld [vmem:[#allocation8 + $0xb1c] sm:$0xf]  ;;  %v6670_v51 = vor.u32 %v8146_v36, %v6667_v37  ;;  %4561 = vmatpush.bf16.msrb.mxu3 %v7502_v41 }
 0x31d   :  { %v6923_v40 = vld [vmem:[#allocation8 + $0xb38] sm:$0xf0] }
 0x31e   :  { %v8282_v22 = vld [vmem:[#allocation8 + $0xd5c] sm:$0xf]  ;;  %v6926_v45 = vor.u32 %v8210_v39, %v6923_v40  ;;  %4524 = vmatpush.bf16.msrb.mxu0 %v6670_v51 }
 0x31f   :  { %v7211_v46 = vld [vmem:[#allocation8 + $0xd78] sm:$0xf0] }
 0x320   :  { %v8346_v52 = vld [vmem:[#allocation8 + $0xf5c] sm:$0xf]  ;;  %v7214_v57 = vor.u32 %v8282_v22, %v7211_v46  ;;  %4537 = vmatpush.bf16.msrb.mxu1 %v6926_v45  ;;  %v8854_v22 = vpop.f32.mrf.mxu3  ;;  %v8374_v45 = vld [vmem:[#allocation11 + $0x38] sm:$0xff] }
 0x321   :  { %v7467_v53 = vld [vmem:[#allocation8 + $0xf78] sm:$0xf0] }
 0x322   :  { %v8138_v56 = vld [vmem:[#allocation8 + $0x8dc] sm:$0xf]  ;;  %v7470_v59 = vor.u32 %v8346_v52, %v7467_v53  ;;  %4549 = vmatpush.bf16.msrb.mxu2 %v7214_v57 }
 0x323   :  { %v6635_v55 = vld [vmem:[#allocation8 + $0x8f8] sm:$0xf0] }
 0x324   :  { %v8202_v58 = vld [vmem:[#allocation8 + $0xadc] sm:$0xf]  ;;  %v6638_v1 = vor.u32 %v8138_v56, %v6635_v55  ;;  %4562 = vmatpush.bf16.msrb.mxu3 %v7470_v59  ;;  %v8382_v56 = vld [vmem:[#allocation11 + $0x78] sm:$0xff] }
 0x325   :  { %v6891_v26 = vld [vmem:[#allocation8 + $0xaf8] sm:$0xf0] }
 0x326   :  { %v8274_v61 = vld [vmem:[#allocation8 + $0xd1c] sm:$0xf]  ;;  %v6894_v48 = vor.u32 %v8202_v58, %v6891_v26  ;;  %4525 = vmatpush.bf16.msrb.mxu0 %v6638_v1 }
 0x327   :  { %v7179_v43 = vld [vmem:[#allocation8 + $0xd38] sm:$0xf0] }
 0x328   :  { %v8338_v0 = vld [vmem:[#allocation8 + $0xf1c] sm:$0xf]  ;;  %v7182_v7 = vor.u32 %v8274_v61, %v7179_v43  ;;  %4538 = vmatpush.bf16.msrb.mxu1 %v6894_v48 }
 0x329   :  { %v7435_v49 = vld [vmem:[#allocation8 + $0xf38] sm:$0xf0] }
 0x32a   :  { %v8130_v3 = vld [vmem:[#allocation8 + $0x89c] sm:$0xf]  ;;  %v7438_v10 = vor.u32 %v8338_v0, %v7435_v49  ;;  %4550 = vmatpush.bf16.msrb.mxu2 %v7182_v7  ;;  %v4298_v49 = vpop.f32.mrf.mxu2  ;;  %v8398_v7 = vld [vmem:[#allocation11 + $0xf8] sm:$0xff] }
 0x32b   :  { %v6603_v4 = vld [vmem:[#allocation8 + $0x8b8] sm:$0xf0] }
 0x32c   :  { %v8194_v5 = vld [vmem:[#allocation8 + $0xa9c] sm:$0xf]  ;;  %v6606_v14 = vor.u32 %v8130_v3, %v6603_v4  ;;  %4563 = vmatpush.bf16.msrb.mxu3 %v7438_v10  ;;  %v8390_v3 = vld [vmem:[#allocation11 + $0xb8] sm:$0xff]  ;;  %v4311_v4 = vpop.f32.mrf.mxu3 }
 0x32d   :  { %v6859_v8 = vld [vmem:[#allocation8 + $0xab8] sm:$0xf0] }
 0x32e   :  { %v8266_v12 = vld [vmem:[#allocation8 + $0xcdc] sm:$0xf]  ;;  %v6862_v18 = vor.u32 %v8194_v5, %v6859_v8  ;;  %4526 = vmatpush.bf16.msrb.mxu0 %v6606_v14  ;;  %v8372_v5 = vld [vmem:[#allocation11 + $0x28] sm:$0xff]  ;;  %v8860_v14 = vpop.f32.mrf.mxu0 }
 0x32f   :  { %v7147_v13 = vld [vmem:[#allocation8 + $0xcf8] sm:$0xf0]  ;;  %v8380_v8 = vld [vmem:[#allocation11 + $0x68] sm:$0xff] }
 0x330   :  { %v8330_v38 = vld [vmem:[#allocation8 + $0xedc] sm:$0xf]  ;;  %v7150_v21 = vor.u32 %v8266_v12, %v7147_v13  ;;  %4539 = vmatpush.bf16.msrb.mxu1 %v6862_v18  ;;  %v8379_v13 = vld [vmem:[#allocation11 + $0x60] sm:$0xff]  ;;  %v8370_v18 = vld [vmem:[#allocation11 + $0x18] sm:$0xff] }
 0x331   :  { %v7403_v16 = vld [vmem:[#allocation8 + $0xef8] sm:$0xf0] }
 0x332   :  { %v8122_v19 = vld [vmem:[#allocation8 + $0x85c] sm:$0xf]  ;;  %v7406_v25 = vor.u32 %v8330_v38, %v7403_v16  ;;  %4551 = vmatpush.bf16.msrb.mxu2 %v7150_v21  ;;  %v8396_v38 = vld [vmem:[#allocation11 + $0xe8] sm:$0xff]  ;;  %v8862_v16 = vpop.f32.mrf.mxu1 }
 0x333   :  { %v6571_v20 = vld [vmem:[#allocation8 + $0x878] sm:$0xf0] }
 0x334   :  { %v8186_v23 = vld [vmem:[#allocation8 + $0xa5c] sm:$0xf]  ;;  %v6574_v30 = vor.u32 %v8122_v19, %v6571_v20  ;;  %4564 = vmatpush.bf16.msrb.mxu3 %v7406_v25  ;;  %v8378_v19 = vld [vmem:[#allocation11 + $0x58] sm:$0xff]  ;;  %v8395_v20 = vld [vmem:[#allocation11 + $0xe0] sm:$0xff] }
 0x335   :  { %v6827_v2 = vld [vmem:[#allocation8 + $0xa78] sm:$0xf0] }
 0x336   :  { %v8258_v27 = vld [vmem:[#allocation8 + $0xc9c] sm:$0xf]  ;;  %v6830_v32 = vor.u32 %v8186_v23, %v6827_v2  ;;  %4527 = vmatpush.bf16.msrb.mxu0 %v6574_v30  ;;  %v8386_v23 = vld [vmem:[#allocation11 + $0x98] sm:$0xff]  ;;  %v4324_v2 = vpop.f32.mrf.mxu0  ;;  %v8864_v30 = vpop.f32.mrf.mxu2 }
 0x337   :  { %v7115_v28 = vld [vmem:[#allocation8 + $0xcb8] sm:$0xf0]  ;;  %v8407_v2 = vld [vmem:[#allocation11 + $0x140] sm:$0xff] }
 0x338   :  { %v8322_v31 = vld [vmem:[#allocation8 + $0xe9c] sm:$0xf]  ;;  %v7118_v35 = vor.u32 %v8258_v27, %v7115_v28  ;;  %4540 = vmatpush.bf16.msrb.mxu1 %v6830_v32  ;;  %v8368_v27 = vld [vmem:[#allocation11 + $0x8] sm:$0xff]  ;;  %v8367_v32 = vld [vmem:[#allocation11] sm:$0xff] }
 0x339   :  { %v7371_v29 = vld [vmem:[#allocation8 + $0xeb8] sm:$0xf0]  ;;  %v8376_v28 = vld [vmem:[#allocation11 + $0x48] sm:$0xff] }
 0x33a   :  { %v8114_v33 = vld [vmem:[#allocation8 + $0x81c] sm:$0xf]  ;;  %v7374_v39 = vor.u32 %v8322_v31, %v7371_v29  ;;  %4552 = vmatpush.bf16.msrb.mxu2 %v7118_v35  ;;  %v4337_v25 = vpop.f32.mrf.mxu1  ;;  %v8866_v29 = vpop.f32.mrf.mxu3 }
 0x33b   :  { %v6539_v34 = vld [vmem:[#allocation8 + $0x838] sm:$0xf0]  ;;  %v8416_v25 = vld [vmem:[#allocation11 + $0x188] sm:$0xff] }
 0x33c   :  { %v8178_v36 = vld [vmem:[#allocation8 + $0xa1c] sm:$0xf]  ;;  %v6542_v46 = vor.u32 %v8114_v33, %v6539_v34  ;;  %4565 = vmatpush.bf16.msrb.mxu3 %v7374_v39  ;;  %v4573_v33 = vmax.f32 %v8792_v15, 0.0  ;;  %v8869_v34 = vld [vmem:[#allocation10] sm:$0xff]  ;;  %v4574_v39 = vmax.f32 %v8798_v42, 0.0 }
 0x33d   :  { %v6795_v37 = vld [vmem:[#allocation8 + $0xa38] sm:$0xf0]  ;;  %v1170_v35 = vperm.slane %v8869_v34, 5 }
 0x33e   :  { %v8250_v40 = vld [vmem:[#allocation8 + $0xc5c] sm:$0xf]  ;;  %v6798_v53 = vor.u32 %v8178_v36, %v6795_v37  ;;  %4528 = vmatpush.bf16.msrb.mxu0 %v6542_v46  ;;  %v8375_v36 = vld [vmem:[#allocation11 + $0x40] sm:$0xff]  ;;  %v8406_v37 = vld [vmem:[#allocation11 + $0x138] sm:$0xff]  ;;  %v4350_v42 = vpop.f32.mrf.mxu2  ;;  %v4374_v4 = vpop.f32.mrf.mxu0 }
 0x33f   :  { %v7083_v41 = vld [vmem:[#allocation8 + $0xc78] sm:$0xf0]  ;;  %v8392_v46 = vld [vmem:[#allocation11 + $0xc8] sm:$0xff] }
 0x340   :  { %v8314_v51 = vld [vmem:[#allocation8 + $0xe5c] sm:$0xf]  ;;  %v7086_v55 = vor.u32 %v8250_v40, %v7083_v41  ;;  %4541 = vmatpush.bf16.msrb.mxu1 %v6798_v53  ;;  %v8414_v40 = vld [vmem:[#allocation11 + $0x178] sm:$0xff]  ;;  %v8384_v41 = vld [vmem:[#allocation11 + $0x88] sm:$0xff]  ;;  %v4582_v53 = vpack.c.bf16 %v4574_v39, %v4574_v39 }
 0x341   :  { %v7339_v52 = vld [vmem:[#allocation8 + $0xe78] sm:$0xf0]  ;;  %4529 = vmatmul.bf16.vlgmr.msrb.gmra.mxu0 %v8752_v6  ;;  %v8371_v6 = vld [vmem:[#allocation11 + $0x20] sm:$0xff] }
 0x342   :  { %v7342_v57 = vor.u32 %v8314_v51, %v7339_v52  ;;  %v8242_v58 = vld [vmem:[#allocation8 + $0xc1c] sm:$0xf]  ;;  %5105 = vmatpush.bf16.msra.mxu0 %v8374_v45  ;;  %4553 = vmatpush.bf16.msrb.mxu2 %v7086_v55  ;;  %v4581_v51 = vpack.c.bf16 %v4573_v33, %v4573_v33  ;;  %v4271_v52 = vadd.f32 %v8848_v60, %v1170_v35  ;;  %v4575_v55 = vmax.f32 %v8812_v47, 0.0 }
 0x343   :  { %v7051_v26 = vld [vmem:[#allocation8 + $0xc38] sm:$0xf0]  ;;  %4542 = vmatmul.bf16.vlgmr.msrb.gmra.mxu1 %v8755_v9  ;;  %v8388_v9 = vld [vmem:[#allocation11 + $0xa8] sm:$0xff] }
 0x344   :  { %v8306_v59 = vld [vmem:[#allocation8 + $0xe1c] sm:$0xf]  ;;  %5118 = vmatpush.bf16.msra.mxu1 %v8382_v56  ;;  %v7054_v0 = vor.u32 %v8242_v58, %v7051_v26  ;;  %4566 = vmatpush.bf16.msrb.mxu3 %v7342_v57  ;;  %v8383_v56 = vld [vmem:[#allocation11 + $0x80] sm:$0xff]  ;;  %v8422_v58 = vld [vmem:[#allocation11 + $0x1b8] sm:$0xff]  ;;  %v4576_v26 = vmax.f32 %v8828_v54, 0.0  ;;  %v4284_v60 = vadd.f32 %v8850_v62, %v4271_v52 }
 0x345   :  { %v7307_v61 = vld [vmem:[#allocation8 + $0xe38] sm:$0xf0]  ;;  %v8391_v57 = vld [vmem:[#allocation11 + $0xc0] sm:$0xff]  ;;  %v8430_v52 = vld [vmem:[#allocation11 + $0x1f8] sm:$0xff] }
 0x346   :  { %v8373_v43 = vld [vmem:[#allocation11 + $0x30] sm:$0xff]  ;;  %v7310_v48 = vor.u32 %v8306_v59, %v7307_v61  ;;  %4554 = vmatpush.bf16.msrb.mxu2 %v7054_v0  ;;  %v4363_v59 = vpop.f32.mrf.mxu3  ;;  %v8404_v61 = vld [vmem:[#allocation11 + $0x128] sm:$0xff]  ;;  %v4297_v0 = vadd.f32 %v8852_v17, %v4284_v60  ;;  %v4584_v49 = vpack.c.bf16 %v4576_v26, %v4576_v26  ;;  %v8411_v54 = vld [vmem:[#allocation11 + $0x160] sm:$0xff] }
 0x347   :  { %v8381_v1 = vld [vmem:[#allocation11 + $0x70] sm:$0xff]  ;;  %5106 = vmatpush.bf16.msra.mxu0 %v8373_v43  ;;  %v8412_v43 = vld [vmem:[#allocation11 + $0x168] sm:$0xff]  ;;  %v8402_v17 = vld [vmem:[#allocation11 + $0x118] sm:$0xff] }
 0x348   :  { %5119 = vmatpush.bf16.msra.mxu1 %v8381_v1  ;;  %4567 = vmatpush.bf16.msrb.mxu3 %v7310_v48  ;;  %v8389_v10 = vld [vmem:[#allocation11 + $0xb0] sm:$0xff]  ;;  %v4583_v1 = vpack.c.bf16 %v4575_v55, %v4575_v55  ;;  %v8403_v48 = vld [vmem:[#allocation11 + $0x120] sm:$0xff]  ;;  %v4310_v62 = vadd.f32 %v8854_v22, %v4297_v0 }
 0x349   :  { %v8397_v12 = vld [vmem:[#allocation11 + $0xf0] sm:$0xff]  ;;  %4555 = vmatmul.bf16.vlgmr.msrb.gmra.mxu2 %v8759_v50  ;;  %v8387_v50 = vld [vmem:[#allocation11 + $0xa0] sm:$0xff] }
 0x34a   :  { %5131 = vmatpush.bf16.msra.mxu2 %v8390_v3  ;;  %v8377_v21 = vld [vmem:[#allocation11 + $0x50] sm:$0xff]  ;;  %v8420_v3 = vld [vmem:[#allocation11 + $0x1a8] sm:$0xff]  ;;  %v8427_v59 = vld [vmem:[#allocation11 + $0x1e0] sm:$0xff] }
 0x34b   :  { %5107 = vmatpush.bf16.msra.mxu0 %v8372_v5  ;;  %4568 = vmatmul.bf16.vlgmr.msrb.gmra.mxu3 %v8761_v44  ;;  %v8369_v44 = vld [vmem:[#allocation11 + $0x10] sm:$0xff]  ;;  %v4387_v5 = vpop.f32.mrf.mxu1 }
 0x34c   :  { %5144 = vmatpush.bf16.msra.mxu3 %v8398_v7  ;;  %5120 = vmatpush.bf16.msra.mxu1 %v8380_v8  ;;  %v8385_v11 = vld [vmem:[#allocation11 + $0x90] sm:$0xff]  ;;  %v4323_v7 = vadd.f32 %v8860_v14, %v4310_v62  ;;  %v8410_v8 = vld [vmem:[#allocation11 + $0x158] sm:$0xff]  ;;  %v8400_v14 = vld [vmem:[#allocation11 + $0x108] sm:$0xff] }
 0x34d   :  { %v8393_v31 = vld [vmem:[#allocation11 + $0xd0] sm:$0xff]  ;;  %v8423_v62 = vld [vmem:[#allocation11 + $0x1c0] sm:$0xff] }
 0x34e   :  { %5132 = vmatpush.bf16.msra.mxu2 %v8389_v10  ;;  %v8405_v15 = vld [vmem:[#allocation11 + $0x130] sm:$0xff]  ;;  %v8419_v10 = vld [vmem:[#allocation11 + $0x1a0] sm:$0xff] }
 0x34f   :  { %5108 = vmatpush.bf16.msra.mxu0 %v8371_v6  ;;  %v8413_v45 = vld [vmem:[#allocation11 + $0x170] sm:$0xff] }
 0x350   :  { %5145 = vmatpush.bf16.msra.mxu3 %v8397_v12  ;;  %5121 = vmatpush.bf16.msra.mxu1 %v8379_v13  ;;  %v8421_v47 = vld [vmem:[#allocation11 + $0x1b0] sm:$0xff]  ;;  %v4336_v12 = vadd.f32 %v8862_v16, %v4323_v7  ;;  %v4413_v16 = vpop.f32.mrf.mxu3 }
 0x351   :  { %v8401_v6 = vld [vmem:[#allocation11 + $0x110] sm:$0xff] }
 0x352   :  { %5133 = vmatpush.bf16.msra.mxu2 %v8388_v9  ;;  %v8409_v13 = vld [vmem:[#allocation11 + $0x150] sm:$0xff]  ;;  %v4349_v22 = vadd.f32 %v8864_v30, %v4336_v12  ;;  %v8418_v9 = vld [vmem:[#allocation11 + $0x198] sm:$0xff]  ;;  %v1171_v30 = vperm.slane %v8869_v34, 6 }
 0x353   :  { %5109 = vmatpush.bf16.msra.mxu0 %v8370_v18  ;;  %v4389_v18 = vpop.f32.mrf.mxu1  ;;  %v8429_v55 = vld [vmem:[#allocation11 + $0x1f0] sm:$0xff] }
 0x354   :  { %5146 = vmatpush.bf16.msra.mxu3 %v8396_v38  ;;  %5122 = vmatpush.bf16.msra.mxu1 %v8378_v19  ;;  %v4376_v38 = vpop.f32.mrf.mxu0  ;;  %v8408_v19 = vld [vmem:[#allocation11 + $0x148] sm:$0xff] }
 0x356   :  { %5134 = vmatpush.bf16.msra.mxu2 %v8387_v50  ;;  %v4362_v50 = vadd.f32 %v8866_v29, %v4349_v22 }
 0x357   :  { %5110 = vmatpush.bf16.msra.mxu0 %v8369_v44  ;;  %v4400_v44 = vpop.f32.mrf.mxu2 }
 0x358   :  { %5147 = vmatpush.bf16.msra.mxu3 %v8395_v20  ;;  %5123 = vmatpush.bf16.msra.mxu1 %v8377_v21  ;;  %v8417_v20 = vld [vmem:[#allocation11 + $0x190] sm:$0xff]  ;;  %v8399_v21 = vld [vmem:[#allocation11 + $0x100] sm:$0xff]  ;;  %v4415_v29 = vpop.f32.mrf.mxu3 }
 0x35a   :  { %5135 = vmatpush.bf16.msra.mxu2 %v8386_v23  ;;  %v4577_v23 = vmax.f32 %v8842_v63, 0.0 }
 0x35b   :  { %5111 = vmatpush.bf16.msra.mxu0 %v8368_v27 }
 0x35c   :  { %5148 = vmatpush.bf16.msra.mxu3 %v8394_v24  ;;  %5124 = vmatpush.bf16.msra.mxu1 %v8376_v28  ;;  %v4578_v24 = vmax.f32 %v4362_v50, 0.0  ;;  %v4585_v27 = vpack.c.bf16 %v4577_v23, %v4577_v23 }
 0x35e   :  { %5136 = vmatpush.bf16.msra.mxu2 %v8385_v11  ;;  %v4586_v28 = vpack.c.bf16 %v4578_v24, %v4578_v24  ;;  %v8415_v11 = vld [vmem:[#allocation11 + $0x180] sm:$0xff] }
 0x35f   :  { %5112 = vmatpush.bf16.msra.mxu0 %v8367_v32  ;;  %v4375_v32 = vadd.f32 %v4374_v4, %v1171_v30 }
 0x360   :  { %5149 = vmatpush.bf16.msra.mxu3 %v8393_v31  ;;  %5125 = vmatpush.bf16.msra.mxu1 %v8375_v36  ;;  %v4402_v31 = vpop.f32.mrf.mxu2 }
 0x361   :  { %v4388_v63 = vadd.f32 %v4387_v5, %v4375_v32 }
 0x362   :  { %5137 = vmatpush.bf16.msra.mxu2 %v8384_v41  ;;  %5113 = vmatmul.bf16.vlgmr.msra.gmra.mxu0 %v4581_v51  ;;  %v4426_v33 = vpop.f32.mrf.mxu0 }
 0x363   :  { %5157 = vmatpush.bf16.msrb.mxu0 %v8406_v37  ;;  %5126 = vmatmul.bf16.vlgmr.msra.gmra.mxu1 %v4582_v53  ;;  %v4401_v35 = vadd.f32 %v4400_v44, %v4388_v63 }
 0x364   :  { %5170 = vmatpush.bf16.msrb.mxu1 %v8414_v40  ;;  %5150 = vmatpush.bf16.msra.mxu3 %v8392_v46  ;;  %v4439_v36 = vpop.f32.mrf.mxu1 }
 0x365   :  { %v4414_v37 = vadd.f32 %v4413_v16, %v4401_v35 }
 0x366   :  { %5138 = vmatpush.bf16.msra.mxu2 %v8383_v56 }
 0x367   :  { %5158 = vmatpush.bf16.msrb.mxu0 %v8405_v15  ;;  %v4427_v39 = vadd.f32 %v4426_v33, %v4414_v37 }
 0x368   :  { %5171 = vmatpush.bf16.msrb.mxu1 %v8413_v45  ;;  %5151 = vmatpush.bf16.msra.mxu3 %v8391_v57 }
 0x369   :  { %5139 = vmatmul.bf16.vlgmr.msra.gmra.mxu2 %v4583_v1  ;;  %v4440_v46 = vadd.f32 %v4439_v36, %v4427_v39  ;;  %v8425_v1 = vld [vmem:[#allocation11 + $0x1d0] sm:$0xff] }
 0x36a   :  { %5183 = vmatpush.bf16.msrb.mxu2 %v8422_v58  ;;  %v4428_v40 = vpop.f32.mrf.mxu0  ;;  %v8428_v58 = vld [vmem:[#allocation11 + $0x1e8] sm:$0xff] }
 0x36b   :  { %5159 = vmatpush.bf16.msrb.mxu0 %v8404_v61  ;;  %5152 = vmatmul.bf16.vlgmr.msra.gmra.mxu3 %v4584_v49  ;;  %v8426_v61 = vld [vmem:[#allocation11 + $0x1d8] sm:$0xff]  ;;  %v8424_v49 = vld [vmem:[#allocation11 + $0x1c8] sm:$0xff] }
 0x36c   :  { %5172 = vmatpush.bf16.msrb.mxu1 %v8412_v43  ;;  %v4441_v41 = vpop.f32.mrf.mxu1  ;;  %5196 = vmatpush.bf16.msrb.mxu3 %v8430_v52 }
 0x36e   :  { %5184 = vmatpush.bf16.msrb.mxu2 %v8421_v47 }
 0x36f   :  { %5160 = vmatpush.bf16.msrb.mxu0 %v8403_v48 }
 0x370   :  { %5173 = vmatpush.bf16.msrb.mxu1 %v8411_v54  ;;  %v4452_v51 = vpop.f32.mrf.mxu2  ;;  %5197 = vmatpush.bf16.msrb.mxu3 %v8429_v55 }
 0x371   :  { %v4453_v15 = vadd.f32 %v4452_v51, %v4440_v46 }
 0x372   :  { %5185 = vmatpush.bf16.msrb.mxu2 %v8420_v3  ;;  %v4465_v53 = vpop.f32.mrf.mxu3  ;;  %v1172_v3 = vperm.slane %v8869_v34, 7 }
 0x373   :  { %5161 = vmatpush.bf16.msrb.mxu0 %v8402_v17  ;;  %v4466_v45 = vadd.f32 %v4465_v53, %v4453_v15 }
 0x374   :  { %5174 = vmatpush.bf16.msrb.mxu1 %v8410_v8  ;;  %5198 = vmatpush.bf16.msrb.mxu3 %v8428_v58 }
 0x375   :  { %v4579_v56 = vmax.f32 %v4466_v45, 0.0 }
 0x376   :  { %5186 = vmatpush.bf16.msrb.mxu2 %v8419_v10 }
 0x377   :  { %5162 = vmatpush.bf16.msrb.mxu0 %v8401_v6  ;;  %v4587_v42 = vpack.c.bf16 %v4579_v56, %v4579_v56 }
 0x378   :  { %5175 = vmatpush.bf16.msrb.mxu1 %v8409_v13  ;;  %v4454_v57 = vpop.f32.mrf.mxu2  ;;  %5199 = vmatpush.bf16.msrb.mxu3 %v8427_v59 }
 0x37a   :  { %5187 = vmatpush.bf16.msrb.mxu2 %v8418_v9  ;;  %v4467_v26 = vpop.f32.mrf.mxu3 }
 0x37b   :  { %5163 = vmatpush.bf16.msrb.mxu0 %v8400_v14 }
 0x37c   :  { %5176 = vmatpush.bf16.msrb.mxu1 %v8408_v19  ;;  %5200 = vmatpush.bf16.msrb.mxu3 %v8426_v61 }
 0x37e   :  { %5188 = vmatpush.bf16.msrb.mxu2 %v8417_v20 }
 0x37f   :  { %5164 = vmatpush.bf16.msrb.mxu0 %v8399_v21  ;;  %v8443_v21 = vld [vmem:[#allocation13] ss:$0 sm:$0xff] }
 0x380   :  { %5177 = vmatpush.bf16.msrb.mxu1 %v8407_v2  ;;  %5201 = vmatpush.bf16.msrb.mxu3 %v8425_v1 }
 0x382   :  { %5189 = vmatpush.bf16.msrb.mxu2 %v8416_v25  ;;  %5165 = vmatmul.bf16.vlgmr.msrb.gmra.mxu0 %v4585_v27  ;;  %v4478_v60 = vpop.f32.mrf.mxu0 }
 0x383   :  { %5178 = vmatmul.bf16.vlgmr.msrb.gmra.mxu1 %v4586_v28  ;;  %v4479_v5 = vadd.f32 %v4478_v60, %v1172_v3 }
 0x384   :  { %v4491_v43 = vpop.f32.mrf.mxu1  ;;  %5202 = vmatpush.bf16.msrb.mxu3 %v8424_v49 }
 0x385   :  { %v4492_v17 = vadd.f32 %v4491_v43, %v4479_v5 }
 0x386   :  { %5190 = vmatpush.bf16.msrb.mxu2 %v8415_v11 }
 0x388   :  { %5203 = vmatpush.bf16.msrb.mxu3 %v8423_v62 }
 0x389   :  { %5191 = vmatmul.bf16.vlgmr.msrb.gmra.mxu2 %v4587_v42 }
 0x38a   :  { %v4480_v0 = vpop.f32.mrf.mxu0 }
 0x38c   :  { %v4493_v47 = vpop.f32.mrf.mxu1 }
 0x394   :  { %v4504_v48 = vpop.f32.mrf.mxu2 }
 0x395   :  { %v4505_v10 = vadd.f32 %v4504_v48, %v4492_v17 }
 0x396   :  { %v4517_v54 = vpop.f32.mrf.mxu3 }
 0x397   :  { %v4518_v6 = vadd.f32 %v4517_v54, %v4505_v10 }
 0x39c   :  { %v4506_v4 = vpop.f32.mrf.mxu2 }
 0x39e   :  { %v4519_v7 = vpop.f32.mrf.mxu3 }
 0x3be   :  { %v4530_v8 = vpop.f32.mrf.mxu0 }
 0x3bf   :  { %v4531_v13 = vadd.f32 %v4530_v8, %v4518_v6 }
 0x3c0   :  { %v4543_v12 = vpop.f32.mrf.mxu1 }
 0x3c1   :  { %v4544_v38 = vadd.f32 %v4543_v12, %v4531_v13 }
 0x3c6   :  { %v4532_v22 = vpop.f32.mrf.mxu0 }
 0x3c8   :  { %v4545_v9 = vpop.f32.mrf.mxu1 }
 0x3cc   :  { %v4556_v18 = vpop.f32.mrf.mxu2 }
 0x3cd   :  { %v4557_v14 = vadd.f32 %v4556_v18, %v4544_v38 }
 0x3ce   :  { %v4569_v19 = vpop.f32.mrf.mxu3 }
 0x3cf   :  { %v4570_v50 = vadd.f32 %v4569_v19, %v4557_v14 }
 0x3d1   :  { %v4580_v20 = vmax.f32 %v4570_v50, 0.0 }
 0x3d3   :  { %v4588_v44 = vpack.c.bf16 %v4580_v20, %v4580_v20 }
 0x3d4   :  { %v4558_v16 = vpop.f32.mrf.mxu2 }
 0x3d5   :  { %5204 = vmatmul.bf16.vlgmr.msrb.gmra.mxu3 %v4588_v44 }
 0x3d6   :  { %v4571_v34 = vpop.f32.mrf.mxu3 }
 0x3df   :  { %v5114_v23 = vpop.f32.mrf.mxu0 }
 0x3e0   :  { %v5115_v2 = vadd.f32 %v8443_v21, %v5114_v23  ;;  %v5127_v24 = vpop.f32.mrf.mxu1 }
 0x3e2   :  { %v5128_v25 = vadd.f32 %v5127_v24, %v5115_v2 }
 0x3e7   :  { %v5116_v27 = vpop.f32.mrf.mxu0 }
 0x3e8   :  { %v5129_v28 = vpop.f32.mrf.mxu1 }
 0x3ec   :  { %v5140_v11 = vpop.f32.mrf.mxu2 }
 0x3ed   :  { %v5141_v30 = vadd.f32 %v5140_v11, %v5128_v25 }
 0x3ee   :  { %v5153_v31 = vpop.f32.mrf.mxu3 }
 0x3ef   :  { %v5154_v29 = vadd.f32 %v5153_v31, %v5141_v30 }
 0x3f4   :  { %v5142_v32 = vpop.f32.mrf.mxu2 }
 0x3f6   :  { %v5155_v63 = vpop.f32.mrf.mxu3 }
 0x3ff   :  { %v5166_v33 = vpop.f32.mrf.mxu0 }
 0x400   :  { %v5167_v35 = vadd.f32 %v5166_v33, %v5154_v29  ;;  %v5179_v36 = vpop.f32.mrf.mxu1 }
 0x402   :  { %v5180_v37 = vadd.f32 %v5179_v36, %v5167_v35 }
 0x407   :  { %v5168_v39 = vpop.f32.mrf.mxu0 }
 0x408   :  { %v5181_v40 = vpop.f32.mrf.mxu1 }
 0x40c   :  { %v5192_v41 = vpop.f32.mrf.mxu2 }
 0x40d   :  { %v5193_v51 = vadd.f32 %v5192_v41, %v5180_v37 }
 0x414   :  { %v5194_v46 = vpop.f32.mrf.mxu2 }
 0x458   :  { %v5205_v52 = vpop.f32.mrf.mxu3 }
 0x459   :  { %v5206_v15 = vadd.f32 %v5205_v52, %v5193_v51 }
 0x45b   :  { %v5209_v53 = vmax.f32 %v5206_v15, 0.0 }
 0x45d   :  { %5210 = vst [vmem:[#allocation14] sm:$0xff] %v5209_v53 }
 0x45e   :  { %5221 = dma.vmem_to_hbm [thread:$0]  %s5217_s6, 128, %s5219_s14, [#allocation4]  }
 0x460   :  { %v5207_v45 = vpop.f32.mrf.mxu3 }
 0x461   :  { %8646 = dma.done.wait [#allocation4], 128  }
 0x462   :  { %8647 = vsyncadd [#allocation4], 4294967168 }
 0x463   :  { %5226 = vsyncpa [#allocation3], 1 }
 0x464   :  { %5227 = vsyncpa [#allocation6], 1 }
 0x465   :  { %5228 = vsyncpa [#allocation9], 1 }
 0x466   :  { %5229 = vsyncpa [#allocation12], 1 }
 0x467   :  { %5230 = vsyncpa [#allocation4], 1 }

</bundles_post_ra>
